<compile_context>
chip_gen: v5e
topology: v5e:2x2
jax: 0.10.0
libtpu: 0.0.40
codegen_flags: <defaults>
</compile_context>

<pallas_src>
import jax
import jax.numpy as jnp
from jax.experimental import pallas as pl
from jax.experimental.pallas import tpu as pltpu

EXPANSION = 4
BN_EPS = 1e-5
_LANE = 128
_LPAD = 8          # column offset of the data inside the conv2 scratch (sublane-aligned stores)


def _round_up(n, m):
    return ((n + m - 1) // m) * m


# --------------------------------- kernel ---------------------------------
def _bottleneck_kernel(x_ref, xtop_ref, xbot_ref,
                       w1_ref, b1_ref, w2_ref, b2_ref, w3_ref, b3_ref,
                       out_ref, o1s_ref):
    TH, W, Cp = x_ref.shape          # one row-tile of one image (padded channels)
    Pp = w1_ref.shape[1]             # padded bottleneck width

    t = pl.program_id(1)
    n_t = pl.num_programs(1)
    f32, bf16 = jnp.float32, jnp.bfloat16

    # ---- conv1 (1x1, BN1 folded) + bias + ReLU, written into the conv2 scratch ----
    # Main tile -> scratch rows [1, TH], columns [_LPAD, _LPAD+W) (sublane-aligned store).
    o1m = jnp.dot(x_ref[...].reshape(TH * W, Cp), w1_ref[...],
                  preferred_element_type=f32)
    o1m = jnp.maximum(o1m + b1_ref[...], 0.0).astype(bf16)
    o1s_ref[1:TH + 1, _LPAD:_LPAD + W, :] = o1m.reshape(TH, W, Pp)

    # 1-row halos above/below the tile: one tiny (2W, Cp) matmul; masked to zero when the halo
    # lies outside the image (== conv2 zero padding, hence masked AFTER bias+ReLU).
    halo = jnp.concatenate([xtop_ref[...], xbot_ref[...]], axis=0)        # (2W, Cp) bf16
    oh = jnp.dot(halo, w1_ref[...], preferred_element_type=f32)
    oh = jnp.maximum(oh + b1_ref[...], 0.0)
    top_ok = jnp.where(t > 0, 1.0, 0.0)
    bot_ok = jnp.where(t < n_t - 1, 1.0, 0.0)
    o1s_ref[0:1, _LPAD:_LPAD + W, :] = (oh[:W] * top_ok).astype(bf16).reshape(1, W, Pp)
    o1s_ref[TH + 1:TH + 2, _LPAD:_LPAD + W, :] = (oh[W:] * bot_ok).astype(bf16).reshape(1, W, Pp)

    # conv2's left/right zero-pad columns. Re-zeroed every step (2 tiny column stores): cheap
    # and safe under megacore grid splitting, unlike a "zero once at global step 0" scheme.
    zcol = jnp.zeros((TH + 2, 1, Pp), bf16)
    o1s_ref[:, _LPAD - 1:_LPAD, :] = zcol
    o1s_ref[:, _LPAD + W:_LPAD + W + 1, :] = zcol

    # ---- conv2 (3x3, stride=1, pad=1, BN2 folded): 9 per-tap accumulating matmuls ----
    # No im2col materialization: each tap reads a shifted (TH, W, Pp) window straight from the
    # scratch (K = Pp >= 128 thanks to lane padding); dy shifts are free leading-dim offsets,
    # dx shifts are sublane-offset loads only (no extra stores).
    acc = None
    for k in range(9):
        dy, dx = divmod(k, 3)
        c0 = _LPAD - 1 + dx
        win = o1s_ref[dy:dy + TH, c0:c0 + W, :]
        part = jnp.dot(win.reshape(TH * W, Pp), w2_ref[k],
                       preferred_element_type=f32)
        acc = part if acc is None else acc + part
    o2 = acc + b2_ref[...]   # NOTE: reference forward has NO ReLU between bn2 and conv3.

    # ---- conv3 (1x1, BN3 folded) + bias, identity residual, final ReLU ----
    o3 = jnp.dot(o2.astype(bf16), w3_ref[...], preferred_element_type=f32) + b3_ref[...]
    res = x_ref[...].astype(f32).reshape(TH * W, Cp)
    out = jnp.maximum(o3 + res, 0.0)
    out_ref[...] = out.reshape(TH, W, Cp).astype(out_ref.dtype)


# ------------------------------ host wrappers ------------------------------
def _fold_bn(gamma, beta, mean, var):
    s = gamma / jnp.sqrt(var + BN_EPS)
    return s, beta - mean * s


def _vmem_bytes_estimate(TH, W, Cp, Pp):
    act_io = 2 * 2 * (TH * W * Cp * 2)                       # x + out tiles, bf16, double-buffered
    halos = 2 * 2 * (2 * W * Cp * 2)
    weights = 2 * ((Cp * Pp + 9 * Pp * Pp + Pp * Cp) * 2 + (2 * Pp + Cp) * 4)
    scratch = (TH + 2) * (W + _LPAD + 1) * Pp * 2
    interm = TH * W * (2 * Pp + 2 * Cp) * 4                  # f32 conv2 acc / o2 / o3 live values
    return act_io + halos + weights + scratch + interm


def _pick_block_h(H, W, Cp, Pp, budget_bytes=12 * 1024 * 1024):
    """Largest divisor of H whose per-step working set fits the VMEM budget (v7x-safe)."""
    for th in range(H, 0, -1):
        if H % th == 0 and _vmem_bytes_estimate(th, W, Cp, Pp) <= budget_bytes:
            return th
    return 1


def bottleneck_forward_nhwc(x, params, *, block_h=None):
    """Fused Bottleneck on NHWC input. Primary (production) entry point.

    Accepts f32/bf16 NHWC; activations are kept bf16 in HBM (this block is bandwidth bound).
    Returns NHWC bf16.
    """
    N, H, W, Cin = x.shape
    P = params["w1"].shape[0]
    Cout = P * EXPANSION
    assert Cin == Cout, "identity residual requires inplanes == planes * expansion"

    Cp = _round_up(Cin, _LANE)
    Pp = _round_up(P, _LANE)

    s1, b1 = _fold_bn(params["bn1_g"], params["bn1_b"], params["bn1_rm"], params["bn1_rv"])
    s2, b2 = _fold_bn(params["bn2_g"], params["bn2_b"], params["bn2_rm"], params["bn2_rv"])
    s3, b3 = _fold_bn(params["bn3_g"], params["bn3_b"], params["bn3_rm"], params["bn3_rv"])

    # Fold BN scales into the conv weights (in f32, cast to bf16 last), pad every channel dim to
    # a multiple of 128 lanes. PyTorch OIHW -> matmul-friendly layouts.
    w1 = params["w1"][:, :, 0, 0].T * s1[None, :]                               # (Cin, P)
    w1 = jnp.pad(w1, ((0, Cp - Cin), (0, Pp - P))).astype(jnp.bfloat16)
    w2 = jnp.transpose(params["w2"], (2, 3, 1, 0)) * s2[None, None, None, :]    # (3,3,Pin,Pout)
    w2 = jnp.pad(w2, ((0, 0), (0, 0), (0, Pp - P), (0, Pp - P)))
    w2 = w2.reshape(9, Pp, Pp).astype(jnp.bfloat16)                             # tap-major
    w3 = params["w3"][:, :, 0, 0].T * s3[None, :]                               # (P, Cout)
    w3 = jnp.pad(w3, ((0, Pp - P), (0, Cp - Cout))).astype(jnp.bfloat16)
    b1p = jnp.pad(b1, (0, Pp - P)).reshape(1, Pp).astype(jnp.float32)
    b2p = jnp.pad(b2, (0, Pp - P)).reshape(1, Pp).astype(jnp.float32)
    b3p = jnp.pad(b3, (0, Cp - Cout)).reshape(1, Cp).astype(jnp.float32)

    x = x.astype(jnp.bfloat16)
    if Cp != Cin:
        # Only hit when inplanes < 128 (toy shapes); real ResNet stages (256..2048) are lane-dense.
        x = jnp.pad(x, ((0, 0), (0, 0), (0, 0), (0, Cp - Cin)))

    if block_h is None:
        block_h = _pick_block_h(H, W, Cp, Pp)
    assert H % block_h == 0, "block_h must divide H"
    TH = block_h
    n_tiles = H // TH

    flops = 2 * N * H * W * (Cp * Pp + 9 * Pp * Pp + Pp * Cp)
    bytes_accessed = (2 * N * H * W * Cp) * 2 + (w1.size + w2.size + w3.size) * 2 \
        + (b1p.size + b2p.size + b3p.size) * 4
    cost = pl.CostEstimate(flops=int(flops), transcendentals=0,
                           bytes_accessed=int(bytes_accessed))

    y = pl.pallas_call(
        _bottleneck_kernel,
        out_shape=jax.ShapeDtypeStruct((N, H, W, Cp), jnp.bfloat16),
        grid=(N, n_tiles),
        in_specs=[
            # row-tile of x
            pl.BlockSpec((None, TH, W, Cp), lambda n, t: (n, t, 0, 0)),
            # 1-row halo above (clamped at the top edge; masked to zero in-kernel)
            pl.BlockSpec((None, None, W, Cp),
                         lambda n, t: (n, jnp.maximum(t * TH - 1, 0), 0, 0)),
            # 1-row halo below (clamped at the bottom edge; masked to zero in-kernel)
            pl.BlockSpec((None, None, W, Cp),
                         lambda n, t: (n, jnp.minimum((t + 1) * TH, H - 1), 0, 0)),
            pl.BlockSpec((Cp, Pp), lambda n, t: (0, 0)),         # w1 (bf16, BN1 folded)
            pl.BlockSpec((1, Pp), lambda n, t: (0, 0)),          # b1
            pl.BlockSpec((9, Pp, Pp), lambda n, t: (0, 0, 0)),   # w2 per-tap (bf16, BN2 folded)
            pl.BlockSpec((1, Pp), lambda n, t: (0, 0)),          # b2
            pl.BlockSpec((Pp, Cp), lambda n, t: (0, 0)),         # w3 (bf16, BN3 folded)
            pl.BlockSpec((1, Cp), lambda n, t: (0, 0)),          # b3
        ],
        out_specs=pl.BlockSpec((None, TH, W, Cp), lambda n, t: (n, t, 0, 0)),
        scratch_shapes=[pltpu.VMEM((TH + 2, W + _LPAD + 1, Pp), jnp.bfloat16)],
        compiler_params=pltpu.CompilerParams(
            dimension_semantics=("parallel", "parallel"),
            vmem_limit_bytes=32 * 1024 * 1024),
        cost_estimate=cost,
    )(x, x, x, w1, b1p, w2, b2p, w3, b3p)

    if Cp != Cin:
        y = y[..., :Cout]
    return y


def bottleneck_forward(x_nchw, params, *, stride=1, downsample=None, block_h=None):
    """PyTorch-style NCHW wrapper (test/parity path; the transposes cost an extra HBM round
    trip each — production code should call bottleneck_forward_nhwc directly)."""
    if stride != 1 or downsample is not None:
        # TODO(synk): stride>1 / downsample projection path not implemented
        #             (module defaults are stride=1, downsample=None).
        raise NotImplementedError("Only stride=1, downsample=None is supported.")
    x = jnp.transpose(x_nchw, (0, 2, 3, 1))          # NCHW -> NHWC
    y = bottleneck_forward_nhwc(x, params, block_h=block_h)
    return jnp.transpose(y, (0, 3, 1, 2))            # NHWC -> NCHW


# -------- pure-JAX reference (NCHW, matches the PyTorch eval-mode forward) --------
def _conv_nchw(x, w, stride=1, padding=0):
    return jax.lax.conv_general_dilated(
        x, w, (stride, stride), [(padding, padding), (padding, padding)],
        dimension_numbers=("NCHW", "OIHW", "NCHW"))


def _bn_eval(x, g, b, rm, rv):
    inv = g / jnp.sqrt(rv + BN_EPS)
    return x * inv[None, :, None, None] + (b - rm * inv)[None, :, None, None]


def bottleneck_ref(x, p):
    out = _conv_nchw(x, p["w1"])
    out = _bn_eval(out, p["bn1_g"], p["bn1_b"], p["bn1_rm"], p["bn1_rv"])
    out = jnp.maximum(out, 0.0)
    out = _conv_nchw(out, p["w2"], padding=1)
    out = _bn_eval(out, p["bn2_g"], p["bn2_b"], p["bn2_rm"], p["bn2_rv"])
    out = _conv_nchw(out, p["w3"])
    out = _bn_eval(out, p["bn3_g"], p["bn3_b"], p["bn3_rm"], p["bn3_rv"])
    return jnp.maximum(out + x, 0.0)


if __name__ == "__main__":
    inplanes, planes = 32, 8          # inplanes == planes * expansion (downsample=None)
    N, H, W = 2, 16, 16

    key = jax.random.PRNGKey(0)
    ks = jax.random.split(key, 16)

    def bn_params(kg, kb, km, kv, c):
        return (1.0 + 0.1 * jax.random.normal(kg, (c,), jnp.float32),
                0.1 * jax.random.normal(kb, (c,), jnp.float32),
                0.1 * jax.random.normal(km, (c,), jnp.float32),
                1.0 + 0.1 * jnp.abs(jax.random.normal(kv, (c,), jnp.float32)))

    g1, bb1, m1, v1 = bn_params(ks[3], ks[4], ks[5], ks[6], planes)
    g2, bb2, m2, v2 = bn_params(ks[7], ks[8], ks[9], ks[10], planes)
    g3, bb3, m3, v3 = bn_params(ks[11], ks[12], ks[13], ks[14], planes * EXPANSION)

    params = {
        "w1": 0.1 * jax.random.normal(ks[0], (planes, inplanes, 1, 1), jnp.float32),
        "w2": 0.1 * jax.random.normal(ks[1], (planes, planes, 3, 3), jnp.float32),
        "w3": 0.1 * jax.random.normal(ks[2], (planes * EXPANSION, planes, 1, 1), jnp.float32),
        "bn1_g": g1, "bn1_b": bb1, "bn1_rm": m1, "bn1_rv": v1,
        "bn2_g": g2, "bn2_b": bb2, "bn2_rm": m2, "bn2_rv": v2,
        "bn3_g": g3, "bn3_b": bb3, "bn3_rm": m3, "bn3_rv": v3,
    }

    x = jax.random.normal(ks[15], (N, inplanes, H, W), jnp.float32)
    x_bf = x.astype(jnp.bfloat16)       # kernel contract: bf16 activations in / out

    y_ref = jax.block_until_ready(bottleneck_ref(x_bf.astype(jnp.float32), params))

    # Default tiling (whole-image tile, grid (N, 1)).
    y1 = jax.block_until_ready(bottleneck_forward(x_bf, params))
    # Forced multi-tile path: exercises the t==0 / t==last halo edges.
    y2 = jax.block_until_ready(bottleneck_forward(x_bf, params, block_h=8))

    assert y1.shape == (N, planes * EXPANSION, H, W)
    assert y2.shape == (N, planes * EXPANSION, H, W)
    # bf16 activations + bf16 MXU operands with f32 accumulation -> loose-ish tolerance.
    ok1 = bool(jnp.allclose(y1.astype(jnp.float32), y_ref, atol=5e-2, rtol=5e-2))
    ok2 = bool(jnp.allclose(y2.astype(jnp.float32), y_ref, atol=5e-2, rtol=5e-2))
    if not (ok1 and ok2):
        raise AssertionError("Pallas Bottleneck output does not match JAX reference")

    print("KERNEL_OK")
</pallas_src>

<mosaic_0001>
module attributes {stable_mosaic.version = 11 : i64} {
  func.func @_bottleneck_kernel(%arg0: i32, %arg1: i32, %arg2: memref<1x16x16x128xbf16, #tpu.memory_space<vmem>>, %arg3: memref<1x1x16x128xbf16, #tpu.memory_space<vmem>>, %arg4: memref<1x1x16x128xbf16, #tpu.memory_space<vmem>>, %arg5: memref<128x128xbf16, #tpu.memory_space<vmem>>, %arg6: memref<1x128xf32, #tpu.memory_space<vmem>>, %arg7: memref<9x128x128xbf16, #tpu.memory_space<vmem>>, %arg8: memref<1x128xf32, #tpu.memory_space<vmem>>, %arg9: memref<128x128xbf16, #tpu.memory_space<vmem>>, %arg10: memref<1x128xf32, #tpu.memory_space<vmem>>, %arg11: memref<1x16x16x128xbf16, #tpu.memory_space<vmem>>, %arg12: memref<18x25x128xbf16, #tpu.memory_space<vmem>>) attributes {dimension_semantics = [#tpu.dimension_semantics<parallel>, #tpu.dimension_semantics<parallel>], iteration_bounds = array<i64: 2, 1>, scalar_prefetch = 0 : i64, scratch_operands = 1 : i64, tpu.core_type = #tpu.core_type<tc>, window_params = [{transform_indices = @transform_0, window_bounds = array<i64: 1, 16, 16, 128>}, {transform_indices = @transform_1, window_bounds = array<i64: 1, 1, 16, 128>}, {transform_indices = @transform_2, window_bounds = array<i64: 1, 1, 16, 128>}, {pipeline_mode = #tpu.pipeline_mode<synchronous>, transform_indices = @transform_3, window_bounds = array<i64: 128, 128>}, {pipeline_mode = #tpu.pipeline_mode<synchronous>, transform_indices = @transform_4, window_bounds = array<i64: 1, 128>}, {pipeline_mode = #tpu.pipeline_mode<synchronous>, transform_indices = @transform_5, window_bounds = array<i64: 9, 128, 128>}, {pipeline_mode = #tpu.pipeline_mode<synchronous>, transform_indices = @transform_6, window_bounds = array<i64: 1, 128>}, {pipeline_mode = #tpu.pipeline_mode<synchronous>, transform_indices = @transform_7, window_bounds = array<i64: 128, 128>}, {pipeline_mode = #tpu.pipeline_mode<synchronous>, transform_indices = @transform_8, window_bounds = array<i64: 1, 128>}, {transform_indices = @transform_9, window_bounds = array<i64: 1, 16, 16, 128>}]} {
    %c0 = arith.constant 0 : index
    %c0_0 = arith.constant 0 : index
    %c0_1 = arith.constant 0 : index
    %c0_2 = arith.constant 0 : index
    %0 = vector.load %arg2[%c0, %c0_0, %c0_1, %c0_2] : memref<1x16x16x128xbf16, #tpu.memory_space<vmem>>, vector<1x16x16x128xbf16>
    %1 = vector.shape_cast %0 : vector<1x16x16x128xbf16> to vector<16x16x128xbf16>
    %2 = vector.shape_cast %1 : vector<16x16x128xbf16> to vector<256x128xbf16>
    %c0_3 = arith.constant 0 : index
    %c0_4 = arith.constant 0 : index
    %3 = vector.load %arg5[%c0_3, %c0_4] : memref<128x128xbf16, #tpu.memory_space<vmem>>, vector<128x128xbf16>
    %cst = arith.constant dense<0.000000e+00> : vector<256x128xf32>
    %4 = tpu.matmul %2, %3, %cst {dimension_numbers = #tpu.dot_dimension_numbers<[1], [0], [0], [1], [0, 0, 1, 1], [], []>} : vector<256x128xbf16>, vector<128x128xbf16>, vector<256x128xf32> -> vector<256x128xf32>
    %c0_5 = arith.constant 0 : index
    %c0_6 = arith.constant 0 : index
    %5 = vector.load %arg6[%c0_5, %c0_6] : memref<1x128xf32, #tpu.memory_space<vmem>>, vector<1x128xf32>
    %6 = vector.broadcast %5 : vector<1x128xf32> to vector<256x128xf32>
    %7 = arith.addf %4, %6 : vector<256x128xf32>
    %cst_7 = arith.constant 0.000000e+00 : f32
    %8 = vector.broadcast %cst_7 : f32 to vector<256x128xf32>
    %9 = arith.maximumf %7, %8 : vector<256x128xf32>
    %10 = arith.truncf %9 : vector<256x128xf32> to vector<256x128xbf16>
    %11 = vector.shape_cast %10 : vector<256x128xbf16> to vector<16x16x128xbf16>
    %c1 = arith.constant 1 : index
    %c8 = arith.constant 8 : index
    %c0_8 = arith.constant 0 : index
    %12 = vector.load %arg12[%c1, %c8, %c0_8] : memref<18x25x128xbf16, #tpu.memory_space<vmem>>, vector<16x16x128xbf16>
    tpu.vector_store %arg12[%c1, %c8, %c0_8], %11 {strides = array<i32>} : memref<18x25x128xbf16, #tpu.memory_space<vmem>>, vector<16x16x128xbf16>,
    %c0_9 = arith.constant 0 : index
    %c0_10 = arith.constant 0 : index
    %c0_11 = arith.constant 0 : index
    %c0_12 = arith.constant 0 : index
    %13 = vector.load %arg3[%c0_9, %c0_10, %c0_11, %c0_12] : memref<1x1x16x128xbf16, #tpu.memory_space<vmem>>, vector<1x1x16x128xbf16>
    %14 = vector.shape_cast %13 : vector<1x1x16x128xbf16> to vector<16x128xbf16>
    %c0_13 = arith.constant 0 : index
    %c0_14 = arith.constant 0 : index
    %c0_15 = arith.constant 0 : index
    %c0_16 = arith.constant 0 : index
    %15 = vector.load %arg4[%c0_13, %c0_14, %c0_15, %c0_16] : memref<1x1x16x128xbf16, #tpu.memory_space<vmem>>, vector<1x1x16x128xbf16>
    %16 = vector.shape_cast %15 : vector<1x1x16x128xbf16> to vector<16x128xbf16>
    %17 = tpu.concatenate %14, %16 in 0 : vector<16x128xbf16>, vector<16x128xbf16> -> vector<32x128xbf16>
    %c0_17 = arith.constant 0 : index
    %c0_18 = arith.constant 0 : index
    %18 = vector.load %arg5[%c0_17, %c0_18] : memref<128x128xbf16, #tpu.memory_space<vmem>>, vector<128x128xbf16>
    %cst_19 = arith.constant dense<0.000000e+00> : vector<32x128xf32>
    %19 = tpu.matmul %17, %18, %cst_19 {dimension_numbers = #tpu.dot_dimension_numbers<[1], [0], [0], [1], [0, 0, 1, 1], [], []>} : vector<32x128xbf16>, vector<128x128xbf16>, vector<32x128xf32> -> vector<32x128xf32>
    %c0_20 = arith.constant 0 : index
    %c0_21 = arith.constant 0 : index
    %20 = vector.load %arg6[%c0_20, %c0_21] : memref<1x128xf32, #tpu.memory_space<vmem>>, vector<1x128xf32>
    %21 = vector.broadcast %20 : vector<1x128xf32> to vector<32x128xf32>
    %22 = arith.addf %19, %21 : vector<32x128xf32>
    %cst_22 = arith.constant 0.000000e+00 : f32
    %23 = vector.broadcast %cst_22 : f32 to vector<32x128xf32>
    %24 = arith.maximumf %22, %23 : vector<32x128xf32>
    %c0_i32 = arith.constant 0 : i32
    %25 = arith.cmpi sgt, %arg1, %c0_i32 : i32
    %cst_23 = arith.constant 1.000000e+00 : f32
    %cst_24 = arith.constant 0.000000e+00 : f32
    %26 = arith.select %25, %cst_23, %cst_24 : f32
    %c0_i32_25 = arith.constant 0 : i32
    %27 = arith.cmpi slt, %arg1, %c0_i32_25 : i32
    %cst_26 = arith.constant 1.000000e+00 : f32
    %cst_27 = arith.constant 0.000000e+00 : f32
    %28 = arith.select %27, %cst_26, %cst_27 : f32
    %29 = vector.extract_strided_slice %24 {offsets = [0, 0], sizes = [16, 128], strides = [1, 1]} : vector<32x128xf32> to vector<16x128xf32>
    %30 = vector.broadcast %26 : f32 to vector<16x128xf32>
    %31 = arith.mulf %29, %30 : vector<16x128xf32>
    %32 = arith.truncf %31 : vector<16x128xf32> to vector<16x128xbf16>
    %33 = vector.shape_cast %32 : vector<16x128xbf16> to vector<1x16x128xbf16>
    %c0_28 = arith.constant 0 : index
    %c8_29 = arith.constant 8 : index
    %c0_30 = arith.constant 0 : index
    %34 = vector.load %arg12[%c0_28, %c8_29, %c0_30] : memref<18x25x128xbf16, #tpu.memory_space<vmem>>, vector<1x16x128xbf16>
    tpu.vector_store %arg12[%c0_28, %c8_29, %c0_30], %33 {strides = array<i32>} : memref<18x25x128xbf16, #tpu.memory_space<vmem>>, vector<1x16x128xbf16>,
    %35 = vector.extract_strided_slice %24 {offsets = [16, 0], sizes = [16, 128], strides = [1, 1]} : vector<32x128xf32> to vector<16x128xf32>
    %36 = vector.broadcast %28 : f32 to vector<16x128xf32>
    %37 = arith.mulf %35, %36 : vector<16x128xf32>
    %38 = arith.truncf %37 : vector<16x128xf32> to vector<16x128xbf16>
    %39 = vector.shape_cast %38 : vector<16x128xbf16> to vector<1x16x128xbf16>
    %c17 = arith.constant 17 : index
    %c8_31 = arith.constant 8 : index
    %c0_32 = arith.constant 0 : index
    %40 = vector.load %arg12[%c17, %c8_31, %c0_32] : memref<18x25x128xbf16, #tpu.memory_space<vmem>>, vector<1x16x128xbf16>
    tpu.vector_store %arg12[%c17, %c8_31, %c0_32], %39 {strides = array<i32>} : memref<18x25x128xbf16, #tpu.memory_space<vmem>>, vector<1x16x128xbf16>,
    %cst_33 = arith.constant 0.000000e+00 : bf16
    %41 = vector.broadcast %cst_33 : bf16 to vector<18x1x128xbf16>
    %c0_34 = arith.constant 0 : index
    %c7 = arith.constant 7 : index
    %c0_35 = arith.constant 0 : index
    %42 = vector.load %arg12[%c0_34, %c7, %c0_35] : memref<18x25x128xbf16, #tpu.memory_space<vmem>>, vector<18x1x128xbf16>
    tpu.vector_store %arg12[%c0_34, %c7, %c0_35], %41 {strides = array<i32>} : memref<18x25x128xbf16, #tpu.memory_space<vmem>>, vector<18x1x128xbf16>,
    %c0_36 = arith.constant 0 : index
    %c24 = arith.constant 24 : index
    %c0_37 = arith.constant 0 : index
    %43 = vector.load %arg12[%c0_36, %c24, %c0_37] : memref<18x25x128xbf16, #tpu.memory_space<vmem>>, vector<18x1x128xbf16>
    tpu.vector_store %arg12[%c0_36, %c24, %c0_37], %41 {strides = array<i32>} : memref<18x25x128xbf16, #tpu.memory_space<vmem>>, vector<18x1x128xbf16>,
    %c0_38 = arith.constant 0 : index
    %c7_39 = arith.constant 7 : index
    %c0_40 = arith.constant 0 : index
    %44 = vector.load %arg12[%c0_38, %c7_39, %c0_40] : memref<18x25x128xbf16, #tpu.memory_space<vmem>>, vector<16x16x128xbf16>
    %45 = vector.shape_cast %44 : vector<16x16x128xbf16> to vector<256x128xbf16>
    %c0_41 = arith.constant 0 : index
    %c0_42 = arith.constant 0 : index
    %c0_43 = arith.constant 0 : index
    %46 = vector.load %arg7[%c0_41, %c0_42, %c0_43] : memref<9x128x128xbf16, #tpu.memory_space<vmem>>, vector<1x128x128xbf16>
    %47 = vector.shape_cast %46 : vector<1x128x128xbf16> to vector<128x128xbf16>
    %cst_44 = arith.constant dense<0.000000e+00> : vector<256x128xf32>
    %48 = tpu.matmul %45, %47, %cst_44 {dimension_numbers = #tpu.dot_dimension_numbers<[1], [0], [0], [1], [0, 0, 1, 1], [], []>} : vector<256x128xbf16>, vector<128x128xbf16>, vector<256x128xf32> -> vector<256x128xf32>
    %c0_45 = arith.constant 0 : index
    %c8_46 = arith.constant 8 : index
    %c0_47 = arith.constant 0 : index
    %49 = vector.load %arg12[%c0_45, %c8_46, %c0_47] : memref<18x25x128xbf16, #tpu.memory_space<vmem>>, vector<16x16x128xbf16>
    %50 = vector.shape_cast %49 : vector<16x16x128xbf16> to vector<256x128xbf16>
    %c1_48 = arith.constant 1 : index
    %c0_49 = arith.constant 0 : index
    %c0_50 = arith.constant 0 : index
    %51 = vector.load %arg7[%c1_48, %c0_49, %c0_50] : memref<9x128x128xbf16, #tpu.memory_space<vmem>>, vector<1x128x128xbf16>
    %52 = vector.shape_cast %51 : vector<1x128x128xbf16> to vector<128x128xbf16>
    %cst_51 = arith.constant dense<0.000000e+00> : vector<256x128xf32>
    %53 = tpu.matmul %50, %52, %cst_51 {dimension_numbers = #tpu.dot_dimension_numbers<[1], [0], [0], [1], [0, 0, 1, 1], [], []>} : vector<256x128xbf16>, vector<128x128xbf16>, vector<256x128xf32> -> vector<256x128xf32>
    %54 = arith.addf %48, %53 : vector<256x128xf32>
    %c0_52 = arith.constant 0 : index
    %c9 = arith.constant 9 : index
    %c0_53 = arith.constant 0 : index
    %55 = vector.load %arg12[%c0_52, %c9, %c0_53] : memref<18x25x128xbf16, #tpu.memory_space<vmem>>, vector<16x16x128xbf16>
    %56 = vector.shape_cast %55 : vector<16x16x128xbf16> to vector<256x128xbf16>
    %c2 = arith.constant 2 : index
    %c0_54 = arith.constant 0 : index
    %c0_55 = arith.constant 0 : index
    %57 = vector.load %arg7[%c2, %c0_54, %c0_55] : memref<9x128x128xbf16, #tpu.memory_space<vmem>>, vector<1x128x128xbf16>
    %58 = vector.shape_cast %57 : vector<1x128x128xbf16> to vector<128x128xbf16>
    %cst_56 = arith.constant dense<0.000000e+00> : vector<256x128xf32>
    %59 = tpu.matmul %56, %58, %cst_56 {dimension_numbers = #tpu.dot_dimension_numbers<[1], [0], [0], [1], [0, 0, 1, 1], [], []>} : vector<256x128xbf16>, vector<128x128xbf16>, vector<256x128xf32> -> vector<256x128xf32>
    %60 = arith.addf %54, %59 : vector<256x128xf32>
    %c1_57 = arith.constant 1 : index
    %c7_58 = arith.constant 7 : index
    %c0_59 = arith.constant 0 : index
    %61 = vector.load %arg12[%c1_57, %c7_58, %c0_59] : memref<18x25x128xbf16, #tpu.memory_space<vmem>>, vector<16x16x128xbf16>
    %62 = vector.shape_cast %61 : vector<16x16x128xbf16> to vector<256x128xbf16>
    %c3 = arith.constant 3 : index
    %c0_60 = arith.constant 0 : index
    %c0_61 = arith.constant 0 : index
    %63 = vector.load %arg7[%c3, %c0_60, %c0_61] : memref<9x128x128xbf16, #tpu.memory_space<vmem>>, vector<1x128x128xbf16>
    %64 = vector.shape_cast %63 : vector<1x128x128xbf16> to vector<128x128xbf16>
    %cst_62 = arith.constant dense<0.000000e+00> : vector<256x128xf32>
    %65 = tpu.matmul %62, %64, %cst_62 {dimension_numbers = #tpu.dot_dimension_numbers<[1], [0], [0], [1], [0, 0, 1, 1], [], []>} : vector<256x128xbf16>, vector<128x128xbf16>, vector<256x128xf32> -> vector<256x128xf32>
    %66 = arith.addf %60, %65 : vector<256x128xf32>
    %c1_63 = arith.constant 1 : index
    %c8_64 = arith.constant 8 : index
    %c0_65 = arith.constant 0 : index
    %67 = vector.load %arg12[%c1_63, %c8_64, %c0_65] : memref<18x25x128xbf16, #tpu.memory_space<vmem>>, vector<16x16x128xbf16>
    %68 = vector.shape_cast %67 : vector<16x16x128xbf16> to vector<256x128xbf16>
    %c4 = arith.constant 4 : index
    %c0_66 = arith.constant 0 : index
    %c0_67 = arith.constant 0 : index
    %69 = vector.load %arg7[%c4, %c0_66, %c0_67] : memref<9x128x128xbf16, #tpu.memory_space<vmem>>, vector<1x128x128xbf16>
    %70 = vector.shape_cast %69 : vector<1x128x128xbf16> to vector<128x128xbf16>
    %cst_68 = arith.constant dense<0.000000e+00> : vector<256x128xf32>
    %71 = tpu.matmul %68, %70, %cst_68 {dimension_numbers = #tpu.dot_dimension_numbers<[1], [0], [0], [1], [0, 0, 1, 1], [], []>} : vector<256x128xbf16>, vector<128x128xbf16>, vector<256x128xf32> -> vector<256x128xf32>
    %72 = arith.addf %66, %71 : vector<256x128xf32>
    %c1_69 = arith.constant 1 : index
    %c9_70 = arith.constant 9 : index
    %c0_71 = arith.constant 0 : index
    %73 = vector.load %arg12[%c1_69, %c9_70, %c0_71] : memref<18x25x128xbf16, #tpu.memory_space<vmem>>, vector<16x16x128xbf16>
    %74 = vector.shape_cast %73 : vector<16x16x128xbf16> to vector<256x128xbf16>
    %c5 = arith.constant 5 : index
    %c0_72 = arith.constant 0 : index
    %c0_73 = arith.constant 0 : index
    %75 = vector.load %arg7[%c5, %c0_72, %c0_73] : memref<9x128x128xbf16, #tpu.memory_space<vmem>>, vector<1x128x128xbf16>
    %76 = vector.shape_cast %75 : vector<1x128x128xbf16> to vector<128x128xbf16>
    %cst_74 = arith.constant dense<0.000000e+00> : vector<256x128xf32>
    %77 = tpu.matmul %74, %76, %cst_74 {dimension_numbers = #tpu.dot_dimension_numbers<[1], [0], [0], [1], [0, 0, 1, 1], [], []>} : vector<256x128xbf16>, vector<128x128xbf16>, vector<256x128xf32> -> vector<256x128xf32>
    %78 = arith.addf %72, %77 : vector<256x128xf32>
    %c2_75 = arith.constant 2 : index
    %c7_76 = arith.constant 7 : index
    %c0_77 = arith.constant 0 : index
    %79 = vector.load %arg12[%c2_75, %c7_76, %c0_77] : memref<18x25x128xbf16, #tpu.memory_space<vmem>>, vector<16x16x128xbf16>
    %80 = vector.shape_cast %79 : vector<16x16x128xbf16> to vector<256x128xbf16>
    %c6 = arith.constant 6 : index
    %c0_78 = arith.constant 0 : index
    %c0_79 = arith.constant 0 : index
    %81 = vector.load %arg7[%c6, %c0_78, %c0_79] : memref<9x128x128xbf16, #tpu.memory_space<vmem>>, vector<1x128x128xbf16>
    %82 = vector.shape_cast %81 : vector<1x128x128xbf16> to vector<128x128xbf16>
    %cst_80 = arith.constant dense<0.000000e+00> : vector<256x128xf32>
    %83 = tpu.matmul %80, %82, %cst_80 {dimension_numbers = #tpu.dot_dimension_numbers<[1], [0], [0], [1], [0, 0, 1, 1], [], []>} : vector<256x128xbf16>, vector<128x128xbf16>, vector<256x128xf32> -> vector<256x128xf32>
    %84 = arith.addf %78, %83 : vector<256x128xf32>
    %c2_81 = arith.constant 2 : index
    %c8_82 = arith.constant 8 : index
    %c0_83 = arith.constant 0 : index
    %85 = vector.load %arg12[%c2_81, %c8_82, %c0_83] : memref<18x25x128xbf16, #tpu.memory_space<vmem>>, vector<16x16x128xbf16>
    %86 = vector.shape_cast %85 : vector<16x16x128xbf16> to vector<256x128xbf16>
    %c7_84 = arith.constant 7 : index
    %c0_85 = arith.constant 0 : index
    %c0_86 = arith.constant 0 : index
    %87 = vector.load %arg7[%c7_84, %c0_85, %c0_86] : memref<9x128x128xbf16, #tpu.memory_space<vmem>>, vector<1x128x128xbf16>
    %88 = vector.shape_cast %87 : vector<1x128x128xbf16> to vector<128x128xbf16>
    %cst_87 = arith.constant dense<0.000000e+00> : vector<256x128xf32>
    %89 = tpu.matmul %86, %88, %cst_87 {dimension_numbers = #tpu.dot_dimension_numbers<[1], [0], [0], [1], [0, 0, 1, 1], [], []>} : vector<256x128xbf16>, vector<128x128xbf16>, vector<256x128xf32> -> vector<256x128xf32>
    %90 = arith.addf %84, %89 : vector<256x128xf32>
    %c2_88 = arith.constant 2 : index
    %c9_89 = arith.constant 9 : index
    %c0_90 = arith.constant 0 : index
    %91 = vector.load %arg12[%c2_88, %c9_89, %c0_90] : memref<18x25x128xbf16, #tpu.memory_space<vmem>>, vector<16x16x128xbf16>
    %92 = vector.shape_cast %91 : vector<16x16x128xbf16> to vector<256x128xbf16>
    %c8_91 = arith.constant 8 : index
    %c0_92 = arith.constant 0 : index
    %c0_93 = arith.constant 0 : index
    %93 = vector.load %arg7[%c8_91, %c0_92, %c0_93] : memref<9x128x128xbf16, #tpu.memory_space<vmem>>, vector<1x128x128xbf16>
    %94 = vector.shape_cast %93 : vector<1x128x128xbf16> to vector<128x128xbf16>
    %cst_94 = arith.constant dense<0.000000e+00> : vector<256x128xf32>
    %95 = tpu.matmul %92, %94, %cst_94 {dimension_numbers = #tpu.dot_dimension_numbers<[1], [0], [0], [1], [0, 0, 1, 1], [], []>} : vector<256x128xbf16>, vector<128x128xbf16>, vector<256x128xf32> -> vector<256x128xf32>
    %96 = arith.addf %90, %95 : vector<256x128xf32>
    %c0_95 = arith.constant 0 : index
    %c0_96 = arith.constant 0 : index
    %97 = vector.load %arg8[%c0_95, %c0_96] : memref<1x128xf32, #tpu.memory_space<vmem>>, vector<1x128xf32>
    %98 = vector.broadcast %97 : vector<1x128xf32> to vector<256x128xf32>
    %99 = arith.addf %96, %98 : vector<256x128xf32>
    %100 = arith.truncf %99 : vector<256x128xf32> to vector<256x128xbf16>
    %c0_97 = arith.constant 0 : index
    %c0_98 = arith.constant 0 : index
    %101 = vector.load %arg9[%c0_97, %c0_98] : memref<128x128xbf16, #tpu.memory_space<vmem>>, vector<128x128xbf16>
    %cst_99 = arith.constant dense<0.000000e+00> : vector<256x128xf32>
    %102 = tpu.matmul %100, %101, %cst_99 {dimension_numbers = #tpu.dot_dimension_numbers<[1], [0], [0], [1], [0, 0, 1, 1], [], []>} : vector<256x128xbf16>, vector<128x128xbf16>, vector<256x128xf32> -> vector<256x128xf32>
    %c0_100 = arith.constant 0 : index
    %c0_101 = arith.constant 0 : index
    %103 = vector.load %arg10[%c0_100, %c0_101] : memref<1x128xf32, #tpu.memory_space<vmem>>, vector<1x128xf32>
    %104 = vector.broadcast %103 : vector<1x128xf32> to vector<256x128xf32>
    %105 = arith.addf %102, %104 : vector<256x128xf32>
    %c0_102 = arith.constant 0 : index
    %c0_103 = arith.constant 0 : index
    %c0_104 = arith.constant 0 : index
    %c0_105 = arith.constant 0 : index
    %106 = vector.load %arg2[%c0_102, %c0_103, %c0_104, %c0_105] : memref<1x16x16x128xbf16, #tpu.memory_space<vmem>>, vector<1x16x16x128xbf16>
    %107 = vector.shape_cast %106 : vector<1x16x16x128xbf16> to vector<16x16x128xbf16>
    %108 = arith.extf %107 : vector<16x16x128xbf16> to vector<16x16x128xf32>
    %109 = vector.shape_cast %108 : vector<16x16x128xf32> to vector<256x128xf32>
    %110 = arith.addf %105, %109 : vector<256x128xf32>
    %cst_106 = arith.constant 0.000000e+00 : f32
    %111 = vector.broadcast %cst_106 : f32 to vector<256x128xf32>
    %112 = arith.maximumf %110, %111 : vector<256x128xf32>
    %113 = vector.shape_cast %112 : vector<256x128xf32> to vector<16x16x128xf32>
    %114 = arith.truncf %113 : vector<16x16x128xf32> to vector<16x16x128xbf16>
    %c0_107 = arith.constant 0 : index
    %c0_108 = arith.constant 0 : index
    %c0_109 = arith.constant 0 : index
    %c0_110 = arith.constant 0 : index
    %115 = vector.load %arg11[%c0_107, %c0_108, %c0_109, %c0_110] : memref<1x16x16x128xbf16, #tpu.memory_space<vmem>>, vector<1x16x16x128xbf16>
    %116 = vector.shape_cast %115 : vector<1x16x16x128xbf16> to vector<16x16x128xbf16>
    %117 = vector.shape_cast %114 : vector<16x16x128xbf16> to vector<1x16x16x128xbf16>
    tpu.vector_store %arg11[%c0_107, %c0_108, %c0_109, %c0_110], %117 {strides = array<i32>} : memref<1x16x16x128xbf16, #tpu.memory_space<vmem>>, vector<1x16x16x128xbf16>,
    return
  }
  func.func @transform_0(%arg0: i32, %arg1: i32) -> (i32, i32, i32, i32) {
    %c0_i32 = arith.constant 0 : i32
    %c0_i32_0 = arith.constant 0 : i32
    %c0_i32_1 = arith.constant 0 : i32
    return %arg0, %arg1, %c0_i32, %c0_i32_0 : i32, i32, i32, i32
  }
  func.func @transform_1(%arg0: i32, %arg1: i32) -> (i32, i32, i32, i32) {
    %c16_i32 = arith.constant 16 : i32
    %0 = arith.muli %arg1, %c16_i32 : i32
    %c1_i32 = arith.constant 1 : i32
    %1 = arith.subi %0, %c1_i32 : i32
    %c0_i32 = arith.constant 0 : i32
    %2 = arith.maxsi %1, %c0_i32 : i32
    %c0_i32_0 = arith.constant 0 : i32
    %c0_i32_1 = arith.constant 0 : i32
    %c0_i32_2 = arith.constant 0 : i32
    return %arg0, %2, %c0_i32_0, %c0_i32_1 : i32, i32, i32, i32
  }
  func.func @transform_2(%arg0: i32, %arg1: i32) -> (i32, i32, i32, i32) {
    %c1_i32 = arith.constant 1 : i32
    %0 = arith.addi %arg1, %c1_i32 : i32
    %c16_i32 = arith.constant 16 : i32
    %1 = arith.muli %0, %c16_i32 : i32
    %c15_i32 = arith.constant 15 : i32
    %2 = arith.minsi %1, %c15_i32 : i32
    %c0_i32 = arith.constant 0 : i32
    %c0_i32_0 = arith.constant 0 : i32
    %c0_i32_1 = arith.constant 0 : i32
    return %arg0, %2, %c0_i32, %c0_i32_0 : i32, i32, i32, i32
  }
  func.func @transform_3(%arg0: i32, %arg1: i32) -> (i32, i32) {
    %c0_i32 = arith.constant 0 : i32
    %c0_i32_0 = arith.constant 0 : i32
    %c0_i32_1 = arith.constant 0 : i32
    return %c0_i32, %c0_i32_0 : i32, i32
  }
  func.func @transform_4(%arg0: i32, %arg1: i32) -> (i32, i32) {
    %c0_i32 = arith.constant 0 : i32
    %c0_i32_0 = arith.constant 0 : i32
    %c0_i32_1 = arith.constant 0 : i32
    return %c0_i32, %c0_i32_0 : i32, i32
  }
  func.func @transform_5(%arg0: i32, %arg1: i32) -> (i32, i32, i32) {
    %c0_i32 = arith.constant 0 : i32
    %c0_i32_0 = arith.constant 0 : i32
    %c0_i32_1 = arith.constant 0 : i32
    %c0_i32_2 = arith.constant 0 : i32
    return %c0_i32, %c0_i32_0, %c0_i32_1 : i32, i32, i32
  }
  func.func @transform_6(%arg0: i32, %arg1: i32) -> (i32, i32) {
    %c0_i32 = arith.constant 0 : i32
    %c0_i32_0 = arith.constant 0 : i32
    %c0_i32_1 = arith.constant 0 : i32
    return %c0_i32, %c0_i32_0 : i32, i32
  }
  func.func @transform_7(%arg0: i32, %arg1: i32) -> (i32, i32) {
    %c0_i32 = arith.constant 0 : i32
    %c0_i32_0 = arith.constant 0 : i32
    %c0_i32_1 = arith.constant 0 : i32
    return %c0_i32, %c0_i32_0 : i32, i32
  }
  func.func @transform_8(%arg0: i32, %arg1: i32) -> (i32, i32) {
    %c0_i32 = arith.constant 0 : i32
    %c0_i32_0 = arith.constant 0 : i32
    %c0_i32_1 = arith.constant 0 : i32
    return %c0_i32, %c0_i32_0 : i32, i32
  }
  func.func @transform_9(%arg0: i32, %arg1: i32) -> (i32, i32, i32, i32) {
    %c0_i32 = arith.constant 0 : i32
    %c0_i32_0 = arith.constant 0 : i32
    %c0_i32_1 = arith.constant 0 : i32
    return %arg0, %arg1, %c0_i32, %c0_i32_0 : i32, i32, i32, i32
  }
}

</mosaic_0001>

<bundles_post_ra>
// kernel: tpu_custom_call.1
= control target key start
LH: loop header
LB: loop body
LE: loop exit
PB: predicated region body
PF: predicated region fallthrough
CT: control target
= control target key end

     0   :  { %s9759_s0 = inlined_call_operand.hbm [shape: bf16[2,16,16,128], index: 0, kind: input, shape index: {}]   ;;  %s9760_s1 = inlined_call_operand.hbm [shape: bf16[2,16,16,128], index: 1, kind: input, shape index: {}]   ;;  %s9761_s2 = inlined_call_operand.hbm [shape: bf16[2,16,16,128], index: 2, kind: input, shape index: {}]   ;;  %s9762_s3 = inlined_call_operand.hbm [shape: bf16[128,128], index: 3, kind: input, shape index: {}]   ;;  %s9763_s4 = inlined_call_operand.vmem [shape: f32[1,128], index: 4, kind: input, shape index: {}]   ;;  %s9764_s5 = inlined_call_operand.hbm [shape: bf16[9,128,128], index: 5, kind: input, shape index: {}]   ;;  %s9765_s6 = inlined_call_operand.vmem [shape: f32[1,128], index: 6, kind: input, shape index: {}]   ;;  %s9766_s7 = inlined_call_operand.hbm [shape: bf16[128,128], index: 7, kind: input, shape index: {}]   ;;  %s9767_s8 = inlined_call_operand.vmem [shape: f32[1,128], index: 8, kind: input, shape index: {}]   ;;  %s9768_s9 = inlined_call_operand.hbm [shape: bf16[2,16,16,128], index: 9, kind: output, shape index: {}]  }
   0x1   :  { %9785 = sst [smem:[#allocation56_spill]] %s9760_s1 }
   0x2   :  { %9786 = sst [smem:[#allocation57_spill]] %s9762_s3 }
   0x3   :  { %9787 = sst [smem:[#allocation58_spill]] %s9768_s9 }
   0x4   :  { %14 = vsyncpa [#allocation4], 0 }
   0x5   :  { %16 = vsyncpa [#allocation4 + $0x1], 0 }
   0x6   :  { %17 = vsyncpa [#allocation7], 0 }
   0x7   :  { %19 = vsyncpa [#allocation7 + $0x1], 0 }
   0x8   :  { %20 = vsyncpa [#allocation10], 0 }
   0x9   :  { %21 = vsyncpa [#allocation13], 0 }
   0xa   :  { %22 = vsyncpa [#allocation5], 0 }
   0xb   :  { %24 = vsyncpa [#allocation5 + $0x1], 0  ;;  %s8073_s30 = smov 0   ;;  %s8075_s10 = smov 0  }
   0xc   :  { %s8077_s11 = smov 0   ;;  %s8079_s12 = smov 0  }
   0xd   :  { %s8081_s13 = smov 0   ;;  %s8083_s14 = smov 0  }
   0xe LB: > { %9788 = sst [smem:[#allocation20_spill]] %s7994_s30  ;;  %s8104_s15 = sadd.s32 4294967295, %s8014_s14   ;;  %s8014_s14 = sphi %s8083_s14, %s30_s14   ;;  %s8010_s13 = sphi %s8081_s13, %s9922_s13   ;;  %s8006_s12 = sphi %s8079_s12, %s9921_s12   ;;  %s8002_s11 = sphi %s8077_s11, %s9920_s11   ;;  %s7998_s10 = sphi %s8075_s10, %s9924_s10   ;;  %s7994_s30 = sphi %s8073_s30, %s9923_s30  }
   0xf   : > { %9789 = sst [smem:[#allocation21_spill]] %s8002_s11  ;;  %s6537_s16 = sadd.s32 4294967294, %s8014_s14  }
  0x10   : > { %9790 = sst [smem:[#allocation22_spill]] %s8006_s12  ;;  %p64_p0 = scmp.ne.s32.totalorder %s7998_s10, %s7994_s30 }
  0x11   : > { %9791 = sst [smem:[#allocation23_spill]] %s8010_s13  ;;  %p65_p1 = scmp.eq.s32.totalorder %s8104_s15, 0 }
  0x12   : > { %9792 = sst [smem:[#allocation24_spill]] %s8014_s14  ;;  %p288_p2 = scmp.eq.s32.totalorder %s8104_s15, 1 }
  0x13   : > { %p294_p3 = scmp.eq.s32.totalorder %s6537_s16, 1  ;;  %p8113_p4 = por %p65_p1, %p64_p0 }
  0x14   : > { %p6538_p5 = scmp.ge.s32.totalorder %s8014_s14, 1  ;;  %p301_p7 = scmp.lt.s32.totalorder %s8014_s14, 3 }
  0x15   : > { %p8118_p6 = por %p294_p3, %p64_p0  ;;  %s9796_s3 = sld [smem:[#allocation57_spill]] }
  0x16   : > { %p8126_p8 = pnand %p6538_p5, %p301_p7  ;;  %s8016_s23 = smov [#allocation9]  }
  0x17   : > { %s9794_s18 = scalar_select %p8118_p6, 1, 0 }
  0x18   : > { %p7647_p9 = pneg %p8126_p8  ;;  %s314_s24 = sshll.u32 %s8016_s23, 4  ;;  %s315_s24 = int_to_ptr.vmem [resolvable:$true] %s314_s24 }
  0x19   : > { %9795 = sst [smem:[#allocation25_spill]] %s9794_s18  ;;  %s9769_s26 = smov 64  }
  0x1a   : > { %p8134_p10 = pnand %p7647_p9, %p65_p1  ;;  %s9771_s27 = smov 4  }
  0x1b   : > { %s312_s21 = sshll.u32 %s9796_s3, 4  ;;  %s42_s28 = sadd.s32 1, %s8010_s13  ;;  %s313_s21 = int_to_ptr.hbm [resolvable:$true] %s312_s21 }
  0x1c   : > { %7650 = dma.hbm_to_vmem [thread:$0]  (!%p8134_p10), %s313_s21, 1024, %s315_s24, [#allocation10], %s9769_s26, %s9769_s26, %s9771_s27  }
  0x1d   : > { %p44_p12 = scmp.ge.s32.totalorder %s42_s28, 2  ;;  %s51_s29 = sadd.s32 1, %s8002_s11 }
  0x1e   : > { %p58_p13 = scmp.ne.s32.totalorder %s8002_s11, %s7998_s10  ;;  %p59_p0 = scmp.eq.s32.totalorder %s8014_s14, 0 }
  0x1f   : > { %s9926_s28 = smov (%p44_p12, %s42_s28), 0  ;;  %p7674_p7 = scmp.lt.s32.totalorder %s8014_s14, 2 }
  0x20   : > { %9799 = sst [smem:[#allocation26_spill]] %s9926_s28  ;;  %p60_p3 = por %p59_p0, %p58_p13 }
  0x21   : > { %p8153_p5 = por %p288_p2, %p58_p13  ;;  %s46_s19 = ssub.s32 %s8010_s13, %s9926_s28 }
  0x22   : > { %p49_p9 = scmp.eq.s32.totalorder %s46_s19, 0  ;;  %s8161_s20 = sand.u32 1, %s8002_s11  }
  0x23   : > { %s9800_s16 = scalar_select %p8153_p5, 1, 0 }
  0x24   : > { %s8164_s21 = sshll.u32 %s8010_s13, 7  ;;  %p8166_p11 = pnand %p7674_p7, %p60_p3 }
  0x25   : > { %9801 = sst [smem:[#allocation27_spill]] %s9800_s16  ;;  %s390_s26 = sand.u32 1, %s8014_s14  }
  0x26   : > { %s8171_s24 = scalar_select %p49_p9, %s8002_s11, %s51_s29  }
  0x27   : > { %s6546_s27 = sshll.u32 %s8161_s20, 3  ;;  %s9804_s1 = sld [smem:[#allocation56_spill]] }
  0x28   : > { %9803 = sst [smem:[#allocation28_spill]] %s8171_s24  ;;  %s394_s30 = scalar_lea.vmem [#allocation6], %s6546_s27 }
  0x29   : > { %s408_s16 = sshll.u32 %s394_s30, 4  ;;  %s8179_s13 = scalar_lea.sflag [#allocation7], %s390_s26  ;;  %s409_s16 = int_to_ptr.vmem [resolvable:$true] %s408_s16 }
  0x2a   : > { %s9805_s9 = smov 4   ;;  %s9806_s12 = smov 64  }
  0x2b   : > { %s329_s3 = sshll.u32 %s9764_s5, 4  ;;  %s422_s18 = scalar_lea.vmem [#allocation8], %s6546_s27  ;;  %s330_s3 = int_to_ptr.hbm [resolvable:$true] %s329_s3 }
  0x2c   : > { %s8019_s30 = smov [#allocation11]   ;;  %s346_s14 = sshll.u32 %s9766_s7, 4  ;;  %s347_s14 = int_to_ptr.hbm [resolvable:$true] %s346_s14 }
  0x2d   : > { %s405_s28 = scalar_lea.hbm %s9804_s1, %s8164_s21  ;;  %s331_s1 = sshll.u32 %s8019_s30, 4  ;;  %s332_s1 = int_to_ptr.vmem [resolvable:$true] %s331_s1 }
  0x2e   : > { %s406_s19 = sshll.u32 %s405_s28, 4  ;;  %s436_s28 = sshll.u32 %s422_s18, 4  ;;  %s407_s19 = int_to_ptr.hbm [resolvable:$true] %s406_s19  ;;  %s437_s28 = int_to_ptr.vmem [resolvable:$true] %s436_s28 }
  0x2f   : > { %7663 = dma.hbm_to_vmem [thread:$0]  (!%p8166_p11), %s407_s19, 128, %s409_s16, %s8179_s13, %s9806_s12, %s9806_s12, %s9805_s9  }
  0x30   : > { %7653 = dma.hbm_to_vmem [thread:$0]  (!%p8134_p10), %s330_s3, 9216, %s332_s1, [#allocation10], %s9806_s12, %s9806_s12, %s9805_s9  }
  0x31   : > { %s8020_s16 = smov [#allocation12]   ;;  %s6543_s24 = sshll.u32 %s8161_s20, 7 }
  0x32   : > { %s348_s27 = sshll.u32 %s8020_s16, 4  ;;  %s377_s29 = scalar_lea.hbm %s9759_s0, %s8164_s21  ;;  %s349_s27 = int_to_ptr.vmem [resolvable:$true] %s348_s27 }
  0x33   : > { %7656 = dma.hbm_to_vmem [thread:$0]  (!%p8134_p10), %s347_s14, 1024, %s349_s27, [#allocation13], %s9806_s12, %s9806_s12, %s9805_s9  }
  0x34   : > { %s369_s18 = scalar_lea.vmem [#allocation3], %s6543_s24  ;;  %s378_s26 = sshll.u32 %s377_s29, 4  ;;  %s379_s26 = int_to_ptr.hbm [resolvable:$true] %s378_s26 }
  0x35   : > { %s380_s30 = sshll.u32 %s369_s18, 4  ;;  %s7264_s1 = sadd.s32 120, %s8164_s21  ;;  %s381_s30 = int_to_ptr.vmem [resolvable:$true] %s380_s30 }
  0x36   : > { %s366_s3 = scalar_lea.sflag [#allocation4], %s8161_s20  ;;  %s433_s14 = scalar_lea.hbm %s9761_s2, %s7264_s1 }
  0x37   : > { %7660 = dma.hbm_to_vmem [thread:$0]  (!%p8166_p11), %s379_s26, 2048, %s381_s30, %s366_s3, %s9806_s12, %s9806_s12, %s9805_s9  }
  0x38   : > { %s434_s27 = sshll.u32 %s433_s14, 4  ;;  %448 = sbr.rel (%p8126_p8) target bundleno = 1286 (0x506), region = 56  ;;  %s435_s27 = int_to_ptr.hbm [resolvable:$true] %s434_s27 }
  0x39   : > { %7666 = dma.hbm_to_vmem [thread:$0]  (!%p8166_p11), %s435_s27, 128, %s437_s28, %s8179_s13, %s9806_s12, %s9806_s12, %s9805_s9  }
  0x3d   : > { %s8227_s20 = sand.u32 1, %s7998_s10  }
  0x3e   : > { %s6553_s21 = sshll.u32 %s8227_s20, 7  ;;  %s451_s24 = scalar_lea.sflag [#allocation4], %s8227_s20 }
  0x3f   : > { %s8233_s11 = scalar_lea.vmem [#allocation3], %s6553_s21 }
  0x40   : > { %7973 = dma.done.wait (%p8113_p4), %s451_s24, 2048  }
  0x41   : > { %7975 = vsyncadd (%p8113_p4), %s451_s24, 4294965248  ;;  %s460_s9 = sand.u32 1, %s8104_s15   ;;  %s6554_s12 = sshll.u32 %s8227_s20, 3 }
  0x42   : > { %s461_s13 = scalar_lea.sflag [#allocation7], %s460_s9  ;;  %s8241_s22 = scalar_lea.vmem [#allocation6], %s6554_s12 }
  0x43   : > { %7977 = dma.done.wait (%p8113_p4), %s461_s13, 256  }
  0x44   : > { %7979 = vsyncadd (%p8113_p4), %s461_s13, 4294967040  ;;  %s8247_s23 = scalar_lea.vmem [#allocation8], %s6554_s12 }
  0x45   : > { %7981 = dma.done.wait (%p65_p1), [#allocation10], 10240  }
  0x46   : > { %7983 = vsyncadd (%p65_p1), [#allocation10], 4294957056 }
  0x47   : > { %7985 = dma.done.wait (%p65_p1), [#allocation13], 1024  }
  0x48   : > { %7987 = vsyncadd (%p65_p1), [#allocation13], 4294966272  ;;  %v7288_v0 = vld [vmem:[#allocation9 + $0x38] sm:$0xff]  ;;  %v7287_v1 = vld [vmem:[#allocation9 + $0x30] sm:$0xff]  ;;  %vm1054_vm0 = vcmask 1043459   ;;  %v9807_v27 = vmov 0 }
  0x49   : > { %742 = vmatpush.bf16.msra.mxu0 %v7288_v0  ;;  %7603 = vmatpush.bf16.msra.mxu1 %v7288_v0  ;;  %v7286_v2 = vld [vmem:[#allocation9 + $0x28] sm:$0xff]  ;;  %v7285_v3 = vld [vmem:[#allocation9 + $0x20] sm:$0xff]  ;;  %v7284_v4 = vld [vmem:[#allocation9 + $0x18] sm:$0xff]  ;;  %vm1055_vm1 = vsmask.f32 7950  ;;  %vm1111_vm4 = vcmask 1040384  }
  0x4a   : > { %v7283_v5 = vld [vmem:[#allocation9 + $0x10] sm:$0xff]  ;;  %v7282_v6 = vld [vmem:[#allocation9 + $0x8] sm:$0xff]  ;;  %v7281_v7 = vld [vmem:[#allocation9] sm:$0xff]  ;;  %vm1112_vm3 = vsmask.f32 256  ;;  %v9810_v31 = vmov 0 }
  0x4b   : > { %v7298_v8 = vld [vmem:[#allocation9 + $0x38] sm:$0xff]  ;;  %v7265_v9 = vld [vmem:[%s8233_s11] sm:$0xff]  ;;  %v7278_v10 = vld [vmem:[%s8233_s11 + $0x68] sm:$0xff]  ;;  %vm1216_vm6 = vsmask.f32 4368  ;;  %s9630_s14 = scalar_lea.vmem [#allocation14], %s6553_s21 }
  0x4c   : > { %v7297_v11 = vld [vmem:[#allocation9 + $0x30] sm:$0xff]  ;;  %v7296_v12 = vld [vmem:[#allocation9 + $0x28] sm:$0xff]  ;;  %v7295_v13 = vld [vmem:[#allocation9 + $0x20] sm:$0xff]  ;;  %vm2085_vm8 = vsmask.f32 3328  ;;  %s9911_s27 = sld [smem:[#allocation22_spill]] }
  0x4d   : > { %743 = vmatpush.bf16.msra.mxu0 %v7287_v1  ;;  %7604 = vmatpush.bf16.msra.mxu1 %v7287_v1  ;;  %v7294_v14 = vld [vmem:[#allocation9 + $0x18] sm:$0xff]  ;;  %v7266_v15 = vld [vmem:[%s8233_s11 + $0x8] sm:$0xff]  ;;  %v7279_v16 = vld [vmem:[%s8233_s11 + $0x70] sm:$0xff]  ;;  %vm2086_vm9 = vsmask.f32 7440  ;;  %s9912_s12 = sld [smem:[#allocation58_spill]] }
  0x4e   : > { %v7293_v17 = vld [vmem:[#allocation9 + $0x10] sm:$0xff]  ;;  %v7292_v18 = vld [vmem:[#allocation9 + $0x8] sm:$0xff]  ;;  %v7291_v19 = vld [vmem:[#allocation9] sm:$0xff]  ;;  %s6368_s15 = sshll.u32 %s9630_s14, 4  ;;  %s6369_s15 = int_to_ptr.vmem [resolvable:$true] %s6368_s15 }
  0x4f   : > { %v7267_v20 = vld [vmem:[%s8233_s11 + $0x10] sm:$0xff]  ;;  %v7280_v21 = vld [vmem:[%s8233_s11 + $0x78] sm:$0xff]  ;;  %v7289_v23 = vld [vmem:[%s8241_s22] sm:$0xff] }
  0x50   : > { %v7268_v22 = vld [vmem:[%s8233_s11 + $0x18] sm:$0xff]  ;;  %v7269_v24 = vld [vmem:[%s8233_s11 + $0x20] sm:$0xff]  ;;  %v7270_v25 = vld [vmem:[%s8233_s11 + $0x28] sm:$0xff] }
  0x51   : > { %744 = vmatpush.bf16.msra.mxu0 %v7286_v2  ;;  %7605 = vmatpush.bf16.msra.mxu1 %v7286_v2  ;;  %v7271_v26 = vld [vmem:[%s8233_s11 + $0x30] sm:$0xff]  ;;  %vm8268_vm2 = vmand %vm1054_vm0, %vm1055_vm1  ;;  %v7272_v30 = vld [vmem:[%s8233_s11 + $0x38] sm:$0xff] }
  0x52   : > { %v9808_v27 = vsel %vm8268_vm2, 4294967295, %v9807_v27  ;;  %v1060_v28 = vld [vmem:[#allocation2 + $0x10] sm:$0x8]  ;;  %vm8276_vm5 = vmand %vm1111_vm4, %vm1112_vm3  ;;  %v1117_v32 = vld [vmem:[#allocation2 + $0x1c] sm:$0x1]  ;;  %s7427_s21 = sshll.u32 %s9911_s27, 7 }
  0x53   : > { %9809 = vst [vmem:[#allocation29_spill] sm:$0xff] %v9808_v27  ;;  %v1061_v29 = vsel %vm8268_vm2, 0, %v1060_v28  ;;  %v9811_v31 = vsel %vm8276_vm5, 4294967295, %v9810_v31  ;;  %v7330_v33 = vld [vmem:[#allocation11 + $0x78] sm:$0xff]  ;;  %v1118_v34 = vsel %vm8276_vm5, 0, %v1117_v32  ;;  %v7329_v37 = vld [vmem:[#allocation11 + $0x70] sm:$0xff]  ;;  %vm8349_vm7 = vmor %vm1112_vm3, %vm1216_vm6  ;;  %s9913_s22 = smov %s9912_s12  ;;  %s6367_s13 = scalar_lea.hbm %s9912_s12, %s7427_s21 }
  0x54   : > { %1062 = vst [vmem:[#allocation2 + $0x10] sm:$0x8] %v1061_v29  ;;  %v1063_v35 = vld [vmem:[#allocation2 + $0x20] sm:$0x8]  ;;  %7611 = vmatpush.bf16.msra.mxu2 %v7330_v33  ;;  %v8287_v38 = vld [vmem:[%s9763_s4] ss:$0 sm:$0xff]  ;;  %vm8507_vm10 = vmor %vm2085_vm8, %vm2086_vm9 }
  0x55   : > { %745 = vmatpush.bf16.msra.mxu0 %v7285_v3  ;;  %7606 = vmatpush.bf16.msra.mxu1 %v7285_v3  ;;  %9812 = vst [vmem:[#allocation30_spill] sm:$0xff] %v9811_v31  ;;  %v1064_v36 = vsel %vm8268_vm2, 0, %v1063_v35  ;;  %v7273_v39 = vld [vmem:[%s8233_s11 + $0x40] sm:$0xff]  ;;  %v7328_v40 = vld [vmem:[#allocation11 + $0x68] sm:$0xff]  ;;  %v7322_v45 = vld [vmem:[#allocation11 + $0x38] sm:$0xff]  ;;  %s6370_s17 = sshll.u32 %s6367_s13, 4  ;;  %s6371_s17 = int_to_ptr.hbm [resolvable:$true] %s6370_s17 }
  0x56   : > { %1119 = vst [vmem:[#allocation2 + $0x1c] sm:$0x1] %v1118_v34  ;;  %7619 = vmatpush.bf16.msra.mxu3 %v7322_v45  ;;  %v7327_v48 = vld [vmem:[#allocation11 + $0x60] sm:$0xff]  ;;  %v8292_v51 = vld [vmem:[#allocation11 + $0x30] sm:$0xff]  ;;  %v7326_v52 = vld [vmem:[#allocation11 + $0x58] sm:$0xff]  ;;  %s7934_s28 = sshra.s32 %s6371_s17, 4  ;;  %s7935_s28 = int_to_ptr.hbm [resolvable:$true] %s7934_s28 }
  0x57   : > { %1065 = vst [vmem:[#allocation2 + $0x20] sm:$0x8] %v1064_v36  ;;  %v1066_v53 = vld [vmem:[#allocation2 + $0x30] sm:$0x8]  ;;  %v8299_v59 = vld [vmem:[#allocation11 + $0x28] sm:$0xff]  ;;  %v8304_v3 = vld [vmem:[#allocation11 + $0x20] sm:$0xff]  ;;  %p7941_p8 = scmp.lt.s32.totalorder %s7935_s28, %s9913_s22 }
  0x58   : > { %7612 = vmatpush.bf16.msra.mxu2 %v7329_v37  ;;  %v1067_v56 = vsel %vm8268_vm2, 0, %v1066_v53  ;;  %v7325_v62 = vld [vmem:[#allocation11 + $0x50] sm:$0xff]  ;;  %v1120_v63 = vld [vmem:[#allocation2 + $0x2c] sm:$0x1]  ;;  %v7315_v34 = vld [vmem:[#allocation11] sm:$0xff]  ;;  %s7936_s19 = scalar_lea.hbm %s7935_s28, 128 }
  0x59   : > { %746 = vmatpush.bf16.msra.mxu0 %v7284_v4  ;;  %7607 = vmatpush.bf16.msra.mxu1 %v7284_v4  ;;  %1068 = vst [vmem:[#allocation2 + $0x30] sm:$0x8] %v1067_v56  ;;  %v1121_v0 = vsel %vm8276_vm5, 0, %v1120_v63  ;;  %v7274_v4 = vld [vmem:[%s8233_s11 + $0x48] sm:$0xff]  ;;  %v1123_v35 = vld [vmem:[#allocation2 + $0x3c] sm:$0x1]  ;;  %p7937_p1 = scmp.ne.s32.totalorder %s7935_s28, %s7936_s19 }
  0x5a   : > { %7620 = vmatpush.bf16.msra.mxu3 %v8292_v51  ;;  %1122 = vst [vmem:[#allocation2 + $0x2c] sm:$0x1] %v1121_v0  ;;  %v7360_v28 = vld [vmem:[#allocation11 + $0xe8] sm:$0xff]  ;;  %v7359_v36 = vld [vmem:[#allocation11 + $0xe0] sm:$0xff]  ;;  %v1072_v53 = vld [vmem:[#allocation2 + $0x50] sm:$0x8] }
  0x5b   : > { %v1073_v56 = vsel %vm8268_vm2, 0, %v1072_v53  ;;  %v7355_v0 = vld [vmem:[#allocation11 + $0xc0] sm:$0xff]  ;;  %v1159_v27 = vld [vmem:[#allocation2 + $0xfc] sm:$0x1]  ;;  %p7938_p2 = pnand %p7937_p1, %p8153_p5  ;;  %s7940_s30 = scalar_lea.hbm %s9913_s22, 256 }
  0x5c   : > { %7613 = vmatpush.bf16.msra.mxu2 %v7328_v40  ;;  %1074 = vst [vmem:[#allocation2 + $0x50] sm:$0x8] %v1073_v56  ;;  %p7942_p10 = scmp.lt.s32.totalorder %s7940_s30, %s7936_s19 }
  0x5d   : > { %747 = vmatpush.bf16.msra.mxu0 %v7283_v5  ;;  %7608 = vmatpush.bf16.msra.mxu1 %v7283_v5  ;;  %v7324_v5 = vld [vmem:[#allocation11 + $0x48] sm:$0xff]  ;;  %p7939_p4 = pneg %p7938_p2 }
  0x5e   : > { %7621 = vmatpush.bf16.msra.mxu3 %v8299_v59  ;;  %p7943_p11 = por %p7942_p10, %p7941_p8 }
  0x60   : > { %7614 = vmatpush.bf16.msra.mxu2 %v7327_v48  ;;  %p7944_p12 = pnand %p7943_p11, %p7939_p4 }
  0x61   : > { %748 = vmatpush.bf16.msra.mxu0 %v7282_v6  ;;  %7609 = vmatpush.bf16.msra.mxu1 %v7282_v6 }
  0x62   : > { %7622 = vmatpush.bf16.msra.mxu3 %v8304_v3 }
  0x64   : > { %7615 = vmatpush.bf16.msra.mxu2 %v7326_v52 }
  0x65   : > { %749 = vmatpush.bf16.msra.mxu0 %v7281_v7  ;;  %7610 = vmatpush.bf16.msra.mxu1 %v7281_v7 }
  0x68   : > { %750 = vmatmul.bf16.vlgmr.msra.gmra.mxu0 %v7265_v9  ;;  %815 = vmatmul.bf16.vlgmr.msra.gmra.mxu1 %v7278_v10  ;;  %v8310_v10 = vld [vmem:[#allocation11 + $0x18] sm:$0xff] }
  0x69   : > { %1012 = vmatpush.bf16.msrb.mxu1 %v7298_v8  ;;  %7616 = vmatpush.bf16.msra.mxu2 %v7325_v62 }
  0x6a   : > { %7623 = vmatpush.bf16.msra.mxu3 %v8310_v10 }
  0x6d   : > { %1013 = vmatpush.bf16.msrb.mxu1 %v7297_v11  ;;  %7617 = vmatpush.bf16.msra.mxu2 %v7324_v5  ;;  %v7362_v11 = vld [vmem:[#allocation11 + $0xf8] sm:$0xff] }
  0x6e   : > { %3251 = vmatpush.bf16.msrb.mxu0 %v7362_v11 }
  0x71   : > { %1014 = vmatpush.bf16.msrb.mxu1 %v7296_v12 }
  0x75   : > { %1015 = vmatpush.bf16.msrb.mxu1 %v7295_v13 }
  0x78   : > { %755 = vmatmul.bf16.gmra.mxu0 %v7266_v15  ;;  %820 = vmatmul.bf16.gmra.mxu1 %v7279_v16 }
  0x79   : > { %1016 = vmatpush.bf16.msrb.mxu1 %v7294_v14  ;;  %v7323_v14 = vld [vmem:[#allocation11 + $0x40] sm:$0xff] }
  0x7a   : > { %7618 = vmatpush.bf16.msra.mxu2 %v7323_v14 }
  0x7d   : > { %1017 = vmatpush.bf16.msrb.mxu1 %v7293_v17  ;;  %v8313_v17 = vld [vmem:[#allocation11 + $0x10] sm:$0xff] }
  0x7e   : > { %7624 = vmatpush.bf16.msra.mxu3 %v8313_v17 }
  0x81   : > { %1018 = vmatpush.bf16.msrb.mxu1 %v7292_v18  ;;  %v7361_v18 = vld [vmem:[#allocation11 + $0xf0] sm:$0xff] }
  0x82   : > { %3252 = vmatpush.bf16.msrb.mxu0 %v7361_v18 }
  0x85   : > { %1019 = vmatpush.bf16.msrb.mxu1 %v7291_v19  ;;  %v1069_v19 = vld [vmem:[#allocation2 + $0x40] sm:$0x8] }
  0x86   : > { %3253 = vmatpush.bf16.msrb.mxu0 %v7360_v28 }
  0x88   : > { %760 = vmatmul.bf16.gmra.mxu0 %v7267_v20  ;;  %825 = vmatmul.bf16.gmra.mxu1 %v7280_v21 }
  0x89   : > { %1747 = vmatpush.bf16.msra.mxu1 %v7330_v33 }
  0x8a   : > { %3254 = vmatpush.bf16.msrb.mxu0 %v7359_v36 }
  0x8d   : > { %1748 = vmatpush.bf16.msra.mxu1 %v7329_v37  ;;  %v7275_v37 = vld [vmem:[%s8233_s11 + $0x50] sm:$0xff] }
  0x91   : > { %1749 = vmatpush.bf16.msra.mxu1 %v7328_v40 }
  0x95   : > { %1750 = vmatpush.bf16.msra.mxu1 %v7327_v48 }
  0x98   : > { %765 = vmatmul.bf16.gmra.mxu0 %v7268_v22  ;;  %1020 = vmatmul.bf16.vlgmr.msrb.gmra.mxu1 %v7289_v23  ;;  %v7290_v22 = vld [vmem:[%s8247_s23] sm:$0xff]  ;;  %v1070_v23 = vsel %vm8268_vm2, 0, %v1069_v19 }
  0x99   : > { %1751 = vmatpush.bf16.msra.mxu1 %v7326_v52  ;;  %1071 = vst [vmem:[#allocation2 + $0x40] sm:$0x8] %v1070_v23 }
  0x9d   : > { %1752 = vmatpush.bf16.msra.mxu1 %v7325_v62  ;;  %v7735_v62 = vld [vmem:[%s9763_s4] ss:$0 sm:$0xff] }
  0xa0   : > { %v1180_v53 = vld [vmem:[#allocation2 + $0x40] sm:$0x8] }
  0xa1   : > { %1753 = vmatpush.bf16.msra.mxu1 %v7324_v5  ;;  %v1177_v5 = vld [vmem:[#allocation2 + $0x30] sm:$0x8] }
  0xa5   : > { %1754 = vmatpush.bf16.msra.mxu1 %v7323_v14 }
  0xa8   : > { %770 = vmatmul.bf16.gmra.mxu0 %v7269_v24  ;;  %1025 = vmatmul.bf16.gmra.mxu1 %v7290_v22 }
  0xa9   : > { %1948 = vmatpush.bf16.msrb.mxu1 %v7322_v45  ;;  %v7358_v45 = vld [vmem:[#allocation11 + $0xd8] sm:$0xff] }
  0xaa   : > { %3255 = vmatpush.bf16.msrb.mxu0 %v7358_v45 }
  0xad   : > { %1949 = vmatpush.bf16.msrb.mxu1 %v8292_v51 }
  0xb1   : > { %1950 = vmatpush.bf16.msrb.mxu1 %v8299_v59 }
  0xb5   : > { %1951 = vmatpush.bf16.msrb.mxu1 %v8304_v3 }
  0xb8   : > { %775 = vmatmul.bf16.gmra.mxu0 %v7270_v25 }
  0xb9   : > { %1952 = vmatpush.bf16.msrb.mxu1 %v8310_v10  ;;  %v1285_v10 = vshrl.u32 %v1177_v5, 16 }
  0xbb   : > { %v6699_v18 = vrot.slane %v1285_v10, 11 }
  0xbd   : > { %1953 = vmatpush.bf16.msrb.mxu1 %v8313_v17 }
  0xc8   : > { %780 = vmatmul.bf16.gmra.mxu0 %v7271_v26  ;;  %v8321_v26 = vld [vmem:[#allocation11 + $0x8] sm:$0xff] }
  0xc9   : > { %7625 = vmatpush.bf16.msra.mxu3 %v8321_v26  ;;  %1954 = vmatpush.bf16.msrb.mxu1 %v8321_v26 }
  0xcd   : > { %7626 = vmatpush.bf16.msra.mxu3 %v7315_v34  ;;  %1955 = vmatpush.bf16.msrb.mxu1 %v7315_v34 }
  0xd8   : > { %785 = vmatmul.bf16.gmra.mxu0 %v7272_v30 }
  0xe5   : > { %v751_v41 = vpop.f32.mrf.mxu0  ;;  %v816_v42 = vpop.f32.mrf.mxu1 }
  0xe6   : > { %v752_v43 = vadd.f32 %v8287_v38, %v751_v41  ;;  %v817_v44 = vadd.f32 %v8287_v38, %v816_v42  ;;  %v1124_v41 = vsel %vm8276_vm5, 0, %v1123_v35 }
  0xe7   : > { %1125 = vst [vmem:[#allocation2 + $0x3c] sm:$0x1] %v1124_v41 }
  0xe8   : > { %v831_v46 = vmax.f32 %v752_v43, 0.0  ;;  %v857_v47 = vmax.f32 %v817_v44, 0.0  ;;  %790 = vmatmul.bf16.gmra.mxu0 %v7273_v39  ;;  %v7370_v44 = vld [vmem:[#allocation11 + $0x138] sm:$0xff] }
  0xe9   : > { %3533 = vmatpush.bf16.msrb.mxu2 %v7370_v44 }
  0xea   : > { %v863_v49 = vpack.c.bf16 %v831_v46, %v831_v46  ;;  %v889_v50 = vpack.c.bf16 %v857_v47, %v857_v47 }
  0xec   : > { %896 = vst [vmem:[#allocation2 + $0x14] sm:$0xf] %v863_v49 }
  0xed   : > { %922 = vst [vmem:[#allocation2 + $0xe4] sm:$0xf] %v889_v50  ;;  %v753_v54 = vpop.f32.mrf.mxu0  ;;  %v818_v55 = vpop.f32.mrf.mxu1  ;;  %v7357_v50 = vld [vmem:[#allocation11 + $0xd0] sm:$0xff] }
  0xee   : > { %v754_v57 = vadd.f32 %v8287_v38, %v753_v54  ;;  %v819_v58 = vadd.f32 %v8287_v38, %v818_v55  ;;  %3256 = vmatpush.bf16.msrb.mxu0 %v7357_v50 }
  0xf0   : > { %v832_v60 = vmax.f32 %v754_v57, 0.0  ;;  %v858_v61 = vmax.f32 %v819_v58, 0.0  ;;  %v7356_v57 = vld [vmem:[#allocation11 + $0xc8] sm:$0xff] }
  0xf2   : > { %v864_v1 = vpack.c.bf16 %v832_v60, %v832_v60  ;;  %v890_v2 = vpack.c.bf16 %v858_v61, %v858_v61  ;;  %3257 = vmatpush.bf16.msrb.mxu0 %v7356_v57 }
  0xf4   : > { %897 = vst [vmem:[#allocation2 + $0x18] sm:$0xf] %v864_v1  ;;  %v7276_v1 = vld [vmem:[%s8233_s11 + $0x58] sm:$0xff] }
  0xf5   : > { %923 = vst [vmem:[#allocation2 + $0xe8] sm:$0xf] %v890_v2  ;;  %v756_v6 = vpop.f32.mrf.mxu0  ;;  %v821_v7 = vpop.f32.mrf.mxu1 }
  0xf6   : > { %v757_v8 = vadd.f32 %v8287_v38, %v756_v6  ;;  %v822_v9 = vadd.f32 %v8287_v38, %v821_v7  ;;  %3258 = vmatpush.bf16.msrb.mxu0 %v7355_v0 }
  0xf8   : > { %v833_v12 = vmax.f32 %v757_v8, 0.0  ;;  %v859_v13 = vmax.f32 %v822_v9, 0.0  ;;  %795 = vmatmul.bf16.gmra.mxu0 %v7274_v4 }
  0xfa   : > { %v865_v15 = vpack.c.bf16 %v833_v12, %v833_v12  ;;  %v891_v16 = vpack.c.bf16 %v859_v13, %v859_v13 }
  0xfc   : > { %898 = vst [vmem:[#allocation2 + $0x24] sm:$0xf] %v865_v15 }
  0xfd   : > { %924 = vst [vmem:[#allocation2 + $0xf4] sm:$0xf] %v891_v16  ;;  %v758_v20 = vpop.f32.mrf.mxu0  ;;  %v823_v21 = vpop.f32.mrf.mxu1 }
  0xfe   : > { %v759_v24 = vadd.f32 %v8287_v38, %v758_v20  ;;  %v824_v25 = vadd.f32 %v8287_v38, %v823_v21  ;;  %v7369_v21 = vld [vmem:[#allocation11 + $0x130] sm:$0xff] }
  0xff   : > { %3534 = vmatpush.bf16.msrb.mxu2 %v7369_v21  ;;  %v1078_v21 = vld [vmem:[#allocation2 + $0x70] sm:$0x8] }
 0x100   : > { %v834_v29 = vmax.f32 %v759_v24, 0.0  ;;  %v860_v30 = vmax.f32 %v824_v25, 0.0  ;;  %v1075_v25 = vld [vmem:[#allocation2 + $0x60] sm:$0x8] }
 0x102   : > { %v866_v32 = vpack.c.bf16 %v834_v29, %v834_v29  ;;  %v892_v33 = vpack.c.bf16 %v860_v30, %v860_v30  ;;  %v1076_v30 = vsel %vm8268_vm2, 0, %v1075_v25 }
 0x103   : > { %1077 = vst [vmem:[#allocation2 + $0x60] sm:$0x8] %v1076_v30 }
 0x104   : > { %899 = vst [vmem:[#allocation2 + $0x28] sm:$0xf] %v866_v32 }
 0x105   : > { %925 = vst [vmem:[#allocation2 + $0xf8] sm:$0xf] %v892_v33  ;;  %v761_v39 = vpop.f32.mrf.mxu0  ;;  %v826_v40 = vpop.f32.mrf.mxu1 }
 0x106   : > { %v762_v42 = vadd.f32 %v8287_v38, %v761_v39  ;;  %v827_v43 = vadd.f32 %v8287_v38, %v826_v40  ;;  %v2724_v39 = vld [vmem:[#allocation2 + $0x18] sm:$0xf] }
 0x107   : > { %v2788_v0 = vshll.u32 %v2724_v39, 16 }
 0x108   : > { %v835_v46 = vmax.f32 %v762_v42, 0.0  ;;  %v861_v47 = vmax.f32 %v827_v43, 0.0  ;;  %800 = vmatmul.bf16.gmra.mxu0 %v7275_v37  ;;  %v2723_v43 = vld [vmem:[#allocation2 + $0x14] sm:$0xf] }
 0x10a   : > { %v867_v48 = vpack.c.bf16 %v835_v46, %v835_v46  ;;  %v893_v49 = vpack.c.bf16 %v861_v47, %v861_v47  ;;  %v2785_v47 = vshrl.u32 %v2724_v39, 16  ;;  %v2726_v39 = vld [vmem:[#allocation2 + $0x24] sm:$0xf] }
 0x10b   : > { %v2727_v30 = vld [vmem:[#allocation2 + $0x28] sm:$0xf] }
 0x10c   : > { %900 = vst [vmem:[#allocation2 + $0x34] sm:$0xf] %v867_v48  ;;  %v2787_v57 = vrot.slane %v2785_v47, 7 }
 0x10d   : > { %926 = vst [vmem:[#allocation2 + $0x104] sm:$0xf] %v893_v49  ;;  %v763_v51 = vpop.f32.mrf.mxu0  ;;  %v828_v52 = vpop.f32.mrf.mxu1  ;;  %v7277_v49 = vld [vmem:[%s8233_s11 + $0x60] sm:$0xff] }
 0x10e   : > { %v764_v54 = vadd.f32 %v8287_v38, %v763_v51  ;;  %v829_v55 = vadd.f32 %v8287_v38, %v828_v52 }
 0x110   : > { %v836_v58 = vmax.f32 %v764_v54, 0.0  ;;  %v862_v59 = vmax.f32 %v829_v55, 0.0  ;;  %v2722_v54 = vld [vmem:[#allocation2 + $0x10] sm:$0x8]  ;;  %v2776_v55 = vshrl.u32 %v2723_v43, 16 }
 0x112   : > { %v868_v60 = vpack.c.bf16 %v836_v58, %v836_v58  ;;  %v894_v61 = vpack.c.bf16 %v862_v59, %v862_v59  ;;  %v1126_v58 = vld [vmem:[#allocation2 + $0x4c] sm:$0x1] }
 0x113   : > { %v1178_v63 = vld [vmem:[#allocation2 + $0x34] sm:$0xf] }
 0x114   : > { %901 = vst [vmem:[#allocation2 + $0x38] sm:$0xf] %v868_v60  ;;  %v1290_v2 = vshrl.u32 %v1178_v63, 16  ;;  %v1293_v14 = vshll.u32 %v1178_v63, 16  ;;  %v1307_v60 = vshrl.u32 %v1180_v53, 16  ;;  %v2778_v63 = vrot.slane %v2776_v55, 7 }
 0x115   : > { %927 = vst [vmem:[#allocation2 + $0x108] sm:$0xf] %v894_v61  ;;  %v766_v3 = vpop.f32.mrf.mxu0  ;;  %v1021_v4 = vpop.f32.mrf.mxu1  ;;  %v2725_v53 = vld [vmem:[#allocation2 + $0x20] sm:$0x8] }
 0x116   : > { %v767_v6 = vadd.f32 %v8287_v38, %v766_v3  ;;  %v1022_v7 = vadd.f32 %v7735_v62, %v1021_v4  ;;  %v1292_v11 = vrot.slane %v1290_v2, 7  ;;  %v1127_v3 = vsel %vm8276_vm5, 0, %v1126_v58 }
 0x117   : > { %1128 = vst [vmem:[#allocation2 + $0x4c] sm:$0x1] %v1127_v3  ;;  %v2793_v58 = vshrl.u32 %v2725_v53, 16 }
 0x118   : > { %v837_v8 = vmax.f32 %v767_v6, 0.0  ;;  %v1031_v9 = vmax.f32 %v1022_v7, 0.0  ;;  %805 = vmatmul.bf16.gmra.mxu0 %v7276_v1  ;;  %v1295_v19 = vor.u32 %v1293_v14, %v1292_v11  ;;  %v1297_v33 = vrot.slane %v1292_v11, 4 }
 0x119   : > { %v2779_v6 = vshll.u32 %v2723_v43, 16  ;;  %v2790_v7 = vor.u32 %v2788_v0, %v2787_v57  ;;  %v2807_v43 = vshrl.u32 %v2727_v30, 16 }
 0x11a   : > { %v869_v12 = vpack.c.bf16 %v837_v8, %v837_v8  ;;  %v1040_v13 = vmul.f32 0.0, %v1031_v9  ;;  %v1296_v36 = vsel %vm8349_vm7, %v6699_v18, %v1295_v19  ;;  %v6700_v8 = vrot.slane %v1307_v60, 11 }
 0x11b   : > { %v7302_v15 = vld [vmem:[#allocation2 + $0x34] sm:$0xff]  ;;  %v1842_v44 = vunpack.c.l.b16 %v1296_v36  ;;  %v2781_v14 = vor.u32 %v2779_v6, %v2778_v63  ;;  %v2810_v60 = vshll.u32 %v2727_v30, 16 }
 0x11c   : > { %v1179_v16 = vld [vmem:[#allocation2 + $0x38] sm:$0xf]  ;;  %902 = vst [vmem:[#allocation2 + $0x44] sm:$0xf] %v869_v12  ;;  %v1042_v17 = vpack.c.bf16 %v1040_v13, %v1040_v13  ;;  %1770 = vmatmul.bf16.vlgmr.msra.gmra.mxu2 %v7302_v15  ;;  %v2783_v15 = vrot.slane %v2778_v63, 4 }
 0x11d   : > { %v1299_v20 = vshrl.u32 %v1179_v16, 16  ;;  %v768_v22 = vpop.f32.mrf.mxu0  ;;  %v1023_v23 = vpop.f32.mrf.mxu1  ;;  %v1302_v24 = vshll.u32 %v1179_v16, 16  ;;  %v1129_v16 = vld [vmem:[#allocation2 + $0x5c] sm:$0x1] }
 0x11e   : > { %1044 = vst [vmem:[#allocation2 + $0x4] sm:$0xf] %v1042_v17  ;;  %v769_v26 = vadd.f32 %v8287_v38, %v768_v22  ;;  %v1024_v28 = vadd.f32 %v7735_v62, %v1023_v23  ;;  %v2771_v62 = vshrl.u32 %v2722_v54, 16  ;;  %v2791_v22 = vsel %vm8349_vm7, %v2783_v15, %v2790_v7  ;;  %v7300_v7 = vld [vmem:[#allocation2 + $0x14] sm:$0xff] }
 0x11f   : > { %v1301_v29 = vrot.slane %v1299_v20, 7  ;;  %v1057_v20 = vld [vmem:[#allocation2] sm:$0x8]  ;;  %v2809_v54 = vrot.slane %v2807_v43, 7 }
 0x120   : > { %v838_v34 = vmax.f32 %v769_v26, 0.0  ;;  %v1032_v35 = vmax.f32 %v1024_v28, 0.0  ;;  %v6872_v11 = vrot.slane %v2771_v62, 11  ;;  %v1058_v23 = vsel %vm8268_vm2, 0, %v1057_v20  ;;  %v1081_v20 = vld [vmem:[#allocation2 + $0x80] sm:$0x8] }
 0x121   : > { %v1304_v37 = vor.u32 %v1302_v24, %v1301_v29  ;;  %v1079_v24 = vsel %vm8268_vm2, 0, %v1078_v21  ;;  %1059 = vst [vmem:[#allocation2] sm:$0x8] %v1058_v23  ;;  %v1099_v21 = vld [vmem:[#allocation2 + $0xe0] sm:$0x8] }
 0x122   : > { %v870_v40 = vpack.c.bf16 %v838_v34, %v838_v34  ;;  %v1041_v41 = vmul.f32 0.0, %v1032_v35  ;;  %1080 = vst [vmem:[#allocation2 + $0x70] sm:$0x8] %v1079_v24  ;;  %v1130_v34 = vsel %vm8276_vm5, 0, %v1129_v16  ;;  %v2729_v23 = vld [vmem:[#allocation2 + $0x34] sm:$0xf] }
 0x123   : > { %v1305_v42 = vsel %vm8349_vm7, %v1297_v33, %v1304_v37  ;;  %v1181_v46 = vld [vmem:[#allocation2 + $0x44] sm:$0xf]  ;;  %v2782_v33 = vsel %vm8349_vm7, %v6872_v11, %v2781_v14  ;;  %v3140_v37 = vunpack.c.l.b16 %v2791_v22  ;;  %1131 = vst [vmem:[#allocation2 + $0x5c] sm:$0x1] %v1130_v34  ;;  %v2730_v14 = vld [vmem:[#allocation2 + $0x38] sm:$0xf] }
 0x124   : > { %v1843_v45 = vunpack.c.l.b16 %v1305_v42  ;;  %903 = vst [vmem:[#allocation2 + $0x48] sm:$0xf] %v870_v40  ;;  %v1043_v48 = vpack.c.bf16 %v1041_v41, %v1041_v41  ;;  %v1312_v50 = vshrl.u32 %v1181_v46, 16  ;;  %v1315_v2 = vshll.u32 %v1181_v46, 16  ;;  %v7368_v46 = vld [vmem:[#allocation11 + $0x128] sm:$0xff] }
 0x125   : > { %v771_v51 = vpop.f32.mrf.mxu0  ;;  %3535 = vmatpush.bf16.msrb.mxu2 %v7368_v46  ;;  %v2829_v24 = vshrl.u32 %v2730_v14, 16 }
 0x126   : > { %v1871_v52 = vpack.c.b16 %v1843_v45, %v1842_v44  ;;  %1045 = vst [vmem:[#allocation2 + $0x8] sm:$0xf] %v1043_v48  ;;  %v772_v56 = vadd.f32 %v8287_v38, %v771_v51  ;;  %v1314_v61 = vrot.slane %v1312_v50, 7  ;;  %v3139_v44 = vunpack.c.l.b16 %v2782_v33 }
 0x127   : > { %v2798_v50 = vshrl.u32 %v2726_v39, 16 }
 0x128   : > { %1971 = vmatmul.bf16.vlgmr.msra.gmra.mxu3 %v1871_v52  ;;  %v839_v59 = vmax.f32 %v772_v56, 0.0  ;;  %810 = vmatmul.bf16.gmra.mxu0 %v7277_v49  ;;  %v1317_v9 = vor.u32 %v1315_v2, %v1314_v61  ;;  %v1319_v28 = vrot.slane %v1314_v61, 4  ;;  %v1183_v49 = vld [vmem:[#allocation2 + $0x50] sm:$0x8]  ;;  %v3171_v52 = vpack.c.b16 %v3140_v37, %v3139_v44  ;;  %v1186_v44 = vld [vmem:[#allocation2 + $0x60] sm:$0x8] }
 0x129   : > { %v1329_v56 = vshrl.u32 %v1183_v49, 16  ;;  %v2812_v2 = vor.u32 %v2810_v60, %v2809_v54  ;;  %v1351_v54 = vshrl.u32 %v1186_v44, 16 }
 0x12a   : > { %v871_v1 = vpack.c.bf16 %v839_v59, %v839_v59  ;;  %v1318_v26 = vsel %vm8349_vm7, %v6700_v8, %v1317_v9  ;;  %v2800_v59 = vrot.slane %v2798_v50, 7  ;;  %v6873_v8 = vrot.slane %v2793_v58, 11 }
 0x12b   : > { %v7303_v4 = vld [vmem:[#allocation2 + $0x44] sm:$0xff]  ;;  %v1844_v40 = vunpack.c.l.b16 %v1318_v26  ;;  %v6701_v3 = vrot.slane %v1329_v56, 11  ;;  %v2832_v50 = vshll.u32 %v2730_v14, 16  ;;  %v2823_v58 = vshll.u32 %v2729_v23, 16 }
 0x12c   : > { %v1182_v5 = vld [vmem:[#allocation2 + $0x48] sm:$0xf]  ;;  %904 = vst [vmem:[#allocation2 + $0x54] sm:$0xf] %v871_v1  ;;  %1775 = vmatmul.bf16.gmra.mxu2 %v7303_v4  ;;  %v2801_v1 = vshll.u32 %v2726_v39, 16 }
 0x12d   : > { %v1321_v10 = vshrl.u32 %v1182_v5, 16  ;;  %v773_v12 = vpop.f32.mrf.mxu0  ;;  %v7299_v13 = vld [vmem:[#allocation2 + $0x4] sm:$0xff]  ;;  %v1324_v19 = vshll.u32 %v1182_v5, 16 }
 0x12e   : > { %v774_v17 = vadd.f32 %v8287_v38, %v773_v12  ;;  %1755 = vmatmul.bf16.vlgmr.msra.gmra.mxu1 %v7299_v13  ;;  %v2803_v9 = vor.u32 %v2801_v1, %v2800_v59 }
 0x12f   : > { %v1323_v18 = vrot.slane %v1321_v10, 7  ;;  %v2805_v10 = vrot.slane %v2800_v59, 4 }
 0x130   : > { %v840_v25 = vmax.f32 %v774_v17, 0.0  ;;  %v2804_v22 = vsel %vm8349_vm7, %v6873_v8, %v2803_v9  ;;  %v7367_v9 = vld [vmem:[#allocation11 + $0x120] sm:$0xff] }
 0x131   : > { %v1326_v29 = vor.u32 %v1324_v19, %v1323_v18  ;;  %v2813_v15 = vsel %vm8349_vm7, %v2805_v10, %v2812_v2  ;;  %v3141_v37 = vunpack.c.l.b16 %v2804_v22  ;;  %3536 = vmatpush.bf16.msrb.mxu2 %v7367_v9 }
 0x132   : > { %v872_v35 = vpack.c.bf16 %v840_v25, %v840_v25  ;;  %v1082_v25 = vsel %vm8268_vm2, 0, %v1081_v20 }
 0x133   : > { %v1327_v36 = vsel %vm8349_vm7, %v1319_v28, %v1326_v29  ;;  %v1184_v42 = vld [vmem:[#allocation2 + $0x54] sm:$0xf]  ;;  %v3142_v29 = vunpack.c.l.b16 %v2813_v15  ;;  %1083 = vst [vmem:[#allocation2 + $0x80] sm:$0x8] %v1082_v25 }
 0x134   : > { %v1845_v41 = vunpack.c.l.b16 %v1327_v36  ;;  %905 = vst [vmem:[#allocation2 + $0x58] sm:$0xf] %v872_v35  ;;  %v1334_v45 = vshrl.u32 %v1184_v42, 16  ;;  %v1337_v62 = vshll.u32 %v1184_v42, 16  ;;  %v1169_v35 = vld [vmem:[#allocation2 + $0x4] sm:$0xf] }
 0x135   : > { %v776_v47 = vpop.f32.mrf.mxu0  ;;  %v1100_v36 = vsel %vm8268_vm2, 0, %v1099_v21  ;;  %v1224_v49 = vshrl.u32 %v1169_v35, 16  ;;  %v1227_v2 = vshll.u32 %v1169_v35, 16 }
 0x136   : > { %v1872_v48 = vpack.c.b16 %v1845_v41, %v1844_v40  ;;  %v777_v51 = vadd.f32 %v8287_v38, %v776_v47  ;;  %v1336_v57 = vrot.slane %v1334_v45, 7  ;;  %v2820_v40 = vshrl.u32 %v2729_v23, 16  ;;  %v1170_v41 = vld [vmem:[#allocation2 + $0x8] sm:$0xf]  ;;  %1101 = vst [vmem:[#allocation2 + $0xe0] sm:$0x8] %v1100_v36 }
 0x137   : > { %v2831_v45 = vrot.slane %v2829_v24, 7  ;;  %v3172_v47 = vpack.c.b16 %v3142_v29, %v3141_v37  ;;  %v8402_v37 = vld [vmem:[#allocation2 + $0x18] sm:$0xf] }
 0x138   : > { %1976 = vmatmul.bf16.gmra.mxu3 %v1872_v48  ;;  %v841_v55 = vmax.f32 %v777_v51, 0.0  ;;  %3259 = vmatmul.bf16.vlgmr.msrb.gmra.mxu0 %v3171_v52  ;;  %v1339_v4 = vor.u32 %v1337_v62, %v1336_v57  ;;  %v1341_v18 = vrot.slane %v1336_v57, 4  ;;  %v2728_v48 = vld [vmem:[#allocation2 + $0x30] sm:$0x8]  ;;  %v1168_v51 = vld [vmem:[#allocation2] sm:$0x8] }
 0x139   : > { %v1233_v52 = vshrl.u32 %v1170_v41, 16  ;;  %v2822_v56 = vrot.slane %v2820_v40, 7  ;;  %v2815_v57 = vshrl.u32 %v2728_v48, 16  ;;  %v2834_v59 = vor.u32 %v2832_v50, %v2831_v45 }
 0x13a   : > { %v873_v61 = vpack.c.bf16 %v841_v55, %v841_v55  ;;  %v1340_v17 = vsel %vm8349_vm7, %v6701_v3, %v1339_v4  ;;  %v1219_v62 = vshrl.u32 %v1168_v51, 16  ;;  %v1236_v4 = vshll.u32 %v1170_v41, 16  ;;  %v1189_v51 = vld [vmem:[#allocation2 + $0x70] sm:$0x8] }
 0x13b   : > { %v7304_v63 = vld [vmem:[#allocation2 + $0x54] sm:$0xff]  ;;  %v1846_v30 = vunpack.c.l.b16 %v1340_v17  ;;  %v1235_v3 = vrot.slane %v1233_v52, 7  ;;  %v2827_v8 = vrot.slane %v2822_v56, 4 }
 0x13c   : > { %v1185_v0 = vld [vmem:[#allocation2 + $0x58] sm:$0xf]  ;;  %906 = vst [vmem:[#allocation2 + $0x64] sm:$0xf] %v873_v61  ;;  %1780 = vmatmul.bf16.gmra.mxu2 %v7304_v63  ;;  %v1226_v63 = vrot.slane %v1224_v49, 7 }
 0x13d   : > { %v1343_v5 = vshrl.u32 %v1185_v0, 16  ;;  %v778_v6 = vpop.f32.mrf.mxu0  ;;  %v1346_v13 = vshll.u32 %v1185_v0, 16  ;;  %v2835_v17 = vsel %vm8349_vm7, %v2827_v8, %v2834_v59  ;;  %v1238_v22 = vor.u32 %v1236_v4, %v1235_v3 }
 0x13e   : > { %v779_v11 = vadd.f32 %v8287_v38, %v778_v6  ;;  %1760 = vmatmul.bf16.gmra.mxu1 %v7300_v7  ;;  %v1229_v20 = vor.u32 %v1227_v2, %v1226_v63  ;;  %v1231_v21 = vrot.slane %v1226_v63, 4  ;;  %v3144_v36 = vunpack.c.l.b16 %v2835_v17  ;;  %v1102_v63 = vld [vmem:[#allocation2 + $0xf0] sm:$0x8] }
 0x13f   : > { %v1345_v12 = vrot.slane %v1343_v5, 7  ;;  %v6702_v5 = vrot.slane %v1351_v54, 11  ;;  %v1103_v9 = vsel %vm8268_vm2, 0, %v1102_v63 }
 0x140   : > { %v842_v16 = vmax.f32 %v779_v11, 0.0  ;;  %v7301_v11 = vld [vmem:[#allocation2 + $0x24] sm:$0xff]  ;;  %1104 = vst [vmem:[#allocation2 + $0xf0] sm:$0x8] %v1103_v9 }
 0x141   : > { %v1348_v19 = vor.u32 %v1346_v13, %v1345_v12  ;;  %v6874_v12 = vrot.slane %v2815_v57, 11  ;;  %v2825_v13 = vor.u32 %v2823_v58, %v2822_v56  ;;  %v8412_v56 = vld [vmem:[#allocation2 + $0x14] sm:$0xf]  ;;  %v1255_v57 = vshrl.u32 %v8402_v37, 16 }
 0x142   : > { %v874_v26 = vpack.c.bf16 %v842_v16, %v842_v16  ;;  %v7337_v58 = vld [vmem:[#allocation11 + $0xb0] sm:$0xff] }
 0x143   : > { %v1349_v28 = vsel %vm8349_vm7, %v1341_v18, %v1348_v19  ;;  %v1187_v34 = vld [vmem:[#allocation2 + $0x64] sm:$0xf]  ;;  %v2733_v18 = vld [vmem:[#allocation2 + $0x48] sm:$0xf]  ;;  %v6696_v19 = vrot.slane %v1219_v62, 11  ;;  %v2826_v29 = vsel %vm8349_vm7, %v6874_v12, %v2825_v13  ;;  %v1257_v8 = vrot.slane %v1255_v57, 7 }
 0x144   : > { %v1847_v33 = vunpack.c.l.b16 %v1349_v28  ;;  %907 = vst [vmem:[#allocation2 + $0x68] sm:$0xf] %v874_v26  ;;  %v1356_v39 = vshrl.u32 %v1187_v34, 16  ;;  %v1359_v61 = vshll.u32 %v1187_v34, 16  ;;  %v8396_v28 = vld [vmem:[#allocation2 + $0x44] sm:$0xf]  ;;  %v3143_v45 = vunpack.c.l.b16 %v2826_v29 }
 0x145   : > { %v781_v42 = vpop.f32.mrf.mxu0  ;;  %v2842_v44 = vshrl.u32 %v8396_v28, 16  ;;  %v2854_v62 = vshll.u32 %v2733_v18, 16 }
 0x146   : > { %v1873_v43 = vpack.c.b16 %v1847_v33, %v1846_v30  ;;  %v782_v46 = vadd.f32 %v8287_v38, %v781_v42  ;;  %v1358_v55 = vrot.slane %v1356_v39, 7  ;;  %v2851_v30 = vshrl.u32 %v2733_v18, 16  ;;  %v1084_v33 = vld [vmem:[#allocation2 + $0x90] sm:$0x8]  ;;  %v7338_v39 = vld [vmem:[#allocation11 + $0xb8] sm:$0xff] }
 0x147   : > { %v1085_v40 = vsel %vm8268_vm2, 0, %v1084_v33  ;;  %2601 = vmatpush.bf16.msra.mxu1 %v7338_v39  ;;  %v3173_v54 = vpack.c.b16 %v3144_v36, %v3143_v45  ;;  %v8425_v33 = vld [vmem:[#allocation2 + $0x58] sm:$0xf]  ;;  %v1249_v39 = vshll.u32 %v8412_v56, 16 }
 0x148   : > { %1981 = vmatmul.bf16.gmra.mxu3 %v1873_v43  ;;  %v843_v53 = vmax.f32 %v782_v46, 0.0  ;;  %3264 = vmatmul.bf16.gmra.mxu0 %v3172_v47  ;;  %v1361_v6 = vor.u32 %v1359_v61, %v1358_v55  ;;  %v1363_v25 = vrot.slane %v1358_v55, 4  ;;  %1086 = vst [vmem:[#allocation2 + $0x90] sm:$0x8] %v1085_v40  ;;  %v1230_v46 = vsel %vm8349_vm7, %v6696_v19, %v1229_v20  ;;  %v2731_v55 = vld [vmem:[#allocation2 + $0x40] sm:$0x8] }
 0x149   : > { %v1239_v47 = vsel %vm8349_vm7, %v1231_v21, %v1238_v22  ;;  %v2853_v52 = vrot.slane %v2851_v30, 7  ;;  %v1836_v59 = vunpack.c.l.b16 %v1230_v46  ;;  %v2844_v61 = vrot.slane %v2842_v44, 7  ;;  %v1171_v20 = vld [vmem:[#allocation2 + $0x10] sm:$0x8] }
 0x14a   : > { %v875_v60 = vpack.c.bf16 %v843_v53, %v843_v53  ;;  %v1362_v24 = vsel %vm8349_vm7, %v6702_v5, %v1361_v6  ;;  %v2837_v3 = vshrl.u32 %v2731_v55, 16  ;;  %v1246_v5 = vshrl.u32 %v8412_v56, 16 }
 0x14b   : > { %v7305_v0 = vld [vmem:[#allocation2 + $0x64] sm:$0xff]  ;;  %v1848_v41 = vunpack.c.l.b16 %v1362_v24  ;;  %2602 = vmatpush.bf16.msra.mxu1 %v7337_v58  ;;  %v2856_v4 = vor.u32 %v2854_v62, %v2853_v52  ;;  %v7334_v62 = vld [vmem:[#allocation11 + $0x98] sm:$0xff] }
 0x14c   : > { %v1188_v1 = vld [vmem:[#allocation2 + $0x68] sm:$0xf]  ;;  %908 = vst [vmem:[#allocation2 + $0x74] sm:$0xf] %v875_v60  ;;  %1785 = vmatmul.bf16.gmra.mxu2 %v7305_v0  ;;  %v1837_v60 = vunpack.c.l.b16 %v1239_v47  ;;  %v6875_v22 = vrot.slane %v2837_v3, 11  ;;  %v1248_v36 = vrot.slane %v1246_v5, 7 }
 0x14d   : > { %v1365_v7 = vshrl.u32 %v1188_v1, 16  ;;  %v783_v10 = vpop.f32.mrf.mxu0  ;;  %v1368_v16 = vshll.u32 %v1188_v1, 16  ;;  %v1373_v1 = vshrl.u32 %v1189_v51, 16  ;;  %v1192_v5 = vld [vmem:[#allocation2 + $0x80] sm:$0x8] }
 0x14e   : > { %v784_v14 = vadd.f32 %v8287_v38, %v783_v10  ;;  %1765 = vmatmul.bf16.gmra.mxu1 %v7301_v11  ;;  %v1132_v10 = vld [vmem:[#allocation2 + $0x6c] sm:$0x1]  ;;  %v1868_v12 = vpack.c.b16 %v1837_v60, %v1836_v59  ;;  %v1251_v60 = vor.u32 %v1249_v39, %v1248_v36 }
 0x14f   : > { %v1367_v15 = vrot.slane %v1365_v7, 7  ;;  %v6703_v17 = vrot.slane %v1373_v1, 11  ;;  %v7332_v39 = vld [vmem:[#allocation11 + $0x88] sm:$0xff] }
 0x150   : > { %v844_v23 = vmax.f32 %v784_v14, 0.0  ;;  %v2845_v14 = vshll.u32 %v8396_v28, 16 }
 0x151   : > { %v1370_v26 = vor.u32 %v1368_v16, %v1367_v15  ;;  %v2849_v15 = vrot.slane %v2844_v61, 4  ;;  %v7336_v16 = vld [vmem:[#allocation11 + $0xa8] sm:$0xff] }
 0x152   : > { %v876_v34 = vpack.c.bf16 %v844_v23, %v844_v23  ;;  %v2847_v23 = vor.u32 %v2845_v14, %v2844_v61  ;;  %2603 = vmatpush.bf16.msra.mxu1 %v7336_v16  ;;  %v1174_v14 = vld [vmem:[#allocation2 + $0x20] sm:$0x8] }
 0x153   : > { %v1371_v35 = vsel %vm8349_vm7, %v1363_v25, %v1370_v26  ;;  %v1190_v43 = vld [vmem:[#allocation2 + $0x74] sm:$0xf]  ;;  %v2857_v24 = vsel %vm8349_vm7, %v2849_v15, %v2856_v4  ;;  %v1258_v25 = vshll.u32 %v8402_v37, 16  ;;  %v7335_v37 = vld [vmem:[#allocation11 + $0xa0] sm:$0xff] }
 0x154   : > { %v1849_v42 = vunpack.c.l.b16 %v1371_v35  ;;  %909 = vst [vmem:[#allocation2 + $0x78] sm:$0xf] %v876_v34  ;;  %v1378_v48 = vshrl.u32 %v1190_v43, 16  ;;  %v1381_v7 = vshll.u32 %v1190_v43, 16  ;;  %v8422_v26 = vld [vmem:[#allocation2 + $0x54] sm:$0xf]  ;;  %v2848_v45 = vsel %vm8349_vm7, %v6875_v22, %v2847_v23 }
 0x155   : > { %v786_v49 = vpop.f32.mrf.mxu0  ;;  %v1133_v34 = vsel %vm8276_vm5, 0, %v1132_v10  ;;  %v1241_v35 = vshrl.u32 %v1171_v20, 16  ;;  %v1260_v40 = vor.u32 %v1258_v25, %v1257_v8  ;;  %v3146_v46 = vunpack.c.l.b16 %v2857_v24 }
 0x156   : > { %v1874_v50 = vpack.c.b16 %v1849_v42, %v1848_v41  ;;  %v787_v53 = vadd.f32 %v8287_v38, %v786_v49  ;;  %v1380_v2 = vrot.slane %v1378_v48, 7  ;;  %1134 = vst [vmem:[#allocation2 + $0x6c] sm:$0x1] %v1133_v34  ;;  %v2864_v47 = vshrl.u32 %v8422_v26, 16  ;;  %2604 = vmatpush.bf16.msra.mxu1 %v7335_v37  ;;  %v1114_v49 = vld [vmem:[#allocation2 + $0xc] sm:$0x1] }
 0x157   : > { %v2873_v48 = vshrl.u32 %v8425_v33, 16  ;;  %v1115_v55 = vsel %vm8276_vm5, 0, %v1114_v49  ;;  %v6697_v59 = vrot.slane %v1241_v35, 11  ;;  %v3145_v63 = vunpack.c.l.b16 %v2848_v45 }
 0x158   : > { %1986 = vmatmul.bf16.gmra.mxu3 %v1874_v50  ;;  %v845_v0 = vmax.f32 %v787_v53, 0.0  ;;  %3269 = vmatmul.bf16.gmra.mxu0 %v3173_v54  ;;  %v1383_v18 = vor.u32 %v1381_v7, %v1380_v2  ;;  %v1385_v43 = vrot.slane %v1380_v2, 4  ;;  %v1087_v50 = vld [vmem:[#allocation2 + $0xa0] sm:$0x8]  ;;  %v2734_v53 = vld [vmem:[#allocation2 + $0x50] sm:$0x8] }
 0x159   : > { %v8438_v54 = vld [vmem:[#allocation2 + $0x24] sm:$0xf]  ;;  %v1088_v56 = vsel %vm8268_vm2, 0, %v1087_v50  ;;  %1116 = vst [vmem:[#allocation2 + $0xc] sm:$0x1] %v1115_v55  ;;  %v2866_v7 = vrot.slane %v2864_v47, 7  ;;  %v3174_v9 = vpack.c.b16 %v3146_v46, %v3145_v63 }
 0x15a   : > { %v877_v6 = vpack.c.bf16 %v845_v0, %v845_v0  ;;  %v1384_v42 = vsel %vm8349_vm7, %v6703_v17, %v1383_v18  ;;  %v1253_v0 = vrot.slane %v1248_v36, 4  ;;  %v8444_v2 = vld [vmem:[#allocation2 + $0x28] sm:$0xf]  ;;  %2605 = vmatpush.bf16.msra.mxu1 %v7334_v62  ;;  %1089 = vst [vmem:[#allocation2 + $0xa0] sm:$0x8] %v1088_v56  ;;  %v1268_v15 = vshrl.u32 %v8438_v54, 16 }
 0x15b   : > { %v7306_v11 = vld [vmem:[#allocation2 + $0x74] sm:$0xff]  ;;  %v1850_v57 = vunpack.c.l.b16 %v1384_v42  ;;  %v1277_v16 = vshrl.u32 %v8444_v2, 16  ;;  %v2876_v20 = vshll.u32 %v8425_v33, 16  ;;  %v2871_v42 = vrot.slane %v2866_v7, 4  ;;  %v8469_v55 = vld [vmem:[#allocation2 + $0x68] sm:$0xf] }
 0x15c   : > { %v1191_v13 = vld [vmem:[#allocation2 + $0x78] sm:$0xf]  ;;  %910 = vst [vmem:[#allocation2 + $0x84] sm:$0xf] %v877_v6  ;;  %1790 = vmatmul.bf16.gmra.mxu2 %v7306_v11  ;;  %v2859_v6 = vshrl.u32 %v2734_v53, 16  ;;  %v1261_v10 = vsel %vm8349_vm7, %v1253_v0, %v1260_v40  ;;  %v2875_v11 = vrot.slane %v2873_v48, 7 }
 0x15d   : > { %v1387_v19 = vshrl.u32 %v1191_v13, 16  ;;  %v788_v21 = vpop.f32.mrf.mxu0  ;;  %v1390_v30 = vshll.u32 %v1191_v13, 16  ;;  %v2867_v13 = vshll.u32 %v8422_v26, 16  ;;  %v7333_v17 = vld [vmem:[#allocation11 + $0x90] sm:$0xff]  ;;  %v1263_v26 = vshrl.u32 %v1174_v14, 16  ;;  %v7366_v33 = vld [vmem:[#allocation11 + $0x118] sm:$0xff] }
 0x15e   : > { %v789_v28 = vadd.f32 %v8287_v38, %v788_v21  ;;  %1956 = vmatmul.bf16.vlgmr.msrb.gmra.mxu1 %v1868_v12  ;;  %v1252_v12 = vsel %vm8349_vm7, %v6697_v59, %v1251_v60  ;;  %v1839_v21 = vunpack.c.l.b16 %v1261_v10  ;;  %v6876_v22 = vrot.slane %v2859_v6, 11  ;;  %v8462_v48 = vld [vmem:[%s9763_s4] ss:$0 sm:$0xff]  ;;  %3537 = vmatpush.bf16.msrb.mxu2 %v7366_v33  ;;  %v8467_v53 = vld [vmem:[#allocation2 + $0x64] sm:$0xf] }
 0x15f   : > { %v1389_v29 = vrot.slane %v1387_v19, 7  ;;  %v2869_v23 = vor.u32 %v2867_v13, %v2866_v7  ;;  %2606 = vmatpush.bf16.msra.mxu1 %v7333_v17  ;;  %v1270_v35 = vrot.slane %v1268_v15, 7  ;;  %v1279_v36 = vrot.slane %v1277_v16, 7  ;;  %v7331_v59 = vld [vmem:[#allocation11 + $0x80] sm:$0xff]  ;;  %v1195_v13 = vld [vmem:[#allocation2 + $0x90] sm:$0x8] }
 0x160   : > { %v846_v41 = vmax.f32 %v789_v28, 0.0  ;;  %v2878_v28 = vor.u32 %v2876_v20, %v2875_v11  ;;  %v1271_v46 = vshll.u32 %v8438_v54, 16  ;;  %v1280_v47 = vshll.u32 %v8444_v2, 16  ;;  %v2037_v60 = vld [vmem:[#allocation2 + $0x4] sm:$0xf] }
 0x161   : > { %v1392_v44 = vor.u32 %v1390_v30, %v1389_v29  ;;  %v1838_v30 = vunpack.c.l.b16 %v1252_v12  ;;  %v2870_v45 = vsel %vm8349_vm7, %v6876_v22, %v2869_v23  ;;  %v6698_v54 = vrot.slane %v1263_v26, 11 }
 0x162   : > { %v878_v51 = vpack.c.bf16 %v846_v41, %v846_v41  ;;  %v1273_v56 = vor.u32 %v1271_v46, %v1270_v35  ;;  %v3147_v2 = vunpack.c.l.b16 %v2870_v45  ;;  %v2895_v6 = vshrl.u32 %v8469_v55, 16 }
 0x163   : > { %v1393_v52 = vsel %vm8349_vm7, %v1385_v43, %v1392_v44  ;;  %v1193_v61 = vld [vmem:[#allocation2 + $0x84] sm:$0xf]  ;;  %v1869_v44 = vpack.c.b16 %v1839_v21, %v1838_v30  ;;  %2607 = vmatpush.bf16.msra.mxu1 %v7332_v39  ;;  %v2092_v10 = vshll.u32 %v2037_v60, 16  ;;  %v1090_v30 = vld [vmem:[#allocation2 + $0xb0] sm:$0x8] }
 0x164   : > { %v1851_v58 = vunpack.c.l.b16 %v1393_v52  ;;  %911 = vst [vmem:[#allocation2 + $0x88] sm:$0xf] %v878_v51  ;;  %v1400_v1 = vshrl.u32 %v1193_v61, 16  ;;  %v1403_v25 = vshll.u32 %v1193_v61, 16  ;;  %v2879_v52 = vsel %vm8349_vm7, %v2871_v42, %v2878_v28 }
 0x165   : > { %v791_v3 = vpop.f32.mrf.mxu0  ;;  %v1274_v17 = vsel %vm8349_vm7, %v6698_v54, %v1273_v56  ;;  %v1417_v28 = vshrl.u32 %v1195_v13, 16  ;;  %v2897_v26 = vrot.slane %v2895_v6, 7  ;;  %v1091_v39 = vsel %vm8268_vm2, 0, %v1090_v30 }
 0x166   : > { %v1875_v4 = vpack.c.b16 %v1851_v58, %v1850_v57  ;;  %v792_v8 = vadd.f32 %v8287_v38, %v791_v3  ;;  %v1395_v38 = vshrl.u32 %v1192_v5, 16  ;;  %v1402_v19 = vrot.slane %v1400_v1, 7  ;;  %v2038_v1 = vld [vmem:[#allocation2 + $0x8] sm:$0xf]  ;;  %1092 = vst [vmem:[#allocation2 + $0xb0] sm:$0x8] %v1091_v39 }
 0x167   : > { %v1275_v57 = vrot.slane %v1270_v35, 4  ;;  %v1282_v58 = vor.u32 %v1280_v47, %v1279_v36  ;;  %v3148_v3 = vunpack.c.l.b16 %v2879_v52  ;;  %v2886_v5 = vshrl.u32 %v8467_v53, 16  ;;  %2608 = vmatpush.bf16.msra.mxu1 %v7331_v59  ;;  %v7739_v39 = vld [vmem:[%s9763_s4] ss:$0 sm:$0xff] }
 0x168   : > { %1991 = vmatmul.bf16.gmra.mxu3 %v1875_v4  ;;  %v847_v18 = vmax.f32 %v792_v8, 0.0  ;;  %3274 = vmatmul.bf16.gmra.mxu0 %v3174_v9  ;;  %v6704_v40 = vrot.slane %v1395_v38, 11  ;;  %v1405_v37 = vor.u32 %v1403_v25, %v1402_v19  ;;  %v1407_v63 = vrot.slane %v1402_v19, 4  ;;  %v2737_v4 = vld [vmem:[#allocation2 + $0x60] sm:$0x8] }
 0x169   : > { %v2089_v9 = vshrl.u32 %v2037_v60, 16  ;;  %v2098_v15 = vshll.u32 %v2038_v1, 16  ;;  %v2102_v16 = vshrl.u32 %v2038_v1, 16  ;;  %v2881_v19 = vshrl.u32 %v2737_v4, 16  ;;  %v8492_v4 = vld [vmem:[#allocation2 + $0x14] sm:$0xf] }
 0x16a   : > { %v879_v24 = vpack.c.bf16 %v847_v18, %v847_v18  ;;  %v1406_v62 = vsel %vm8349_vm7, %v6704_v40, %v1405_v37  ;;  %v1283_v18 = vsel %vm8349_vm7, %v1275_v57, %v1282_v58  ;;  %v3175_v22 = vpack.c.b16 %v3148_v3, %v3147_v2 }
 0x16b   : > { %v7307_v29 = vld [vmem:[#allocation2 + $0x84] sm:$0xff]  ;;  %v1852_v11 = vunpack.c.l.b16 %v1406_v62  ;;  %v2888_v23 = vrot.slane %v2886_v5, 7  ;;  %v8483_v35 = vrot.slane %v2098_v15, 5  ;;  %v2104_v36 = vrot.slane %v2102_v16, 4  ;;  %v2042_v5 = vld [vmem:[#allocation2 + $0x1c] sm:$0x1] }
 0x16c   : > { %v1194_v34 = vld [vmem:[#allocation2 + $0x88] sm:$0xf]  ;;  %912 = vst [vmem:[#allocation2 + $0x94] sm:$0xf] %v879_v24  ;;  %1795 = vmatmul.bf16.gmra.mxu2 %v7307_v29  ;;  %v2889_v24 = vshll.u32 %v8467_v53, 16  ;;  %v2091_v29 = vrot.slane %v2089_v9, 4  ;;  %v1840_v42 = vunpack.c.l.b16 %v1274_v17  ;;  %v1841_v33 = vunpack.c.l.b16 %v1283_v18 }
 0x16d   : > { %v1409_v41 = vshrl.u32 %v1194_v34, 16  ;;  %v793_v43 = vpop.f32.mrf.mxu0  ;;  %v1412_v51 = vshll.u32 %v1194_v34, 16  ;;  %v2094_v34 = vrot.slane %v2092_v10, 5  ;;  %v6877_v46 = vrot.slane %v2881_v19, 11 }
 0x16e   : > { %v794_v49 = vadd.f32 %v8462_v48, %v793_v43  ;;  %1961 = vmatmul.bf16.gmra.mxu1 %v1869_v44  ;;  %v2898_v43 = vshll.u32 %v8469_v55, 16  ;;  %v2891_v47 = vor.u32 %v2889_v24, %v2888_v23  ;;  %v2105_v54 = vor.u32 %v2104_v36, %v8483_v35 }
 0x16f   : > { %v1411_v50 = vrot.slane %v1409_v41, 7  ;;  %v2039_v41 = vld [vmem:[#allocation2 + $0xc] sm:$0x1]  ;;  %v2095_v53 = vor.u32 %v2094_v34, %v2091_v29  ;;  %v6705_v57 = vrot.slane %v1417_v28, 11  ;;  %v1870_v55 = vpack.c.b16 %v1841_v33, %v1840_v42  ;;  %v1198_v33 = vld [vmem:[#allocation2 + $0xa0] sm:$0x8] }
 0x170   : > { %v848_v61 = vmax.f32 %v794_v49, 0.0  ;;  %v2041_v49 = vld [vmem:[#allocation2 + $0x18] sm:$0xf]  ;;  %v2900_v52 = vor.u32 %v2898_v43, %v2897_v26  ;;  %v2108_v56 = vshll.u32 %v2039_v41, 16  ;;  %v2892_v3 = vsel %vm8349_vm7, %v6877_v46, %v2891_v47  ;;  %v2740_v47 = vld [vmem:[#allocation2 + $0x70] sm:$0x8] }
 0x171   : > { %v1414_v0 = vor.u32 %v1412_v51, %v1411_v50  ;;  %v2122_v62 = vshll.u32 %v2041_v49, 16  ;;  %v2113_v15 = vshrl.u32 %v8492_v4, 16  ;;  %v2132_v17 = vshll.u32 %v2042_v5, 16 }
 0x172   : > { %v880_v7 = vpack.c.bf16 %v848_v61, %v848_v61  ;;  %v2893_v61 = vrot.slane %v2888_v23, 4  ;;  %v2110_v9 = vrot.slane %v2108_v56, 5  ;;  %v1093_v56 = vld [vmem:[#allocation2 + $0xc0] sm:$0x8] }
 0x173   : > { %v1415_v8 = vsel %vm8349_vm7, %v1407_v63, %v1414_v0  ;;  %v1196_v14 = vld [vmem:[#allocation2 + $0x94] sm:$0xf]  ;;  %v2126_v63 = vshrl.u32 %v2041_v49, 16  ;;  %v8499_v16 = vrot.slane %v2122_v62, 5 }
 0x174   : > { %v1853_v12 = vunpack.c.l.b16 %v1415_v8  ;;  %913 = vst [vmem:[#allocation2 + $0x98] sm:$0xf] %v880_v7  ;;  %v1422_v38 = vshrl.u32 %v1196_v14, 16  ;;  %v1425_v45 = vshll.u32 %v1196_v14, 16  ;;  %v2901_v6 = vsel %vm8349_vm7, %v2893_v61, %v2900_v52  ;;  %v2742_v14 = vld [vmem:[#allocation2 + $0x78] sm:$0xf] }
 0x175   : > { %v796_v20 = vpop.f32.mrf.mxu0  ;;  %v2096_v7 = vrot.slane %v2095_v53, 4  ;;  %v2106_v8 = vrot.slane %v2105_v54, 4  ;;  %v3150_v19 = vunpack.c.l.b16 %v2901_v6  ;;  %v2917_v29 = vshrl.u32 %v2742_v14, 16 }
 0x176   : > { %v1876_v21 = vpack.c.b16 %v1853_v12, %v1852_v11  ;;  %v797_v25 = vadd.f32 %v8462_v48, %v796_v20  ;;  %v1424_v37 = vrot.slane %v1422_v38, 7  ;;  %v8503_v20 = vld [vmem:[#allocation2 + $0x74] sm:$0xf]  ;;  %v2920_v62 = vshll.u32 %v2742_v14, 16 }
 0x177   : > { %v2101_v30 = vsel %vm8507_vm10, %v2096_v7, %v8483_v35  ;;  %v2111_v34 = vsel %vm8507_vm10, %v2106_v8, %v2110_v9  ;;  %v2908_v43 = vshrl.u32 %v8503_v20, 16  ;;  %v2919_v53 = vrot.slane %v2917_v29, 7  ;;  %v2044_v29 = vld [vmem:[#allocation2 + $0x28] sm:$0xf] }
 0x178   : > { %1996 = vmatmul.bf16.gmra.mxu3 %v1876_v21  ;;  %v849_v40 = vmax.f32 %v797_v25, 0.0  ;;  %3279 = vmatmul.bf16.gmra.mxu0 %v3175_v22  ;;  %v1427_v58 = vor.u32 %v1425_v45, %v1424_v37  ;;  %v1429_v12 = vrot.slane %v1424_v37, 4  ;;  %v1026_v21 = vpop.f32.mrf.mxu1  ;;  %v2128_v22 = vrot.slane %v2126_v63, 4  ;;  %v7365_v37 = vld [vmem:[#allocation11 + $0x110] sm:$0xff] }
 0x179   : > { %v3149_v25 = vunpack.c.l.b16 %v2892_v3  ;;  %v8522_v45 = vrot.slane %v2132_v17, 5  ;;  %3538 = vmatpush.bf16.msrb.mxu2 %v7365_v37  ;;  %v2490_v52 = vunpack.c.l.b16 %v2111_v34  ;;  %v2910_v61 = vrot.slane %v2908_v43, 7 }
 0x17a   : > { %v881_v44 = vpack.c.bf16 %v849_v40, %v849_v40  ;;  %v1428_v11 = vsel %vm8349_vm7, %v6705_v57, %v1427_v58  ;;  %v1027_v40 = vadd.f32 %v7739_v39, %v1026_v21  ;;  %v2129_v54 = vor.u32 %v2128_v22, %v8499_v16 }
 0x17b   : > { %v7308_v50 = vld [vmem:[#allocation2 + $0x94] sm:$0xff]  ;;  %v1854_v23 = vunpack.c.l.b16 %v1428_v11  ;;  %v3176_v46 = vpack.c.b16 %v3150_v19, %v3149_v25  ;;  %v1439_v58 = vshrl.u32 %v1198_v33, 16  ;;  %v1094_v63 = vsel %vm8268_vm2, 0, %v1093_v56 }
 0x17c   : > { %v1197_v51 = vld [vmem:[#allocation2 + $0x98] sm:$0xf]  ;;  %914 = vst [vmem:[#allocation2 + $0xa4] sm:$0xf] %v881_v44  ;;  %1800 = vmatmul.bf16.gmra.mxu2 %v7308_v50  ;;  %v8520_v44 = vrot.slane %v2113_v15, 4  ;;  %v1033_v49 = vmax.f32 %v1027_v40, 0.0  ;;  %v2922_v8 = vor.u32 %v2920_v62, %v2919_v53 }
 0x17d   : > { %v1431_v59 = vshrl.u32 %v1197_v51, 16  ;;  %v798_v60 = vpop.f32.mrf.mxu0  ;;  %v1434_v2 = vshll.u32 %v1197_v51, 16  ;;  %v2116_v50 = vshll.u32 %v8492_v4, 16  ;;  %v2489_v51 = vunpack.c.l.b16 %v2101_v30  ;;  %1095 = vst [vmem:[#allocation2 + $0xc0] sm:$0x8] %v1094_v63 }
 0x17e   : > { %v799_v0 = vadd.f32 %v8462_v48, %v798_v60  ;;  %1966 = vmatmul.bf16.gmra.mxu1 %v1870_v55  ;;  %v1047_v60 = vmul.f32 0.0, %v1033_v49  ;;  %v2903_v55 = vshrl.u32 %v2740_v47, 16  ;;  %v2911_v7 = vshll.u32 %v8503_v20, 16  ;;  %v2745_v40 = vld [vmem:[#allocation2 + $0x88] sm:$0xf] }
 0x17f   : > { %v1433_v1 = vrot.slane %v1431_v59, 7  ;;  %v2118_v3 = vrot.slane %v2116_v50, 5  ;;  %v2521_v5 = vpack.c.b16 %v2490_v52, %v2489_v51  ;;  %v2130_v9 = vrot.slane %v2129_v54, 4 }
 0x180   : > { %v850_v10 = vmax.f32 %v799_v0, 0.0  ;;  %v6878_v15 = vrot.slane %v2903_v55, 11  ;;  %v2913_v17 = vor.u32 %v2911_v7, %v2910_v61  ;;  %v2939_v52 = vshrl.u32 %v2745_v40, 16  ;;  %v1096_v7 = vld [vmem:[#allocation2 + $0xd0] sm:$0x8] }
 0x181   : > { %v1436_v13 = vor.u32 %v1434_v2, %v1433_v1  ;;  %v1049_v2 = vpack.c.bf16 %v1047_v60, %v1047_v60  ;;  %v2135_v25 = vsel %vm8507_vm10, %v2130_v9, %v8522_v45  ;;  %v1201_v60 = vld [vmem:[#allocation2 + $0xb0] sm:$0x8] }
 0x182   : > { %v882_v18 = vpack.c.bf16 %v850_v10, %v850_v10  ;;  %v6706_v10 = vrot.slane %v1439_v58, 11  ;;  %v2914_v37 = vsel %vm8349_vm7, %v6878_v15, %v2913_v17  ;;  %v1461_v9 = vshrl.u32 %v1201_v60, 16 }
 0x183   : > { %v1437_v38 = vsel %vm8349_vm7, %v1429_v12, %v1436_v13  ;;  %v1199_v26 = vld [vmem:[#allocation2 + $0xa4] sm:$0xf]  ;;  %v1028_v13 = vpop.f32.mrf.mxu1  ;;  %1052 = vst [vmem:[#allocation2 + $0x114] sm:$0xf] %v1049_v2  ;;  %v3151_v53 = vunpack.c.l.b16 %v2914_v37  ;;  %v2743_v2 = vld [vmem:[#allocation2 + $0x80] sm:$0x8] }
 0x184   : > { %v1855_v24 = vunpack.c.l.b16 %v1437_v38  ;;  %915 = vst [vmem:[#allocation2 + $0xa8] sm:$0xf] %v882_v18  ;;  %v1444_v36 = vshrl.u32 %v1199_v26, 16  ;;  %v1447_v1 = vshll.u32 %v1199_v26, 16  ;;  %v2915_v18 = vrot.slane %v2910_v61, 4 }
 0x185   : > { %v801_v41 = vpop.f32.mrf.mxu0  ;;  %v1029_v38 = vadd.f32 %v7739_v39, %v1028_v13  ;;  %v2150_v61 = vshrl.u32 %v2044_v29, 16  ;;  %v2925_v13 = vshrl.u32 %v2743_v2, 16 }
 0x186   : > { %v1877_v42 = vpack.c.b16 %v1855_v24, %v1854_v23  ;;  %v802_v35 = vadd.f32 %v8462_v48, %v801_v41  ;;  %v1446_v59 = vrot.slane %v1444_v36, 7  ;;  %v2043_v23 = vld [vmem:[#allocation2 + $0x24] sm:$0xf]  ;;  %v2923_v20 = vsel %vm8349_vm7, %v2915_v18, %v2922_v8 }
 0x187   : > { %v2119_v24 = vor.u32 %v2118_v3, %v8520_v44  ;;  %v1034_v26 = vmax.f32 %v1029_v38, 0.0  ;;  %v2140_v33 = vshll.u32 %v2043_v23, 16  ;;  %v3152_v45 = vunpack.c.l.b16 %v2923_v20 }
 0x188   : > { %2001 = vmatmul.bf16.gmra.mxu3 %v1877_v42  ;;  %v851_v57 = vmax.f32 %v802_v35, 0.0  ;;  %3284 = vmatmul.bf16.gmra.mxu0 %v3176_v46  ;;  %v1449_v11 = vor.u32 %v1447_v1, %v1446_v59  ;;  %v1451_v36 = vrot.slane %v1446_v59, 4  ;;  %v2137_v42 = vshrl.u32 %v2043_v23, 16  ;;  %v2744_v35 = vld [vmem:[#allocation2 + $0x84] sm:$0xf] }
 0x189   : > { %v1048_v41 = vmul.f32 0.0, %v1034_v26  ;;  %v2146_v46 = vshll.u32 %v2044_v29, 16  ;;  %v2120_v54 = vrot.slane %v2119_v24, 4  ;;  %v2930_v55 = vshrl.u32 %v2744_v35, 16  ;;  %v7364_v26 = vld [vmem:[#allocation11 + $0x108] sm:$0xff] }
 0x18a   : > { %v883_v0 = vpack.c.bf16 %v851_v57, %v851_v57  ;;  %v1450_v34 = vsel %vm8349_vm7, %v6706_v10, %v1449_v11  ;;  %v7378_v57 = vld [vmem:[#allocation11 + $0x178] sm:$0xff]  ;;  %v3177_v63 = vpack.c.b16 %v3152_v45, %v3151_v53  ;;  %v2492_v1 = vunpack.c.l.b16 %v2135_v25  ;;  %v2045_v11 = vld [vmem:[#allocation2 + $0x2c] sm:$0x1]  ;;  %3539 = vmatpush.bf16.msrb.mxu2 %v7364_v26  ;;  %v2046_v45 = vld [vmem:[#allocation2 + $0x34] sm:$0xf] }
 0x18b   : > { %v7309_v4 = vld [vmem:[#allocation2 + $0xa4] sm:$0xff]  ;;  %v1856_v47 = vunpack.c.l.b16 %v1450_v34  ;;  %v1050_v50 = vpack.c.bf16 %v1048_v41, %v1048_v41  ;;  %4215 = vmatpush.bf16.msrb.mxu3 %v7378_v57  ;;  %v2941_v3 = vrot.slane %v2939_v52, 7  ;;  %v2152_v15 = vrot.slane %v2150_v61, 4  ;;  %v2748_v57 = vld [vmem:[#allocation2 + $0x98] sm:$0xf] }
 0x18c   : > { %v1200_v6 = vld [vmem:[#allocation2 + $0xa8] sm:$0xf]  ;;  %916 = vst [vmem:[#allocation2 + $0xb4] sm:$0xf] %v883_v0  ;;  %1805 = vmatmul.bf16.gmra.mxu2 %v7309_v4  ;;  %v2125_v0 = vsel %vm8507_vm10, %v2120_v54, %v8499_v16  ;;  %v2139_v4 = vrot.slane %v2137_v42, 4  ;;  %v2932_v16 = vrot.slane %v2930_v55, 7 }
 0x18d   : > { %v1453_v12 = vshrl.u32 %v1200_v6, 16  ;;  %v803_v14 = vpop.f32.mrf.mxu0  ;;  %v1456_v22 = vshll.u32 %v1200_v6, 16  ;;  %1053 = vst [vmem:[#allocation2 + $0x118] sm:$0xf] %v1050_v50  ;;  %v8547_v6 = vrot.slane %v2146_v46, 5  ;;  %v2491_v18 = vunpack.c.l.b16 %v2125_v0 }
 0x18e   : > { %v804_v19 = vadd.f32 %v8462_v48, %v803_v14  ;;  %2609 = vmatmul.bf16.vlgmr.msra.gmra.mxu1 %v2521_v5  ;;  %v2142_v5 = vrot.slane %v2140_v33, 5  ;;  %v2942_v14 = vshll.u32 %v2745_v40, 16  ;;  %v2933_v23 = vshll.u32 %v2744_v35, 16  ;;  %v2747_v0 = vld [vmem:[#allocation2 + $0x94] sm:$0xf] }
 0x18f   : > { %v1455_v21 = vrot.slane %v1453_v12, 7  ;;  %v1097_v12 = vsel %vm8268_vm2, 0, %v1096_v7  ;;  %v2156_v25 = vshll.u32 %v2045_v11, 16  ;;  %v2522_v29 = vpack.c.b16 %v2492_v1, %v2491_v18  ;;  %v2048_v7 = vld [vmem:[#allocation2 + $0x3c] sm:$0x1] }
 0x190   : > { %v852_v30 = vmax.f32 %v804_v19, 0.0  ;;  %1098 = vst [vmem:[#allocation2 + $0xd0] sm:$0x8] %v1097_v12  ;;  %v2047_v19 = vld [vmem:[#allocation2 + $0x38] sm:$0xf]  ;;  %v2944_v20 = vor.u32 %v2942_v14, %v2941_v3  ;;  %v2143_v24 = vor.u32 %v2142_v5, %v2139_v4  ;;  %v6879_v40 = vrot.slane %v2925_v13, 11 }
 0x191   : > { %v1458_v39 = vor.u32 %v1456_v22, %v1455_v21  ;;  %v2935_v37 = vor.u32 %v2933_v23, %v2932_v16  ;;  %v2937_v41 = vrot.slane %v2932_v16, 4  ;;  %v2153_v42 = vor.u32 %v2152_v15, %v8547_v6  ;;  %v1204_v14 = vld [vmem:[#allocation2 + $0xc0] sm:$0x8] }
 0x192   : > { %v884_v43 = vpack.c.bf16 %v852_v30, %v852_v30  ;;  %v6707_v30 = vrot.slane %v1461_v9, 11  ;;  %v2170_v35 = vshll.u32 %v2047_v19, 16  ;;  %v2174_v50 = vshrl.u32 %v2047_v19, 16  ;;  %v2746_v19 = vld [vmem:[#allocation2 + $0x90] sm:$0x8] }
 0x193   : > { %v1459_v44 = vsel %vm8349_vm7, %v1451_v36, %v1458_v39  ;;  %v1202_v51 = vld [vmem:[#allocation2 + $0xb4] sm:$0xf]  ;;  %v2945_v46 = vsel %vm8349_vm7, %v2937_v41, %v2944_v20  ;;  %v2161_v60 = vshrl.u32 %v2046_v45, 16  ;;  %v2164_v55 = vshll.u32 %v2046_v45, 16 }
 0x194   : > { %v1857_v49 = vunpack.c.l.b16 %v1459_v44  ;;  %917 = vst [vmem:[#allocation2 + $0xb8] sm:$0xf] %v884_v43  ;;  %v1466_v56 = vshrl.u32 %v1202_v51, 16  ;;  %v1469_v38 = vshll.u32 %v1202_v51, 16  ;;  %v8561_v1 = vrot.slane %v2170_v35, 5 }
 0x195   : > { %v806_v58 = vpop.f32.mrf.mxu0  ;;  %v2961_v5 = vshrl.u32 %v2748_v57, 16  ;;  %v2952_v15 = vshrl.u32 %v2747_v0, 16  ;;  %v1483_v26 = vshrl.u32 %v1204_v14, 16 }
 0x196   : > { %v1878_v59 = vpack.c.b16 %v1857_v49, %v1856_v47  ;;  %v807_v62 = vadd.f32 %v8462_v48, %v806_v58  ;;  %v1468_v10 = vrot.slane %v1466_v56, 7  ;;  %v2144_v47 = vrot.slane %v2143_v24, 4 }
 0x197   : > { %v2158_v49 = vrot.slane %v2156_v25, 5  ;;  %v2936_v58 = vsel %vm8349_vm7, %v6879_v40, %v2935_v37  ;;  %v2963_v23 = vrot.slane %v2961_v5, 7 }
 0x198   : > { %2006 = vmatmul.bf16.gmra.mxu3 %v1878_v59  ;;  %v853_v8 = vmax.f32 %v807_v62, 0.0  ;;  %3289 = vmatmul.bf16.gmra.mxu0 %v3177_v63  ;;  %v1471_v34 = vor.u32 %v1469_v38, %v1468_v10  ;;  %v1473_v54 = vrot.slane %v1468_v10, 4  ;;  %v2154_v59 = vrot.slane %v2153_v42, 4 }
 0x199   : > { %v3154_v63 = vunpack.c.l.b16 %v2945_v46  ;;  %v3153_v9 = vunpack.c.l.b16 %v2936_v58  ;;  %v2149_v10 = vsel %vm8507_vm10, %v2144_v47, %v8547_v6  ;;  %v2955_v46 = vshll.u32 %v2747_v0, 16  ;;  %v2049_v0 = vld [vmem:[#allocation2 + $0x44] sm:$0xf] }
 0x19a   : > { %v885_v17 = vpack.c.bf16 %v853_v8, %v853_v8  ;;  %v1472_v53 = vsel %vm8349_vm7, %v6707_v30, %v1471_v34  ;;  %v2176_v8 = vrot.slane %v2174_v50, 4  ;;  %v2159_v16 = vsel %vm8507_vm10, %v2154_v59, %v2158_v49  ;;  %v7377_v50 = vld [vmem:[#allocation11 + $0x170] sm:$0xff] }
 0x19b   : > { %v7310_v21 = vld [vmem:[#allocation2 + $0xb4] sm:$0xff]  ;;  %v1858_v2 = vunpack.c.l.b16 %v1472_v53  ;;  %v3178_v38 = vpack.c.b16 %v3154_v63, %v3153_v9  ;;  %v2494_v25 = vunpack.c.l.b16 %v2159_v16  ;;  %v2493_v30 = vunpack.c.l.b16 %v2149_v10  ;;  %4216 = vmatpush.bf16.msrb.mxu3 %v7377_v50 }
 0x19c   : > { %v1203_v22 = vld [vmem:[#allocation2 + $0xb8] sm:$0xf]  ;;  %918 = vst [vmem:[#allocation2 + $0xc4] sm:$0xf] %v885_v17  ;;  %1810 = vmatmul.bf16.gmra.mxu2 %v7310_v21  ;;  %v2163_v17 = vrot.slane %v2161_v60, 4  ;;  %v2166_v21 = vrot.slane %v2164_v55, 5  ;;  %v2177_v20 = vor.u32 %v2176_v8, %v8561_v1 }
 0x19d   : > { %v1475_v36 = vshrl.u32 %v1203_v22, 16  ;;  %v808_v39 = vpop.f32.mrf.mxu0  ;;  %v1478_v44 = vshll.u32 %v1203_v22, 16  ;;  %v2180_v22 = vshll.u32 %v2048_v7, 16  ;;  %v2947_v34 = vshrl.u32 %v2746_v19, 16  ;;  %v2750_v19 = vld [vmem:[#allocation2 + $0xa4] sm:$0xf] }
 0x19e   : > { %v809_v33 = vadd.f32 %v8462_v48, %v808_v39  ;;  %2614 = vmatmul.bf16.gmra.mxu1 %v2522_v29  ;;  %v2964_v39 = vshll.u32 %v2748_v57, 16  ;;  %v2167_v42 = vor.u32 %v2166_v21, %v2163_v17  ;;  %v2178_v49 = vrot.slane %v2177_v20, 4 }
 0x19f   : > { %v1477_v43 = vrot.slane %v1475_v36, 7  ;;  %v1771_v52 = vpop.f32.mrf.mxu2  ;;  %v2954_v36 = vrot.slane %v2952_v15, 7  ;;  %v2523_v53 = vpack.c.b16 %v2494_v25, %v2493_v30  ;;  %v6880_v59 = vrot.slane %v2947_v34, 11 }
 0x1a0   : > { %v854_v51 = vmax.f32 %v809_v33, 0.0  ;;  %v2182_v33 = vrot.slane %v2180_v22, 5  ;;  %v2966_v47 = vor.u32 %v2964_v39, %v2963_v23  ;;  %v2188_v16 = vshll.u32 %v2049_v0, 16 }
 0x1a1   : > { %v1480_v56 = vor.u32 %v1478_v44, %v1477_v43  ;;  %v2050_v43 = vld [vmem:[#allocation2 + $0x48] sm:$0xf]  ;;  %v2957_v60 = vor.u32 %v2955_v46, %v2954_v36  ;;  %v2959_v55 = vrot.slane %v2954_v36, 4  ;;  %v2051_v36 = vld [vmem:[#allocation2 + $0x4c] sm:$0x1] }
 0x1a2   : > { %v886_v61 = vpack.c.bf16 %v854_v51, %v854_v51  ;;  %v2183_v5 = vsel %vm8507_vm10, %v2178_v49, %v2182_v33  ;;  %v2204_v49 = vshll.u32 %v2051_v36, 16  ;;  %v7376_v36 = vld [vmem:[#allocation11 + $0x168] sm:$0xff] }
 0x1a3   : > { %v1481_v62 = vsel %vm8349_vm7, %v1473_v54, %v1480_v56  ;;  %v1205_v4 = vld [vmem:[#allocation2 + $0xc4] sm:$0xf]  ;;  %v6708_v54 = vrot.slane %v1483_v26, 11  ;;  %4217 = vmatpush.bf16.msrb.mxu3 %v7376_v36 }
 0x1a4   : > { %v1859_v3 = vunpack.c.l.b16 %v1481_v62  ;;  %919 = vst [vmem:[#allocation2 + $0xc8] sm:$0xf] %v886_v61  ;;  %v1488_v11 = vshrl.u32 %v1205_v4, 16  ;;  %v1491_v41 = vshll.u32 %v1205_v4, 16  ;;  %v2168_v4 = vrot.slane %v2167_v42, 4  ;;  %v7363_v26 = vld [vmem:[#allocation11 + $0x100] sm:$0xff] }
 0x1a5   : > { %v811_v12 = vpop.f32.mrf.mxu0  ;;  %v2974_v42 = vshrl.u32 %v2750_v19, 16  ;;  %3540 = vmatpush.bf16.msrb.mxu2 %v7363_v26 }
 0x1a6   : > { %v1879_v13 = vpack.c.b16 %v1859_v3, %v1858_v2  ;;  %v812_v18 = vadd.f32 %v8462_v48, %v811_v12  ;;  %v1490_v29 = vrot.slane %v1488_v11, 7  ;;  %v2198_v2 = vshrl.u32 %v2050_v43, 16 }
 0x1a7   : > { %v1773_v24 = vpop.f32.mrf.mxu2  ;;  %v2967_v3 = vsel %vm8349_vm7, %v2959_v55, %v2966_v47  ;;  %v2958_v12 = vsel %vm8349_vm7, %v6880_v59, %v2957_v60  ;;  %v8599_v59 = vld [vmem:[#allocation2 + $0xe4] sm:$0xf] }
 0x1a8   : > { %2011 = vmatmul.bf16.gmra.mxu3 %v1879_v13  ;;  %v855_v6 = vmax.f32 %v812_v18, 0.0  ;;  %3294 = vmatmul.bf16.gmra.mxu0 %v3178_v38  ;;  %v1493_v56 = vor.u32 %v1491_v41, %v1490_v29  ;;  %v1495_v10 = vrot.slane %v1490_v29, 4  ;;  %v2185_v13 = vshrl.u32 %v2049_v0, 16  ;;  %v1207_v41 = vld [vmem:[#allocation2 + $0xd0] sm:$0x8] }
 0x1a9   : > { %v3156_v38 = vunpack.c.l.b16 %v2967_v3  ;;  %v2200_v21 = vrot.slane %v2198_v2, 4  ;;  %v3155_v30 = vunpack.c.l.b16 %v2958_v12  ;;  %v2053_v0 = vld [vmem:[#allocation2 + $0x58] sm:$0xf] }
 0x1aa   : > { %v887_v40 = vpack.c.bf16 %v855_v6, %v855_v6  ;;  %v1494_v9 = vsel %vm8349_vm7, %v6708_v54, %v1493_v56  ;;  %v1505_v54 = vshrl.u32 %v1207_v41, 16 }
 0x1ab   : > { %v1972_v37 = vpop.f32.mrf.mxu3  ;;  %v7311_v45 = vld [vmem:[#allocation2 + $0xc4] sm:$0xff]  ;;  %v8572_v51 = vpop.f32.mrf.mxu1  ;;  %v1860_v23 = vunpack.c.l.b16 %v1494_v9  ;;  %v3179_v33 = vpack.c.b16 %v3156_v38, %v3155_v30  ;;  %v8607_v9 = vrot.slane %v2204_v49, 5  ;;  %v2218_v38 = vshll.u32 %v2053_v0, 16 }
 0x1ac   : > { %v8570_v44 = vadd.f32 %v1972_v37, %v1771_v52  ;;  %v1206_v35 = vld [vmem:[#allocation2 + $0xc8] sm:$0xf]  ;;  %920 = vst [vmem:[#allocation2 + $0xd4] sm:$0xf] %v887_v40  ;;  %1815 = vmatmul.bf16.gmra.mxu2 %v7311_v45  ;;  %v2194_v52 = vshll.u32 %v2050_v43, 16  ;;  %v2173_v37 = vsel %vm8507_vm10, %v2168_v4, %v8561_v1  ;;  %v2187_v45 = vrot.slane %v2185_v13, 4 }
 0x1ad   : > { %v1497_v57 = vshrl.u32 %v1206_v35, 16  ;;  %v813_v58 = vpop.f32.mrf.mxu0  ;;  %v1500_v63 = vshll.u32 %v1206_v35, 16  ;;  %v2749_v43 = vld [vmem:[#allocation2 + $0xa0] sm:$0x8]  ;;  %v2190_v35 = vrot.slane %v2188_v16, 5  ;;  %v1532_v16 = vshrl.u32 %v8599_v59, 16 }
 0x1ae   : > { %v814_v61 = vadd.f32 %v8462_v48, %v813_v58  ;;  %2619 = vmatmul.bf16.gmra.mxu1 %v2523_v53  ;;  %v2751_v48 = vld [vmem:[#allocation2 + $0xa8] sm:$0xf]  ;;  %v8583_v14 = vrot.slane %v2194_v52, 5  ;;  %v2495_v53 = vunpack.c.l.b16 %v2173_v37  ;;  %v2969_v1 = vshrl.u32 %v2749_v43, 16 }
 0x1af   : > { %v1499_v62 = vrot.slane %v1497_v57, 7  ;;  %v1776_v8 = vpop.f32.mrf.mxu2  ;;  %v2983_v25 = vshrl.u32 %v2751_v48, 16  ;;  %v2976_v57 = vrot.slane %v2974_v42, 7  ;;  %v2986_v58 = vshll.u32 %v2751_v48, 16  ;;  %v8611_v13 = vld [vmem:[#allocation2 + $0xe8] sm:$0xf] }
 0x1b0   : > { %v856_v7 = vmax.f32 %v814_v61, 0.0  ;;  %v2201_v46 = vor.u32 %v2200_v21, %v8583_v14  ;;  %v2191_v61 = vor.u32 %v2190_v35, %v2187_v45  ;;  %v1541_v42 = vshrl.u32 %v8611_v13, 16  ;;  %v1210_v45 = vld [vmem:[#allocation2 + $0xe0] sm:$0x8] }
 0x1b1   : > { %v1502_v11 = vor.u32 %v1500_v63, %v1499_v62  ;;  %v2985_v47 = vrot.slane %v2983_v25, 7  ;;  %v8603_v63 = vld [vmem:[#allocation2 + $0x54] sm:$0xf]  ;;  %v8630_v35 = vrot.slane %v1532_v16, 7 }
 0x1b2   : > { %v888_v15 = vpack.c.bf16 %v856_v7, %v856_v7  ;;  %v8601_v62 = vrot.slane %v2201_v46, 4  ;;  %v2192_v26 = vrot.slane %v2191_v61, 4  ;;  %v1535_v46 = vshll.u32 %v8599_v59, 16  ;;  %v2054_v61 = vld [vmem:[#allocation2 + $0x5c] sm:$0x1]  ;;  %v7375_v59 = vld [vmem:[#allocation11 + $0x160] sm:$0xff] }
 0x1b3   : > { %v1974_v17 = vpop.f32.mrf.mxu3  ;;  %v1503_v18 = vsel %vm8349_vm7, %v1495_v10, %v1502_v11  ;;  %v1208_v6 = vld [vmem:[#allocation2 + $0xd4] sm:$0xf]  ;;  %v8589_v29 = vpop.f32.mrf.mxu1  ;;  %v2988_v7 = vor.u32 %v2986_v58, %v2985_v47  ;;  %v6709_v11 = vrot.slane %v1505_v54, 11  ;;  %v2212_v47 = vshll.u32 %v8603_v63, 16  ;;  %4218 = vmatpush.bf16.msrb.mxu3 %v7375_v59  ;;  %v7418_v59 = vld [vmem:[#allocation11 + $0x238] sm:$0xff] }
 0x1b4   : > { %v8587_v22 = vadd.f32 %v1974_v17, %v1773_v24  ;;  %v1861_v20 = vunpack.c.l.b16 %v1503_v18  ;;  %921 = vst [vmem:[#allocation2 + $0xd8] sm:$0xf] %v888_v15  ;;  %v1510_v34 = vshrl.u32 %v1208_v6, 16  ;;  %v2496_v24 = vunpack.c.l.b16 %v2183_v5  ;;  %5830 = vmatpush.bf16.msra.mxu2 %v7418_v59 }
 0x1b5   : > { %v8591_v39 = vpop.f32.mrf.mxu0  ;;  %v1513_v52 = vshll.u32 %v1208_v6, 16  ;;  %v2977_v5 = vshll.u32 %v2750_v19, 16  ;;  %v2981_v18 = vrot.slane %v2976_v57, 4  ;;  %v1156_v19 = vld [vmem:[#allocation2 + $0xec] sm:$0x1]  ;;  %v2207_v30 = vsel %vm8507_vm10, %v8601_v62, %v8607_v9 }
 0x1b6   : > { %v1880_v40 = vpack.c.b16 %v1861_v20, %v1860_v23  ;;  %v1512_v56 = vrot.slane %v1510_v34, 7  ;;  %v2524_v55 = vpack.c.b16 %v2496_v24, %v2495_v53  ;;  %v2222_v20 = vshrl.u32 %v2053_v0, 16 }
 0x1b7   : > { %v8597_v50 = vpop.f32.mrf.mxu2  ;;  %v2979_v17 = vor.u32 %v2977_v5, %v2976_v57  ;;  %v1157_v6 = vsel %vm8276_vm5, 0, %v1156_v19  ;;  %v2989_v25 = vsel %vm8349_vm7, %v2981_v18, %v2988_v7  ;;  %v2209_v34 = vshrl.u32 %v8603_v63, 16 }
 0x1b8   : > { %2016 = vmatmul.bf16.gmra.mxu3 %v1880_v40  ;;  %3299 = vmatmul.bf16.gmra.mxu0 %v3179_v33  ;;  %v1515_v48 = vor.u32 %v1513_v52, %v1512_v56  ;;  %1158 = vst [vmem:[#allocation2 + $0xec] sm:$0x1] %v1157_v6  ;;  %v1517_v24 = vrot.slane %v1512_v56, 4  ;;  %v2754_v33 = vld [vmem:[#allocation2 + $0xb8] sm:$0xf]  ;;  %v3158_v54 = vunpack.c.l.b16 %v2989_v25  ;;  %v2224_v57 = vrot.slane %v2222_v20, 4 }
 0x1b9   : > { %v2753_v56 = vld [vmem:[#allocation2 + $0xb4] sm:$0xf]  ;;  %v3005_v52 = vshrl.u32 %v2754_v33, 16  ;;  %v1527_v0 = vshrl.u32 %v1210_v45, 16  ;;  %v2214_v16 = vrot.slane %v2212_v47, 5  ;;  %v2498_v18 = vunpack.c.l.b16 %v2207_v30  ;;  %v7374_v25 = vld [vmem:[#allocation11 + $0x158] sm:$0xff] }
 0x1ba   : > { %v1516_v37 = vsel %vm8349_vm7, %v6709_v11, %v1515_v48  ;;  %v2996_v9 = vshrl.u32 %v2753_v56, 16  ;;  %v2211_v11 = vrot.slane %v2209_v34, 4  ;;  %v2197_v48 = vsel %vm8507_vm10, %v2192_v26, %v8583_v14  ;;  %4219 = vmatpush.bf16.msrb.mxu3 %v7374_v25  ;;  %v7313_v45 = vld [vmem:[#allocation2 + $0xe4] sm:$0xff] }
 0x1bb   : > { %v1977_v60 = vpop.f32.mrf.mxu3  ;;  %v7312_v3 = vld [vmem:[#allocation2 + $0xd4] sm:$0xff]  ;;  %v8609_v10 = vpop.f32.mrf.mxu1  ;;  %v1537_v20 = vor.u32 %v1535_v46, %v8630_v35  ;;  %v1539_v14 = vrot.slane %v8630_v35, 4  ;;  %v3008_v30 = vshll.u32 %v2754_v33, 16  ;;  %v2999_v47 = vshll.u32 %v2753_v56, 16 }
 0x1bc   : > { %v8605_v2 = vadd.f32 %v1977_v60, %v1776_v8  ;;  %v1209_v4 = vld [vmem:[#allocation2 + $0xd8] sm:$0xf]  ;;  %1820 = vmatmul.bf16.gmra.mxu2 %v7312_v3  ;;  %v6881_v8 = vrot.slane %v2969_v1, 11  ;;  %v8636_v1 = vrot.slane %v2218_v38, 5  ;;  %v1862_v60 = vunpack.c.l.b16 %v1516_v37 }
 0x1bd   : > { %v1519_v12 = vshrl.u32 %v1209_v4, 16  ;;  %v8614_v15 = vpop.f32.mrf.mxu0  ;;  %v1522_v23 = vshll.u32 %v1209_v4, 16  ;;  %v1543_v3 = vrot.slane %v1541_v42, 7  ;;  %v1544_v4 = vshll.u32 %v8611_v13, 16  ;;  %v8656_v42 = vld [vmem:[#allocation2 + $0xf4] sm:$0xf] }
 0x1be   : > { %2624 = vmatmul.bf16.gmra.mxu1 %v2524_v55  ;;  %v2980_v43 = vsel %vm8349_vm7, %v6881_v8, %v2979_v17  ;;  %v2228_v8 = vshll.u32 %v2054_v61, 16  ;;  %v1135_v17 = vld [vmem:[#allocation2 + $0x7c] sm:$0x1]  ;;  %v3007_v38 = vrot.slane %v3005_v52, 7  ;;  %v2225_v13 = vor.u32 %v2224_v57, %v8636_v1  ;;  %v8660_v35 = vld [vmem:[#allocation2 + $0xf8] sm:$0xf] }
 0x1bf   : > { %v1521_v21 = vrot.slane %v1519_v12, 7  ;;  %v1781_v40 = vpop.f32.mrf.mxu2  ;;  %v3157_v63 = vunpack.c.l.b16 %v2980_v43  ;;  %v2752_v12 = vld [vmem:[#allocation2 + $0xb0] sm:$0x8]  ;;  %v1136_v19 = vsel %vm8276_vm5, 0, %v1135_v17  ;;  %v1546_v6 = vor.u32 %v1544_v4, %v1543_v3  ;;  %v8681_v17 = vld [vmem:[#allocation2 + $0xc8] sm:$0xf] }
 0x1c0   : > { %1137 = vst [vmem:[#allocation2 + $0x7c] sm:$0x1] %v1136_v19  ;;  %v2991_v26 = vshrl.u32 %v2752_v12, 16  ;;  %v2998_v34 = vrot.slane %v2996_v9, 7  ;;  %v2497_v37 = vunpack.c.l.b16 %v2197_v48  ;;  %v3010_v46 = vor.u32 %v3008_v30, %v3007_v38  ;;  %v1213_v3 = vld [vmem:[#allocation2 + $0xf0] sm:$0x8] }
 0x1c1   : > { %v1524_v41 = vor.u32 %v1522_v23, %v1521_v21  ;;  %v6710_v23 = vrot.slane %v1527_v0, 11  ;;  %v1554_v61 = vshrl.u32 %v8656_v42, 16  ;;  %v1563_v4 = vshrl.u32 %v8660_v35, 16  ;;  %v7402_v48 = vld [vmem:[#allocation11 + $0x1b8] sm:$0xff]  ;;  %v8689_v30 = vld [vmem:[#allocation2 + $0xc4] sm:$0xf] }
 0x1c2   : > { %v2525_v57 = vpack.c.b16 %v2498_v18, %v2497_v37  ;;  %v3001_v52 = vor.u32 %v2999_v47, %v2998_v34  ;;  %v3003_v56 = vrot.slane %v2998_v34, 4  ;;  %v2055_v18 = vld [vmem:[#allocation2 + $0x64] sm:$0xf]  ;;  %4866 = vmatpush.bf16.msrb.mxu1 %v7402_v48  ;;  %v3027_v37 = vshrl.u32 %v8681_v17, 16 }
 0x1c3   : > { %v1979_v49 = vpop.f32.mrf.mxu3  ;;  %v1525_v53 = vsel %vm8349_vm7, %v1517_v24, %v1524_v41  ;;  %v8641_v62 = vpop.f32.mrf.mxu1  ;;  %v2215_v24 = vor.u32 %v2214_v16, %v2211_v11  ;;  %v2230_v41 = vrot.slane %v2228_v8, 5  ;;  %v1538_v33 = vsel %vm8349_vm7, %v6710_v23, %v1537_v20 }
 0x1c4   : > { %v8639_v58 = vadd.f32 %v1979_v49, %v8597_v50  ;;  %v1863_v55 = vunpack.c.l.b16 %v1525_v53  ;;  %v3180_v50 = vpack.c.b16 %v3158_v54, %v3157_v63  ;;  %v2226_v49 = vrot.slane %v2225_v13, 4  ;;  %v7373_v53 = vld [vmem:[#allocation11 + $0x150] sm:$0xff]  ;;  %v2056_v63 = vld [vmem:[#allocation2 + $0x68] sm:$0xf] }
 0x1c5   : > { %v8644_v5 = vpop.f32.mrf.mxu0  ;;  %v2216_v0 = vrot.slane %v2215_v24, 4  ;;  %4220 = vmatpush.bf16.msrb.mxu3 %v7373_v53  ;;  %v3011_v9 = vsel %vm8349_vm7, %v3003_v56, %v3010_v46  ;;  %v1864_v16 = vunpack.c.l.b16 %v1538_v33  ;;  %v2242_v38 = vshll.u32 %v2056_v63, 16  ;;  %v3654_v56 = vld [vmem:[#allocation2 + $0x14] sm:$0xf] }
 0x1c6   : > { %v1881_v7 = vpack.c.b16 %v1863_v55, %v1862_v60  ;;  %v1547_v60 = vsel %vm8349_vm7, %v1539_v14, %v1546_v6  ;;  %v2231_v11 = vsel %vm8507_vm10, %v2226_v49, %v2230_v41  ;;  %v2246_v13 = vshrl.u32 %v2056_v63, 16 }
 0x1c7   : > { %v8652_v21 = vpop.f32.mrf.mxu2  ;;  %v2221_v8 = vsel %vm8507_vm10, %v2216_v0, %v8636_v1  ;;  %v1549_v23 = vshrl.u32 %v1213_v3, 16  ;;  %v1556_v20 = vrot.slane %v1554_v61, 7  ;;  %v1557_v14 = vshll.u32 %v8656_v42, 16  ;;  %v7371_v42 = vld [vmem:[#allocation11 + $0x140] sm:$0xff] }
 0x1c8   : > { %2021 = vmatmul.bf16.gmra.mxu3 %v1881_v7  ;;  %3304 = vmatmul.bf16.gmra.mxu0 %v3180_v50  ;;  %v1865_v7 = vunpack.c.l.b16 %v1547_v60  ;;  %v7372_v50 = vld [vmem:[#allocation11 + $0x148] sm:$0xff]  ;;  %v3160_v25 = vunpack.c.l.b16 %v3011_v9  ;;  %v1565_v34 = vrot.slane %v1563_v4, 7  ;;  %v1566_v1 = vshll.u32 %v8660_v35, 16  ;;  %v2755_v0 = vld [vmem:[#allocation2 + $0xc0] sm:$0x8] }
 0x1c9   : > { %4221 = vmatpush.bf16.msrb.mxu3 %v7372_v50  ;;  %v2233_v24 = vshrl.u32 %v2055_v18, 16  ;;  %v2236_v41 = vshll.u32 %v2055_v18, 16  ;;  %v8697_v53 = vrot.slane %v2242_v38, 5  ;;  %v2499_v33 = vunpack.c.l.b16 %v2221_v8 }
 0x1ca   : > { %v1882_v46 = vpack.c.b16 %v1865_v7, %v1864_v16  ;;  %v6711_v60 = vrot.slane %v1549_v23, 11  ;;  %v1561_v59 = vrot.slane %v1556_v20, 4  ;;  %v1568_v63 = vor.u32 %v1566_v1, %v1565_v34 }
 0x1cb   : > { %v1982_v36 = vpop.f32.mrf.mxu3  ;;  %v8662_v54 = vpop.f32.mrf.mxu1  ;;  %v3029_v4 = vrot.slane %v3027_v37, 7  ;;  %v2235_v7 = vrot.slane %v2233_v24, 4  ;;  %v2238_v9 = vrot.slane %v2236_v41, 5  ;;  %v3703_v8 = vshrl.u32 %v3654_v56, 16  ;;  %v7314_v37 = vld [vmem:[#allocation2 + $0xf4] sm:$0xff] }
 0x1cc   : > { %v8658_v43 = vadd.f32 %v1982_v36, %v1781_v40  ;;  %1825 = vmatmul.bf16.gmra.mxu2 %v7313_v45  ;;  %v6882_v40 = vrot.slane %v2991_v26, 11  ;;  %v8686_v26 = vunpack.c.l.b16 %v2231_v11  ;;  %v7410_v45 = vld [vmem:[#allocation11 + $0x1f8] sm:$0xff]  ;;  %v3706_v18 = vshll.u32 %v3654_v56, 16 }
 0x1cd   : > { %v8668_v55 = vpop.f32.mrf.mxu0  ;;  %5148 = vmatpush.bf16.msra.mxu0 %v7410_v45  ;;  %4222 = vmatpush.bf16.msrb.mxu3 %v7371_v42  ;;  %v3655_v11 = vld [vmem:[#allocation2 + $0x18] sm:$0xf]  ;;  %v3030_v23 = vshll.u32 %v8681_v17, 16  ;;  %v3021_v24 = vshll.u32 %v8689_v30, 16  ;;  %v2239_v45 = vor.u32 %v2238_v9, %v2235_v7 }
 0x1ce   : > { %2629 = vmatmul.bf16.gmra.mxu1 %v2525_v57  ;;  %v3002_v19 = vsel %vm8349_vm7, %v6882_v40, %v3001_v52  ;;  %v2248_v57 = vrot.slane %v2246_v13, 4  ;;  %v1559_v40 = vor.u32 %v1557_v14, %v1556_v20  ;;  %v2057_v52 = vld [vmem:[#allocation2 + $0x6c] sm:$0x1]  ;;  %v2526_v3 = vpack.c.b16 %v8686_v26, %v2499_v33  ;;  %v2760_v9 = vld [vmem:[#allocation2 + $0xd8] sm:$0xf] }
 0x1cf   : > { %v8676_v12 = vpop.f32.mrf.mxu2  ;;  %v3159_v49 = vunpack.c.l.b16 %v3002_v19  ;;  %v2252_v16 = vshll.u32 %v2057_v52, 16  ;;  %v3013_v13 = vshrl.u32 %v2755_v0, 16  ;;  %v1138_v20 = vld [vmem:[#allocation2 + $0x8c] sm:$0x1]  ;;  %v3716_v26 = vshrl.u32 %v3655_v11, 16 }
 0x1d0   : > { %v2249_v48 = vor.u32 %v2248_v57, %v8697_v53  ;;  %v1560_v38 = vsel %vm8349_vm7, %v6711_v60, %v1559_v40  ;;  %v1139_v34 = vsel %vm8276_vm5, 0, %v1138_v20  ;;  %v3032_v41 = vor.u32 %v3030_v23, %v3029_v4  ;;  %v1105_v52 = vld [vmem:[#allocation2 + $0x100] sm:$0x8]  ;;  %v2759_v23 = vld [vmem:[#allocation2 + $0xd4] sm:$0xf] }
 0x1d1   : > { %v3181_v61 = vpack.c.b16 %v3160_v25, %v3159_v49  ;;  %v3712_v25 = vshll.u32 %v3655_v11, 16  ;;  %1140 = vst [vmem:[#allocation2 + $0x8c] sm:$0x1] %v1139_v34  ;;  %v3705_v49 = vrot.slane %v3703_v8, 4  ;;  %v3708_v57 = vrot.slane %v3706_v18, 5 }
 0x1d2   : > { %v2250_v42 = vrot.slane %v2249_v48, 4  ;;  %v6883_v40 = vrot.slane %v3013_v13, 11  ;;  %v1106_v11 = vsel %vm8268_vm2, 0, %v1105_v52 }
 0x1d3   : > { %v1984_v6 = vpop.f32.mrf.mxu3  ;;  %v8695_v47 = vpop.f32.mrf.mxu1  ;;  %v8720_v56 = vrot.slane %v3712_v25, 5  ;;  %1107 = vst [vmem:[#allocation2 + $0x100] sm:$0x8] %v1106_v11 }
 0x1d4   : > { %v8692_v36 = vadd.f32 %v1984_v6, %v8652_v21  ;;  %v3018_v21 = vshrl.u32 %v8689_v30, 16  ;;  %v1569_v6 = vsel %vm8349_vm7, %v1561_v59, %v1568_v63  ;;  %v3718_v30 = vrot.slane %v3716_v26, 4  ;;  %v3656_v63 = vld [vmem:[#allocation2 + $0x1c] sm:$0x1] }
 0x1d5   : > { %v8699_v35 = vpop.f32.mrf.mxu0  ;;  %v1867_v4 = vunpack.c.l.b16 %v1569_v6  ;;  %v3049_v6 = vshrl.u32 %v2760_v9, 16 }
 0x1d6   : > { %v3020_v19 = vrot.slane %v3018_v21, 7  ;;  %v3719_v13 = vor.u32 %v3718_v30, %v8720_v56 }
 0x1d7   : > { %v1788_v50 = vpop.f32.mrf.mxu2  ;;  %v3051_v30 = vrot.slane %v3049_v6, 7  ;;  %v7339_v6 = vld [vmem:[#allocation2 + $0x14] sm:$0xff] }
 0x1d8   : > { %2026 = vmatmul.bf16.gmra.mxu3 %v1882_v46  ;;  %3309 = vmatmul.bf16.gmra.mxu0 %v3181_v61  ;;  %v2254_v46 = vrot.slane %v2252_v16, 5  ;;  %v3025_v21 = vrot.slane %v3020_v19, 4  ;;  %v1866_v61 = vunpack.c.l.b16 %v1560_v38  ;;  %v3709_v16 = vor.u32 %v3708_v57, %v3705_v49  ;;  %v3677_v31 = vld [vmem:[#allocation2 + $0x8c] sm:$0x1] }
 0x1d9   : > { %v3720_v57 = vrot.slane %v3719_v13, 4 }
 0x1da   : > { %v3033_v59 = vsel %vm8349_vm7, %v3025_v21, %v3032_v41  ;;  %v2255_v7 = vsel %vm8507_vm10, %v2250_v42, %v2254_v46  ;;  %v1883_v26 = vpack.c.b16 %v1867_v4, %v1866_v61  ;;  %v3040_v42 = vshrl.u32 %v2759_v23, 16  ;;  %v2058_v46 = vld [vmem:[#allocation2 + $0x74] sm:$0xf] }
 0x1db   : > { %v1987_v14 = vpop.f32.mrf.mxu3  ;;  %v1957_v17 = vpop.f32.mrf.mxu1  ;;  %v3162_v18 = vunpack.c.l.b16 %v3033_v59  ;;  %v2060_v59 = vld [vmem:[#allocation2 + $0x7c] sm:$0x1]  ;;  %v2260_v4 = vshll.u32 %v2058_v46, 16 }
 0x1dc   : > { %v8712_v1 = vadd.f32 %v1987_v14, %v8676_v12  ;;  %v8716_v33 = vadd.f32 %v1957_v17, %v8572_v51  ;;  %1830 = vmatmul.bf16.gmra.mxu2 %v7314_v37  ;;  %v3023_v12 = vor.u32 %v3021_v24, %v3020_v19  ;;  %v2240_v51 = vrot.slane %v2239_v45, 4 }
 0x1dd   : > { %v8718_v60 = vpop.f32.mrf.mxu0  ;;  %v3722_v19 = vshll.u32 %v3656_v63, 16  ;;  %v2502_v14 = vunpack.c.l.b16 %v2255_v7  ;;  %v2257_v63 = vshrl.u32 %v2058_v46, 16 }
 0x1de   : > { %2634 = vmatmul.bf16.gmra.mxu1 %v2526_v3  ;;  %v3024_v48 = vsel %vm8349_vm7, %v6883_v40, %v3023_v12  ;;  %v2059_v3 = vld [vmem:[#allocation2 + $0x78] sm:$0xf]  ;;  %v2245_v38 = vsel %vm8507_vm10, %v2240_v51, %v8697_v53  ;;  %v3710_v53 = vrot.slane %v3709_v16, 4  ;;  %v2758_v40 = vld [vmem:[#allocation2 + $0xd0] sm:$0x8]  ;;  %v3052_v16 = vshll.u32 %v2760_v9, 16 }
 0x1df   : > { %v1791_v0 = vpop.f32.mrf.mxu2  ;;  %v3161_v34 = vunpack.c.l.b16 %v3024_v48  ;;  %v2266_v37 = vshll.u32 %v2059_v3, 16  ;;  %v2270_v24 = vshrl.u32 %v2059_v3, 16  ;;  %v2501_v17 = vunpack.c.l.b16 %v2245_v38  ;;  %v3657_v12 = vld [vmem:[#allocation2 + $0x24] sm:$0xf] }
 0x1e0   : > { %v3715_v52 = vsel %vm8507_vm10, %v3710_v53, %v8720_v56  ;;  %v3035_v11 = vshrl.u32 %v2758_v40, 16  ;;  %v3042_v48 = vrot.slane %v3040_v42, 7  ;;  %v3727_v3 = vshrl.u32 %v3657_v12, 16  ;;  %v8753_v42 = vld [vmem:[#allocation2 + $0xe4] sm:$0xf]  ;;  %v7417_v40 = vld [vmem:[#allocation11 + $0x230] sm:$0xff] }
 0x1e1   : > { %v3182_v49 = vpack.c.b16 %v3162_v18, %v3161_v34  ;;  %v2527_v21 = vpack.c.b16 %v2502_v14, %v2501_v17  ;;  %v8744_v51 = vrot.slane %v2266_v37, 5  ;;  %v2272_v7 = vrot.slane %v2270_v24, 4  ;;  %5831 = vmatpush.bf16.msra.mxu2 %v7417_v40  ;;  %v7409_v40 = vld [vmem:[#allocation11 + $0x1f0] sm:$0xff] }
 0x1e2   : > { %v3730_v56 = vshll.u32 %v3657_v12, 16  ;;  %v2259_v9 = vrot.slane %v2257_v63, 4  ;;  %v2262_v24 = vrot.slane %v2260_v4, 5  ;;  %v2276_v53 = vshll.u32 %v2060_v59, 16  ;;  %v3659_v59 = vld [vmem:[#allocation2 + $0x2c] sm:$0x1]  ;;  %5149 = vmatpush.bf16.msra.mxu0 %v7409_v40 }
 0x1e3   : > { %v1989_v8 = vpop.f32.mrf.mxu3  ;;  %v1959_v25 = vpop.f32.mrf.mxu1  ;;  %v2273_v17 = vor.u32 %v2272_v7, %v8744_v51  ;;  %v7401_v7 = vld [vmem:[#allocation11 + $0x1b0] sm:$0xff] }
 0x1e4   : > { %v8734_v20 = vadd.f32 %v1989_v8, %v1788_v50  ;;  %v8737_v41 = vadd.f32 %v1959_v25, %v8589_v29  ;;  %v3724_v50 = vrot.slane %v3722_v19, 5  ;;  %v3658_v29 = vld [vmem:[#allocation2 + $0x28] sm:$0xf]  ;;  %v1141_v8 = vld [vmem:[#allocation2 + $0x9c] sm:$0x1]  ;;  %v3043_v25 = vshll.u32 %v2759_v23, 16  ;;  %4867 = vmatpush.bf16.msrb.mxu1 %v7401_v7 }
 0x1e5   : > { %v8739_v45 = vpop.f32.mrf.mxu0  ;;  %v3736_v13 = vshll.u32 %v3658_v29, 16  ;;  %v1142_v19 = vsel %vm8276_vm5, 0, %v1141_v8  ;;  %v3740_v34 = vshrl.u32 %v3658_v29, 16  ;;  %v3047_v23 = vrot.slane %v3042_v48, 4  ;;  %v2761_v8 = vld [vmem:[#allocation2 + $0xe0] sm:$0x8] }
 0x1e6   : > { %9817 = vst [vmem:[#allocation31_spill] sm:$0xff] %v8739_v45  ;;  %v3725_v38 = vsel %vm8507_vm10, %v3720_v57, %v3724_v50  ;;  %v3045_v57 = vor.u32 %v3043_v25, %v3042_v48  ;;  %v8760_v50 = vld [vmem:[#allocation2 + $0xe8] sm:$0xf]  ;;  %v3732_v63 = vrot.slane %v3730_v56, 5  ;;  %v3062_v48 = vshrl.u32 %v8753_v42, 16 }
 0x1e7   : > { %v1793_v61 = vpop.f32.mrf.mxu2  ;;  %1143 = vst [vmem:[#allocation2 + $0x9c] sm:$0x1] %v1142_v19  ;;  %v4104_v12 = vunpack.c.l.b16 %v3725_v38  ;;  %v8764_v4 = vrot.slane %v3736_v13, 5  ;;  %v2274_v38 = vrot.slane %v2273_v17, 4  ;;  %v2278_v19 = vrot.slane %v2276_v53, 5 }
 0x1e8   : > { %2031 = vmatmul.bf16.gmra.mxu3 %v1883_v26  ;;  %3314 = vmatmul.bf16.gmra.mxu0 %v3182_v49  ;;  %v3054_v26 = vor.u32 %v3052_v16, %v3051_v30  ;;  %v3729_v30 = vrot.slane %v3727_v3, 4  ;;  %v2263_v3 = vor.u32 %v2262_v24, %v2259_v9  ;;  %v3746_v25 = vshll.u32 %v3659_v59, 16  ;;  %v3660_v17 = vld [vmem:[#allocation2 + $0x34] sm:$0xf]  ;;  %v2061_v59 = vld [vmem:[#allocation2 + $0x84] sm:$0xf] }
 0x1e9   : > { %v3065_v9 = vshll.u32 %v8753_v42, 16  ;;  %v1160_v42 = vsel %vm8276_vm5, 0, %v1159_v27  ;;  %v1144_v27 = vld [vmem:[#allocation2 + $0xac] sm:$0x1] }
 0x1ea   : > { %v3055_v29 = vsel %vm8349_vm7, %v3047_v23, %v3054_v26  ;;  %v2062_v23 = vld [vmem:[#allocation2 + $0x88] sm:$0xf]  ;;  %1161 = vst [vmem:[#allocation2 + $0xfc] sm:$0x1] %v1160_v42 }
 0x1eb   : > { %v1992_v18 = vpop.f32.mrf.mxu3  ;;  %v1962_v37 = vpop.f32.mrf.mxu1 }
 0x1ec   : > { %v8750_v14 = vadd.f32 %v1992_v18, %v1791_v0  ;;  %v8756_v46 = vadd.f32 %v1962_v37, %v8609_v10  ;;  %3541 = vmatmul.bf16.vlgmr.msrb.gmra.mxu2 %v7339_v6  ;;  %v6884_v0 = vrot.slane %v3035_v11, 11  ;;  %v3742_v10 = vrot.slane %v3740_v34, 4 }
 0x1ed   : > { %v8758_v49 = vpop.f32.mrf.mxu0  ;;  %v4103_v11 = vunpack.c.l.b16 %v3715_v52  ;;  %v3071_v18 = vshrl.u32 %v8760_v50, 16  ;;  %v3164_v6 = vunpack.c.l.b16 %v3055_v29  ;;  %v3733_v34 = vor.u32 %v3732_v63, %v3729_v30 }
 0x1ee   : > { %9818 = vst [vmem:[#allocation32_spill] sm:$0xff] %v8758_v49  ;;  %2639 = vmatmul.bf16.gmra.mxu1 %v2527_v21  ;;  %v3046_v21 = vsel %vm8349_vm7, %v6884_v0, %v3045_v57  ;;  %v3743_v52 = vor.u32 %v3742_v10, %v8764_v4  ;;  %v3057_v37 = vshrl.u32 %v2761_v8, 16  ;;  %v3064_v0 = vrot.slane %v3062_v48, 7 }
 0x1ef   : > { %v1796_v16 = vpop.f32.mrf.mxu2  ;;  %v4135_v13 = vpack.c.b16 %v4104_v12, %v4103_v11  ;;  %v3163_v45 = vunpack.c.l.b16 %v3046_v21  ;;  %v3073_v24 = vrot.slane %v3071_v18, 7  ;;  %v2279_v12 = vsel %vm8507_vm10, %v2274_v38, %v2278_v19  ;;  %v3661_v18 = vld [vmem:[#allocation2 + $0x38] sm:$0xf] }
 0x1f0   : > { %v3074_v30 = vshll.u32 %v8760_v50, 16  ;;  %v2290_v63 = vshll.u32 %v2062_v23, 16  ;;  %v2294_v10 = vshrl.u32 %v2062_v23, 16  ;;  %v3734_v7 = vrot.slane %v3733_v34, 4 }
 0x1f1   : > { %v3183_v29 = vpack.c.b16 %v3164_v6, %v3163_v45  ;;  %v3744_v50 = vrot.slane %v3743_v52, 4  ;;  %v6885_v48 = vrot.slane %v3057_v37, 11  ;;  %v3067_v45 = vor.u32 %v3065_v9, %v3064_v0  ;;  %v2063_v52 = vld [vmem:[#allocation2 + $0x8c] sm:$0x1] }
 0x1f2   : > { %v2504_v21 = vunpack.c.l.b16 %v2279_v12  ;;  %v3076_v38 = vor.u32 %v3074_v30, %v3073_v24  ;;  %v2281_v19 = vshrl.u32 %v2061_v59, 16  ;;  %v2284_v6 = vshll.u32 %v2061_v59, 16 }
 0x1f3   : > { %v1994_v56 = vpop.f32.mrf.mxu3  ;;  %v1964_v49 = vpop.f32.mrf.mxu1  ;;  %v2296_v34 = vrot.slane %v2294_v10, 4  ;;  %v1145_v23 = vsel %vm8276_vm5, 0, %v1144_v27  ;;  %v3754_v37 = vshll.u32 %v3660_v17, 16  ;;  %v3760_v9 = vshll.u32 %v3661_v18, 16 }
 0x1f4   : > { %v8770_v26 = vadd.f32 %v1994_v56, %v1793_v61  ;;  %v8775_v53 = vadd.f32 %v1964_v49, %v8641_v62  ;;  %v2264_v61 = vrot.slane %v2263_v3, 4  ;;  %v3748_v62 = vrot.slane %v3746_v25, 5  ;;  %1146 = vst [vmem:[#allocation2 + $0xac] sm:$0x1] %v1145_v23 }
 0x1f5   : > { %v8777_v57 = vpop.f32.mrf.mxu0  ;;  %v3751_v49 = vshrl.u32 %v3660_v17, 16  ;;  %v3069_v3 = vrot.slane %v3064_v0, 4  ;;  %v8787_v25 = vrot.slane %v2290_v63, 5  ;;  %v3739_v24 = vsel %vm8507_vm10, %v3734_v7, %v8764_v4  ;;  %v2765_v63 = vld [vmem:[#allocation2 + $0xf4] sm:$0xf] }
 0x1f6   : > { %9819 = vst [vmem:[#allocation33_spill] sm:$0xff] %v8777_v57  ;;  %v2269_v8 = vsel %vm8507_vm10, %v2264_v61, %v8744_v51  ;;  %v3749_v61 = vsel %vm8507_vm10, %v3744_v50, %v3748_v62  ;;  %v3764_v12 = vshrl.u32 %v3661_v18, 16  ;;  %v3068_v17 = vsel %vm8349_vm7, %v6885_v48, %v3067_v45  ;;  %v2766_v62 = vld [vmem:[#allocation2 + $0xf8] sm:$0xf]  ;;  %v3662_v48 = vld [vmem:[#allocation2 + $0x3c] sm:$0x1] }
 0x1f7   : > { %v1798_v11 = vpop.f32.mrf.mxu2  ;;  %v2503_v51 = vunpack.c.l.b16 %v2269_v8  ;;  %v3077_v59 = vsel %vm8349_vm7, %v3069_v3, %v3076_v38  ;;  %v2283_v10 = vrot.slane %v2281_v19, 4  ;;  %v2286_v4 = vrot.slane %v2284_v6, 5  ;;  %v7408_v3 = vld [vmem:[#allocation11 + $0x1e8] sm:$0xff]  ;;  %v2764_v19 = vld [vmem:[#allocation2 + $0xf0] sm:$0x8] }
 0x1f8   : > { %4223 = vmatmul.bf16.vlgmr.msrb.gmra.mxu3 %v4135_v13  ;;  %3319 = vmatmul.bf16.gmra.mxu0 %v3183_v29  ;;  %v7340_v13 = vld [vmem:[#allocation2 + $0x24] sm:$0xff]  ;;  %v2297_v42 = vor.u32 %v2296_v34, %v8787_v25  ;;  %v2300_v7 = vshll.u32 %v2063_v52, 16  ;;  %v3753_v8 = vrot.slane %v3751_v49, 4  ;;  %v3756_v50 = vrot.slane %v3754_v37, 5 }
 0x1f9   : > { %v8808_v18 = vrot.slane %v3760_v9, 5  ;;  %v3165_v27 = vunpack.c.l.b16 %v3068_v17  ;;  %v3766_v45 = vrot.slane %v3764_v12, 4  ;;  %v4105_v38 = vunpack.c.l.b16 %v3739_v24  ;;  %5150 = vmatpush.bf16.msra.mxu0 %v7408_v3  ;;  %v3664_v3 = vld [vmem:[#allocation2 + $0x48] sm:$0xf] }
 0x1fa   : > { %v3093_v6 = vshrl.u32 %v2766_v62, 16  ;;  %v2287_v34 = vor.u32 %v2286_v4, %v2283_v10  ;;  %v2302_v52 = vrot.slane %v2300_v7, 5  ;;  %v3757_v37 = vor.u32 %v3756_v50, %v3753_v8  ;;  %v2064_v8 = vld [vmem:[#allocation2 + $0x94] sm:$0xf] }
 0x1fb   : > { %v1997_v56 = vpop.f32.mrf.mxu3  ;;  %v1967_v0 = vpop.f32.mrf.mxu1  ;;  %v3770_v9 = vshll.u32 %v3662_v48, 16  ;;  %v3767_v12 = vor.u32 %v3766_v45, %v8808_v18  ;;  %v3087_v57 = vshll.u32 %v2765_v63, 16  ;;  %v3096_v4 = vshll.u32 %v2766_v62, 16 }
 0x1fc   : > { %v8791_v40 = vadd.f32 %v1997_v56, %v1796_v16  ;;  %v8799_v30 = vadd.f32 %v1967_v0, %v8662_v54  ;;  %3546 = vmatmul.bf16.gmra.mxu2 %v7340_v13  ;;  %v2528_v16 = vpack.c.b16 %v2504_v21, %v2503_v51  ;;  %v4106_v54 = vunpack.c.l.b16 %v3749_v61  ;;  %v2065_v61 = vld [vmem:[#allocation2 + $0x98] sm:$0xf] }
 0x1fd   : > { %v8801_v29 = vpop.f32.mrf.mxu0  ;;  %v3166_v56 = vunpack.c.l.b16 %v3077_v59  ;;  %v3084_v13 = vshrl.u32 %v2765_v63, 16  ;;  %v2298_v51 = vrot.slane %v2297_v42, 4  ;;  %v3079_v59 = vshrl.u32 %v2764_v19, 16  ;;  %v7407_v42 = vld [vmem:[#allocation11 + $0x1e0] sm:$0xff] }
 0x1fe   : > { %9820 = vst [vmem:[#allocation34_spill] sm:$0xff] %v8801_v29  ;;  %2644 = vmatmul.bf16.gmra.mxu1 %v2528_v16  ;;  %v4136_v49 = vpack.c.b16 %v4106_v54, %v4105_v38  ;;  %v3095_v10 = vrot.slane %v3093_v6, 7  ;;  %v2314_v50 = vshll.u32 %v2065_v61, 16  ;;  %v3772_v48 = vrot.slane %v3770_v9, 5  ;;  %5151 = vmatpush.bf16.msra.mxu0 %v7407_v42  ;;  %v7406_v38 = vld [vmem:[#allocation11 + $0x1d8] sm:$0xff] }
 0x1ff   : > { %v1801_v21 = vpop.f32.mrf.mxu2  ;;  %v3184_v17 = vpack.c.b16 %v3166_v56, %v3165_v27  ;;  %v3086_v29 = vrot.slane %v3084_v13, 7  ;;  %v2303_v54 = vsel %vm8507_vm10, %v2298_v51, %v2302_v52  ;;  %v2318_v27 = vshrl.u32 %v2065_v61, 16  ;;  %v3663_v51 = vld [vmem:[#allocation2 + $0x44] sm:$0xf]  ;;  %v1147_v52 = vld [vmem:[#allocation2 + $0xbc] sm:$0x1] }
 0x200   : > { %v3758_v56 = vrot.slane %v3757_v37, 4  ;;  %v3768_v62 = vrot.slane %v3767_v12, 4  ;;  %v6886_v45 = vrot.slane %v3079_v59, 11  ;;  %v2506_v19 = vunpack.c.l.b16 %v2303_v54  ;;  %v2066_v59 = vld [vmem:[#allocation2 + $0x9c] sm:$0x1] }
 0x201   : > { %v3091_v13 = vrot.slane %v3086_v29, 4  ;;  %v3089_v6 = vor.u32 %v3087_v57, %v3086_v29  ;;  %v2308_v37 = vshll.u32 %v2064_v8, 16  ;;  %v8825_v9 = vrot.slane %v2314_v50, 5 }
 0x202   : > { %v2320_v61 = vrot.slane %v2318_v27, 4  ;;  %v3784_v42 = vshll.u32 %v3664_v3, 16  ;;  %5152 = vmatpush.bf16.msra.mxu0 %v7406_v38  ;;  %v3763_v29 = vsel %vm8507_vm10, %v3758_v56, %v8808_v18  ;;  %v2768_v27 = vld [vmem:[#allocation2 + $0x104] sm:$0xf]  ;;  %v7416_v38 = vld [vmem:[#allocation11 + $0x228] sm:$0xff] }
 0x203   : > { %v1999_v23 = vpop.f32.mrf.mxu3  ;;  %v1969_v16 = vpop.f32.mrf.mxu1  ;;  %v2310_v56 = vrot.slane %v2308_v37, 5  ;;  %5832 = vmatpush.bf16.msra.mxu2 %v7416_v38  ;;  %v7404_v37 = vld [vmem:[#allocation11 + $0x1c8] sm:$0xff] }
 0x204   : > { %v8810_v0 = vadd.f32 %v1999_v23, %v1798_v11  ;;  %v8814_v24 = vadd.f32 %v1969_v16, %v8695_v47  ;;  %v2288_v11 = vrot.slane %v2287_v34, 4  ;;  %v3098_v23 = vor.u32 %v3096_v4, %v3095_v10 }
 0x205   : > { %v8816_v7 = vpop.f32.mrf.mxu0  ;;  %v2305_v34 = vshrl.u32 %v2064_v8, 16  ;;  %v1148_v16 = vsel %vm8276_vm5, 0, %v1147_v52  ;;  %v3773_v10 = vsel %vm8507_vm10, %v3768_v62, %v3772_v48  ;;  %v3775_v4 = vshrl.u32 %v3663_v51, 16 }
 0x206   : > { %9821 = vst [vmem:[#allocation35_spill] sm:$0xff] %v8816_v7  ;;  %v2293_v63 = vsel %vm8507_vm10, %v2288_v11, %v8787_v25  ;;  %v3788_v11 = vshrl.u32 %v3664_v3, 16  ;;  %v3090_v8 = vsel %vm8349_vm7, %v6886_v45, %v3089_v6  ;;  %v3099_v50 = vsel %vm8349_vm7, %v3091_v13, %v3098_v23  ;;  %v2769_v3 = vld [vmem:[#allocation2 + $0x108] sm:$0xf] }
 0x207   : > { %v8820_v47 = vpop.f32.mrf.mxu2  ;;  %v2505_v12 = vunpack.c.l.b16 %v2293_v63  ;;  %1149 = vst [vmem:[#allocation2 + $0xbc] sm:$0x1] %v1148_v16  ;;  %v7405_v63 = vld [vmem:[#allocation11 + $0x1d0] sm:$0xff]  ;;  %v2307_v18 = vrot.slane %v2305_v34, 4  ;;  %v2321_v48 = vor.u32 %v2320_v61, %v8825_v9  ;;  %v2324_v62 = vshll.u32 %v2066_v59, 16 }
 0x208   : > { %4228 = vmatmul.bf16.gmra.mxu3 %v4136_v49  ;;  %3324 = vmatmul.bf16.gmra.mxu0 %v3184_v17  ;;  %v7341_v17 = vld [vmem:[#allocation2 + $0x34] sm:$0xff]  ;;  %v3778_v52 = vshll.u32 %v3663_v51, 16  ;;  %v3167_v13 = vunpack.c.l.b16 %v3090_v8  ;;  %v3168_v23 = vunpack.c.l.b16 %v3099_v50  ;;  %v3665_v16 = vld [vmem:[#allocation2 + $0x4c] sm:$0x1]  ;;  %v3106_v34 = vshrl.u32 %v2768_v27, 16 }
 0x209   : > { %5153 = vmatpush.bf16.msra.mxu0 %v7405_v63  ;;  %v4107_v61 = vunpack.c.l.b16 %v3763_v29  ;;  %v2322_v51 = vrot.slane %v2321_v48, 4  ;;  %v3794_v50 = vshll.u32 %v3665_v16, 16  ;;  %v2068_v7 = vld [vmem:[#allocation2 + $0xa8] sm:$0xf]  ;;  %v3118_v48 = vshll.u32 %v2769_v3, 16 }
 0x20a   : > { %v3780_v8 = vrot.slane %v3778_v52, 5  ;;  %v3185_v38 = vpack.c.b16 %v3168_v23, %v3167_v13  ;;  %v2067_v52 = vld [vmem:[#allocation2 + $0xa4] sm:$0xf]  ;;  %v2338_v16 = vshll.u32 %v2068_v7, 16 }
 0x20b   : > { %v2002_v49 = vpop.f32.mrf.mxu3  ;;  %v2610_v57 = vpop.f32.mrf.mxu1  ;;  %v3796_v23 = vrot.slane %v3794_v50, 5 }
 0x20c   : > { %v8829_v25 = vadd.f32 %v2002_v49, %v1801_v21  ;;  %v8837_v54 = vadd.f32 %v2610_v57, %v8716_v33  ;;  %3551 = vmatmul.bf16.gmra.mxu2 %v7341_v17  ;;  %v2529_v21 = vpack.c.b16 %v2506_v19, %v2505_v12  ;;  %v4108_v33 = vunpack.c.l.b16 %v3773_v10  ;;  %v7400_v19 = vld [vmem:[#allocation11 + $0x1a8] sm:$0xff] }
 0x20d   : > { %v8844_v49 = vrot.slane %v3784_v42, 5  ;;  %v8846_v45 = vpop.f32.mrf.mxu0  ;;  %v3790_v17 = vrot.slane %v3788_v11, 4  ;;  %v3115_v12 = vshrl.u32 %v2769_v3, 16  ;;  %4868 = vmatpush.bf16.msrb.mxu1 %v7400_v19  ;;  %v2311_v57 = vor.u32 %v2310_v56, %v2307_v18  ;;  %5154 = vmatpush.bf16.msra.mxu0 %v7404_v37 }
 0x20e   : > { %9822 = vst [vmem:[#allocation36_spill] sm:$0xff] %v8829_v25  ;;  %2649 = vmatmul.bf16.gmra.mxu1 %v2529_v21  ;;  %v2326_v42 = vrot.slane %v2324_v62, 5  ;;  %v3777_v10 = vrot.slane %v3775_v4, 4  ;;  %v2767_v21 = vld [vmem:[#allocation2 + $0x100] sm:$0x8]  ;;  %v3108_v25 = vrot.slane %v3106_v34, 7 }
 0x20f   : > { %9823 = vst [vmem:[#allocation37_spill] sm:$0xff] %v8846_v45  ;;  %v1806_v6 = vpop.f32.mrf.mxu2  ;;  %v4137_v45 = vpack.c.b16 %v4108_v33, %v4107_v61  ;;  %v3791_v29 = vor.u32 %v3790_v17, %v8844_v49  ;;  %v3109_v19 = vshll.u32 %v2768_v27, 16  ;;  %v3101_v56 = vshrl.u32 %v2767_v21, 16  ;;  %v7403_v62 = vld [vmem:[#allocation11 + $0x1c0] sm:$0xff] }
 0x210   : > { %v3117_v4 = vrot.slane %v3115_v12, 7  ;;  %v2327_v33 = vsel %vm8507_vm10, %v2322_v51, %v2326_v42  ;;  %v2342_v37 = vshrl.u32 %v2068_v7, 16  ;;  %v3781_v13 = vor.u32 %v3780_v8, %v3777_v10  ;;  %v3667_v51 = vld [vmem:[#allocation2 + $0x58] sm:$0xf]  ;;  %v1150_v42 = vld [vmem:[#allocation2 + $0xcc] sm:$0x1] }
 0x211   : > { %5155 = vmatpush.bf16.msra.mxu0 %v7403_v62  ;;  %v3792_v17 = vrot.slane %v3791_v29, 4  ;;  %v3111_v3 = vor.u32 %v3109_v19, %v3108_v25  ;;  %v3113_v34 = vrot.slane %v3108_v25, 4  ;;  %v2508_v61 = vunpack.c.l.b16 %v2327_v33 }
 0x212   : > { %v6887_v12 = vrot.slane %v3101_v56, 11  ;;  %v2332_v10 = vshll.u32 %v2067_v52, 16  ;;  %v8862_v21 = vrot.slane %v2338_v16, 5  ;;  %v2344_v8 = vrot.slane %v2342_v37, 4 }
 0x213   : > { %v2004_v59 = vpop.f32.mrf.mxu3  ;;  %v2612_v11 = vpop.f32.mrf.mxu1  ;;  %v1151_v50 = vsel %vm8276_vm5, 0, %v1150_v42  ;;  %v3782_v19 = vrot.slane %v3781_v13, 4  ;;  %v3797_v56 = vsel %vm8507_vm10, %v3792_v17, %v3796_v23  ;;  %v3812_v62 = vshrl.u32 %v3667_v51, 16 }
 0x214   : > { %v8849_v63 = vadd.f32 %v2004_v59, %v8820_v47  ;;  %v8853_v18 = vadd.f32 %v2612_v11, %v8737_v41  ;;  %v2312_v47 = vrot.slane %v2311_v57, 4  ;;  %v3120_v59 = vor.u32 %v3118_v48, %v3117_v4  ;;  %v7342_v11 = vld [vmem:[#allocation2 + $0x44] sm:$0xff]  ;;  %1152 = vst [vmem:[#allocation2 + $0xcc] sm:$0x1] %v1151_v50  ;;  %v3666_v4 = vld [vmem:[#allocation2 + $0x54] sm:$0xf] }
 0x215   : > { %v2329_v57 = vshrl.u32 %v2067_v52, 16  ;;  %v8860_v7 = vpop.f32.mrf.mxu0  ;;  %v3808_v48 = vshll.u32 %v3667_v51, 16  ;;  %v2334_v37 = vrot.slane %v2332_v10, 5  ;;  %v2345_v13 = vor.u32 %v2344_v8, %v8862_v21 }
 0x216   : > { %v2317_v41 = vsel %vm8507_vm10, %v2312_v47, %v8825_v9  ;;  %9824 = vst [vmem:[#allocation38_spill] sm:$0xff] %v8860_v7  ;;  %v3121_v52 = vsel %vm8349_vm7, %v3113_v34, %v3120_v59  ;;  %v3799_v23 = vshrl.u32 %v3666_v4, 16  ;;  %v3802_v51 = vshll.u32 %v3666_v4, 16  ;;  %v3668_v34 = vld [vmem:[#allocation2 + $0x5c] sm:$0x1] }
 0x217   : > { %v1808_v27 = vpop.f32.mrf.mxu2  ;;  %v2507_v25 = vunpack.c.l.b16 %v2317_v41  ;;  %v2331_v16 = vrot.slane %v2329_v57, 4  ;;  %v3814_v42 = vrot.slane %v3812_v62, 4  ;;  %v2346_v10 = vrot.slane %v2345_v13, 4 }
 0x218   : > { %4233 = vmatmul.bf16.gmra.mxu3 %v4137_v45  ;;  %3329 = vmatmul.bf16.gmra.mxu0 %v3185_v38  ;;  %v2069_v38 = vld [vmem:[#allocation2 + $0xac] sm:$0x1] }
 0x219   : > { %v2530_v33 = vpack.c.b16 %v2508_v61, %v2507_v25  ;;  %v2348_v41 = vshll.u32 %v2069_v38, 16  ;;  %v8881_v61 = vrot.slane %v3808_v48, 5  ;;  %v2335_v57 = vor.u32 %v2334_v37, %v2331_v16  ;;  %v2071_v25 = vld [vmem:[#allocation2 + $0xb8] sm:$0xf] }
 0x21a   : > { %v3818_v48 = vshll.u32 %v3668_v34, 16  ;;  %v2362_v16 = vshll.u32 %v2071_v25, 16  ;;  %v2366_v37 = vshrl.u32 %v2071_v25, 16 }
 0x21b   : > { %v2007_v45 = vpop.f32.mrf.mxu3  ;;  %v2615_v29 = vpop.f32.mrf.mxu1  ;;  %v2350_v8 = vrot.slane %v2348_v41, 5  ;;  %v3815_v4 = vor.u32 %v3814_v42, %v8881_v61  ;;  %v5301_v32 = vld [vmem:[#allocation2 + $0xcc] sm:$0x1] }
 0x21c   : > { %v8866_v9 = vadd.f32 %v2007_v45, %v1806_v6  ;;  %v8871_v47 = vadd.f32 %v2615_v29, %v8756_v46  ;;  %3556 = vmatmul.bf16.gmra.mxu2 %v7342_v11  ;;  %v3112_v6 = vsel %vm8349_vm7, %v6887_v12, %v3111_v3  ;;  %v3787_v46 = vsel %vm8507_vm10, %v3782_v19, %v8844_v49 }
 0x21d   : > { %v4110_v3 = vunpack.c.l.b16 %v3797_v56  ;;  %v3169_v12 = vunpack.c.l.b16 %v3112_v6  ;;  %v3170_v45 = vunpack.c.l.b16 %v3121_v52  ;;  %v4109_v11 = vunpack.c.l.b16 %v3787_v46  ;;  %v8885_v38 = vpop.f32.mrf.mxu0  ;;  %v2070_v52 = vld [vmem:[#allocation2 + $0xb4] sm:$0xf] }
 0x21e   : > { %2654 = vmatmul.bf16.gmra.mxu1 %v2530_v33  ;;  %9825 = vst [vmem:[#allocation39_spill] sm:$0xff] %v8885_v38  ;;  %v3801_v49 = vrot.slane %v3799_v23, 4  ;;  %v3804_v19 = vrot.slane %v3802_v51, 5  ;;  %v2336_v6 = vrot.slane %v2335_v57, 4  ;;  %v3816_v46 = vrot.slane %v3815_v4, 4 }
 0x21f   : > { %v1811_v17 = vpop.f32.mrf.mxu2  ;;  %v4138_v62 = vpack.c.b16 %v4110_v3, %v4109_v11  ;;  %v3186_v33 = vpack.c.b16 %v3170_v45, %v3169_v12  ;;  %v2353_v42 = vshrl.u32 %v2070_v52, 16  ;;  %v1153_v3 = vld [vmem:[#allocation2 + $0xdc] sm:$0x1]  ;;  %v2356_v45 = vshll.u32 %v2070_v52, 16  ;;  %v3670_v57 = vld [vmem:[#allocation2 + $0x68] sm:$0xf] }
 0x220   : > { %v2341_v41 = vsel %vm8507_vm10, %v2336_v6, %v8862_v21  ;;  %v3805_v23 = vor.u32 %v3804_v19, %v3801_v49  ;;  %v8896_v34 = vrot.slane %v2362_v16, 5  ;;  %v7343_v11 = vld [vmem:[#allocation2 + $0x54] sm:$0xff]  ;;  %v2072_v21 = vld [vmem:[#allocation2 + $0xbc] sm:$0x1]  ;;  %v3836_v6 = vshrl.u32 %v3670_v57, 16 }
 0x221   : > { %v2509_v25 = vunpack.c.l.b16 %v2341_v41  ;;  %v2355_v52 = vrot.slane %v2353_v42, 4  ;;  %v2358_v16 = vrot.slane %v2356_v45, 5  ;;  %v2372_v41 = vshll.u32 %v2072_v21, 16 }
 0x222   : > { %v3806_v49 = vrot.slane %v3805_v23, 4  ;;  %v7399_v23 = vld [vmem:[#allocation11 + $0x1a0] sm:$0xff] }
 0x223   : > { %v2009_v59 = vpop.f32.mrf.mxu3  ;;  %v2617_v29 = vpop.f32.mrf.mxu1  ;;  %4869 = vmatpush.bf16.msrb.mxu1 %v7399_v23  ;;  %v2359_v45 = vor.u32 %v2358_v16, %v2355_v52 }
 0x224   : > { %v8883_v50 = vadd.f32 %v2009_v59, %v1808_v27  ;;  %v8889_v56 = vadd.f32 %v2617_v29, %v8775_v53  ;;  %v2351_v27 = vsel %vm8507_vm10, %v2346_v10, %v2350_v8  ;;  %v3820_v53 = vrot.slane %v3818_v48, 5 }
 0x225   : > { %v2510_v51 = vunpack.c.l.b16 %v2351_v27  ;;  %v2368_v59 = vrot.slane %v2366_v37, 4  ;;  %v1154_v10 = vsel %vm8276_vm5, 0, %v1153_v3  ;;  %v7415_v27 = vld [vmem:[#allocation11 + $0x220] sm:$0xff] }
 0x226   : > { %1155 = vst [vmem:[#allocation2 + $0xdc] sm:$0x1] %v1154_v10  ;;  %v3821_v19 = vsel %vm8507_vm10, %v3816_v46, %v3820_v53  ;;  %5833 = vmatpush.bf16.msra.mxu2 %v7415_v27 }
 0x227   : > { %v1813_v13 = vpop.f32.mrf.mxu2  ;;  %v2531_v48 = vpack.c.b16 %v2510_v51, %v2509_v25  ;;  %v2369_v37 = vor.u32 %v2368_v59, %v8896_v34  ;;  %v4112_v3 = vunpack.c.l.b16 %v3821_v19  ;;  %v2374_v59 = vrot.slane %v2372_v41, 5 }
 0x228   : > { %4238 = vmatmul.bf16.gmra.mxu3 %v4138_v62  ;;  %3334 = vmatmul.bf16.gmra.mxu0 %v3186_v33  ;;  %v3669_v62 = vld [vmem:[#allocation2 + $0x64] sm:$0xf]  ;;  %v3832_v33 = vshll.u32 %v3670_v57, 16  ;;  %v3838_v57 = vrot.slane %v3836_v6, 4  ;;  %v2360_v6 = vrot.slane %v2359_v45, 4 }
 0x229   : > { %v3823_v53 = vshrl.u32 %v3669_v62, 16  ;;  %v3826_v51 = vshll.u32 %v3669_v62, 16  ;;  %v2370_v10 = vrot.slane %v2369_v37, 4  ;;  %v2073_v37 = vld [vmem:[#allocation2 + $0xc4] sm:$0xf] }
 0x22a   : > { %v2377_v45 = vshrl.u32 %v2073_v37, 16 }
 0x22b   : > { %v2012_v12 = vpop.f32.mrf.mxu3  ;;  %v2620_v29 = vpop.f32.mrf.mxu1  ;;  %v3825_v27 = vrot.slane %v3823_v53, 4  ;;  %v2375_v52 = vsel %vm8507_vm10, %v2370_v10, %v2374_v59  ;;  %v2380_v10 = vshll.u32 %v2073_v37, 16 }
 0x22c   : > { %v8900_v8 = vadd.f32 %v2012_v12, %v1811_v17  ;;  %v8905_v4 = vadd.f32 %v2620_v29, %v8799_v30  ;;  %3561 = vmatmul.bf16.gmra.mxu2 %v7343_v11  ;;  %v8907_v17 = vpop.f32.mrf.mxu0  ;;  %v3811_v30 = vsel %vm8507_vm10, %v3806_v49, %v8881_v61  ;;  %v8913_v12 = vrot.slane %v3832_v33, 5  ;;  %v3671_v11 = vld [vmem:[#allocation2 + $0x6c] sm:$0x1]  ;;  %v2074_v29 = vld [vmem:[#allocation2 + $0xc8] sm:$0xf] }
 0x22d   : > { %9826 = vst [vmem:[#allocation40_spill] sm:$0xff] %v8907_v17  ;;  %v4111_v21 = vunpack.c.l.b16 %v3811_v30  ;;  %v3828_v17 = vrot.slane %v3826_v51, 5  ;;  %v3842_v62 = vshll.u32 %v3671_v11, 16  ;;  %v7379_v33 = vld [vmem:[#allocation2 + $0x24] sm:$0xff]  ;;  %v2386_v16 = vshll.u32 %v2074_v29, 16 }
 0x22e   : > { %2659 = vmatmul.bf16.gmra.mxu1 %v2531_v48  ;;  %v3839_v19 = vor.u32 %v3838_v57, %v8913_v12  ;;  %v2512_v30 = vunpack.c.l.b16 %v2375_v52  ;;  %v3673_v57 = vld [vmem:[#allocation2 + $0x78] sm:$0xf]  ;;  %v2382_v52 = vrot.slane %v2380_v10, 5 }
 0x22f   : > { %v1816_v46 = vpop.f32.mrf.mxu2  ;;  %v4139_v49 = vpack.c.b16 %v4112_v3, %v4111_v21  ;;  %v3829_v53 = vor.u32 %v3828_v17, %v3825_v27  ;;  %v3844_v3 = vrot.slane %v3842_v62, 5  ;;  %v8928_v59 = vrot.slane %v2386_v16, 5  ;;  %v3672_v62 = vld [vmem:[#allocation2 + $0x74] sm:$0xf] }
 0x230   : > { %v3840_v51 = vrot.slane %v3839_v19, 4  ;;  %v3860_v38 = vshrl.u32 %v3673_v57, 16 }
 0x231   : > { %v3830_v27 = vrot.slane %v3829_v53, 4 }
 0x232   : > { %v3845_v19 = vsel %vm8507_vm10, %v3840_v51, %v3844_v3 }
 0x233   : > { %v2014_v42 = vpop.f32.mrf.mxu3  ;;  %v2622_v48 = vpop.f32.mrf.mxu1  ;;  %v4114_v53 = vunpack.c.l.b16 %v3845_v19 }
 0x234   : > { %v8915_v25 = vadd.f32 %v2014_v42, %v1813_v13  ;;  %v8918_v61 = vadd.f32 %v2622_v48, %v8814_v24  ;;  %v2390_v13 = vshrl.u32 %v2074_v29, 16  ;;  %v8923_v41 = vpop.f32.mrf.mxu0  ;;  %v2365_v24 = vsel %vm8507_vm10, %v2360_v6, %v8896_v34  ;;  %v7344_v29 = vld [vmem:[#allocation2 + $0x64] sm:$0xff] }
 0x235   : > { %9827 = vst [vmem:[#allocation41_spill] sm:$0xff] %v8923_v41  ;;  %v2511_v48 = vunpack.c.l.b16 %v2365_v24  ;;  %v3856_v41 = vshll.u32 %v3673_v57, 16  ;;  %v2379_v6 = vrot.slane %v2377_v45, 4  ;;  %v3850_v24 = vshll.u32 %v3672_v62, 16 }
 0x236   : > { %v2392_v11 = vrot.slane %v2390_v13, 4  ;;  %v3835_v13 = vsel %vm8507_vm10, %v3830_v27, %v8913_v12 }
 0x237   : > { %v1818_v23 = vpop.f32.mrf.mxu2  ;;  %v2532_v17 = vpack.c.b16 %v2512_v30, %v2511_v48  ;;  %v8941_v57 = vrot.slane %v3856_v41, 5  ;;  %v3862_v30 = vrot.slane %v3860_v38, 4  ;;  %v2383_v45 = vor.u32 %v2382_v52, %v2379_v6 }
 0x238   : > { %4243 = vmatmul.bf16.gmra.mxu3 %v4139_v49  ;;  %5156 = vmatmul.bf16.vlgmr.msra.gmra.mxu0 %v7379_v33  ;;  %v2075_v49 = vld [vmem:[#allocation2 + $0xcc] sm:$0x1]  ;;  %v4113_v48 = vunpack.c.l.b16 %v3835_v13 }
 0x239   : > { %v2396_v16 = vshll.u32 %v2075_v49, 16  ;;  %v2077_v49 = vld [vmem:[#allocation2 + $0xd8] sm:$0xf]  ;;  %v3863_v27 = vor.u32 %v3862_v30, %v8941_v57 }
 0x23a   : > { %v4140_v19 = vpack.c.b16 %v4114_v53, %v4113_v48  ;;  %v2410_v52 = vshll.u32 %v2077_v49, 16 }
 0x23b   : > { %v2017_v42 = vpop.f32.mrf.mxu3  ;;  %v2625_v33 = vpop.f32.mrf.mxu1 }
 0x23c   : > { %v8930_v21 = vadd.f32 %v2017_v42, %v1816_v46  ;;  %v8933_v34 = vadd.f32 %v2625_v33, %v8570_v44  ;;  %3566 = vmatmul.bf16.gmra.mxu2 %v7344_v29  ;;  %v2393_v46 = vor.u32 %v2392_v11, %v8928_v59  ;;  %v3847_v44 = vshrl.u32 %v3672_v62, 16  ;;  %v3674_v42 = vld [vmem:[#allocation2 + $0x7c] sm:$0x1]  ;;  %v8943_v51 = vpop.f32.mrf.mxu0  ;;  %v7380_v62 = vld [vmem:[#allocation2 + $0x34] sm:$0xff] }
 0x23d   : > { %9828 = vst [vmem:[#allocation42_spill] sm:$0xff] %v8943_v51  ;;  %v2398_v11 = vrot.slane %v2396_v16, 5  ;;  %v3866_v41 = vshll.u32 %v3674_v42, 16  ;;  %v2384_v51 = vrot.slane %v2383_v45, 4  ;;  %v8956_v45 = vrot.slane %v2410_v52, 5 }
 0x23e   : > { %2664 = vmatmul.bf16.gmra.mxu1 %v2532_v17  ;;  %v2394_v10 = vrot.slane %v2393_v46, 4  ;;  %v3849_v12 = vrot.slane %v3847_v44, 4  ;;  %v3852_v17 = vrot.slane %v3850_v24, 5  ;;  %v2076_v46 = vld [vmem:[#allocation2 + $0xd4] sm:$0xf]  ;;  %v3864_v24 = vrot.slane %v3863_v27, 4 }
 0x23f   : > { %v1821_v37 = vpop.f32.mrf.mxu2  ;;  %v2389_v13 = vsel %vm8507_vm10, %v2384_v51, %v8928_v59  ;;  %v2401_v42 = vshrl.u32 %v2076_v46, 16 }
 0x240   : > { %v2399_v6 = vsel %vm8507_vm10, %v2394_v10, %v2398_v11  ;;  %v3853_v44 = vor.u32 %v3852_v17, %v3849_v12  ;;  %v3676_v11 = vld [vmem:[#allocation2 + $0x88] sm:$0xf]  ;;  %v3675_v17 = vld [vmem:[#allocation2 + $0x84] sm:$0xf] }
 0x241   : > { %v2514_v30 = vunpack.c.l.b16 %v2399_v6  ;;  %v3880_v6 = vshll.u32 %v3676_v11, 16  ;;  %v3884_v52 = vshrl.u32 %v3676_v11, 16 }
 0x242   : > { %v3854_v51 = vrot.slane %v3853_v44, 4 }
 0x243   : > { %v2019_v3 = vpop.f32.mrf.mxu3  ;;  %v2627_v33 = vpop.f32.mrf.mxu1  ;;  %v8973_v11 = vrot.slane %v3880_v6, 5 }
 0x244   : > { %v8945_v29 = vadd.f32 %v2019_v3, %v1818_v23  ;;  %v8949_v38 = vadd.f32 %v2627_v33, %v8587_v22  ;;  %v2414_v23 = vshrl.u32 %v2077_v49, 16  ;;  %v3868_v22 = vrot.slane %v3866_v41, 5  ;;  %v7345_v49 = vld [vmem:[#allocation2 + $0x74] sm:$0xff] }
 0x245   : > { %v2404_v3 = vshll.u32 %v2076_v46, 16  ;;  %v2513_v33 = vunpack.c.l.b16 %v2389_v13  ;;  %v2403_v46 = vrot.slane %v2401_v42, 4  ;;  %v2080_v42 = vld [vmem:[#allocation2 + $0xe8] sm:$0xf] }
 0x246   : > { %9829 = vst [vmem:[#allocation43_spill] sm:$0xff] %v8945_v29  ;;  %v2416_v10 = vrot.slane %v2414_v23, 4  ;;  %v8960_v29 = vpop.f32.mrf.mxu0  ;;  %v3869_v12 = vsel %vm8507_vm10, %v3864_v24, %v3868_v22  ;;  %v7414_v23 = vld [vmem:[#allocation11 + $0x218] sm:$0xff]  ;;  %v3859_v24 = vsel %vm8507_vm10, %v3854_v51, %v8941_v57  ;;  %v2434_v7 = vshll.u32 %v2080_v42, 16 }
 0x247   : > { %v1823_v16 = vpop.f32.mrf.mxu2  ;;  %9831 = vst [vmem:[#allocation45_spill] sm:$0xff] %v8960_v29  ;;  %v2406_v13 = vrot.slane %v2404_v3, 5  ;;  %5834 = vmatpush.bf16.msra.mxu2 %v7414_v23  ;;  %v7398_v22 = vld [vmem:[#allocation11 + $0x198] sm:$0xff] }
 0x248   : > { %4248 = vmatmul.bf16.gmra.mxu3 %v4140_v19  ;;  %5161 = vmatmul.bf16.gmra.mxu0 %v7380_v62  ;;  %v2078_v19 = vld [vmem:[#allocation2 + $0xdc] sm:$0x1]  ;;  %v1162_v62 = vld [vmem:[#allocation2 + $0x10c] sm:$0x1]  ;;  %v2417_v44 = vor.u32 %v2416_v10, %v8956_v45  ;;  %v4115_v10 = vunpack.c.l.b16 %v3859_v24  ;;  %v2438_v24 = vshrl.u32 %v2080_v42, 16 }
 0x249   : > { %v1163_v27 = vsel %vm8276_vm5, 0, %v1162_v62  ;;  %v4116_v62 = vunpack.c.l.b16 %v3869_v12  ;;  %4870 = vmatpush.bf16.msrb.mxu1 %v7398_v22  ;;  %v3890_v22 = vshll.u32 %v3677_v31, 16 }
 0x24a   : > { %1164 = vst [vmem:[#allocation2 + $0x10c] sm:$0x1] %v1163_v27  ;;  %v2418_v27 = vrot.slane %v2417_v44, 4 }
 0x24b   : > { %v2022_v53 = vpop.f32.mrf.mxu3  ;;  %v2630_v59 = vpop.f32.mrf.mxu1  ;;  %v4141_v12 = vpack.c.b16 %v4116_v62, %v4115_v10  ;;  %v3892_v42 = vrot.slane %v3890_v22, 5  ;;  %v2440_v10 = vrot.slane %v2438_v24, 4  ;;  %v3678_v22 = vld [vmem:[#allocation2 + $0x94] sm:$0xf]  ;;  %v7426_v24 = vld [vmem:[#allocation12 + $0x38] sm:$0xff] }
 0x24c   : > { %v8958_v48 = vadd.f32 %v2022_v53, %v1821_v37  ;;  %v8967_v41 = vadd.f32 %v2630_v59, %v8605_v2  ;;  %3571 = vmatmul.bf16.gmra.mxu2 %v7345_v49  ;;  %v2533_v37 = vpack.c.b16 %v2514_v30, %v2513_v33  ;;  %v2420_v53 = vshll.u32 %v2078_v19, 16  ;;  %v2079_v33 = vld [vmem:[#allocation2 + $0xe4] sm:$0xf]  ;;  %6071 = vmatpush.bf16.msra.mxu3 %v7426_v24 }
 0x24d   : > { %v3871_v49 = vshrl.u32 %v3675_v17, 16  ;;  %v3874_v30 = vshll.u32 %v3675_v17, 16  ;;  %v3886_v59 = vrot.slane %v3884_v52, 4  ;;  %v2407_v19 = vor.u32 %v2406_v13, %v2403_v46  ;;  %v7381_v13 = vld [vmem:[#allocation2 + $0x44] sm:$0xff] }
 0x24e   : > { %9830 = vst [vmem:[#allocation44_spill] sm:$0xff] %v8958_v48  ;;  %2669 = vmatmul.bf16.gmra.mxu1 %v2533_v37  ;;  %v2422_v37 = vrot.slane %v2420_v53, 5  ;;  %v2425_v57 = vshrl.u32 %v2079_v33, 16  ;;  %v2428_v51 = vshll.u32 %v2079_v33, 16  ;;  %v8981_v46 = vpop.f32.mrf.mxu0  ;;  %v8988_v33 = vrot.slane %v2434_v7, 5 }
 0x24f   : > { %v1826_v2 = vpop.f32.mrf.mxu2  ;;  %v3873_v48 = vrot.slane %v3871_v49, 4  ;;  %v3876_v17 = vrot.slane %v3874_v30, 5  ;;  %v3887_v52 = vor.u32 %v3886_v59, %v8973_v11  ;;  %9833 = vst [vmem:[#allocation47_spill] sm:$0xff] %v8981_v46  ;;  %v2408_v44 = vrot.slane %v2407_v19, 4 }
 0x250   : > { %v2427_v53 = vrot.slane %v2425_v57, 4  ;;  %v2430_v30 = vrot.slane %v2428_v51, 5  ;;  %v3679_v57 = vld [vmem:[#allocation2 + $0x98] sm:$0xf]  ;;  %v2441_v51 = vor.u32 %v2440_v10, %v8988_v33 }
 0x251   : > { %v3877_v49 = vor.u32 %v3876_v17, %v3873_v48  ;;  %v3888_v59 = vrot.slane %v3887_v52, 4  ;;  %v3904_v17 = vshll.u32 %v3679_v57, 16  ;;  %v3908_v52 = vshrl.u32 %v3679_v57, 16 }
 0x252   : > { %v2431_v46 = vor.u32 %v2430_v30, %v2427_v53 }
 0x253   : > { %v2024_v3 = vpop.f32.mrf.mxu3  ;;  %v2632_v23 = vpop.f32.mrf.mxu1  ;;  %v3893_v48 = vsel %vm8507_vm10, %v3888_v59, %v3892_v42  ;;  %v3895_v42 = vshrl.u32 %v3678_v22, 16  ;;  %v9003_v10 = vrot.slane %v3904_v17, 5  ;;  %v7397_v17 = vld [vmem:[#allocation11 + $0x190] sm:$0xff] }
 0x254   : > { %v8975_v29 = vadd.f32 %v2024_v3, %v1823_v16  ;;  %v8978_v6 = vadd.f32 %v2632_v23, %v8639_v58  ;;  %v2423_v16 = vsel %vm8507_vm10, %v2418_v27, %v2422_v37  ;;  %v2413_v58 = vsel %vm8507_vm10, %v2408_v44, %v8956_v45  ;;  %v2081_v3 = vld [vmem:[#allocation2 + $0xec] sm:$0x1]  ;;  %v7346_v27 = vld [vmem:[#allocation2 + $0x84] sm:$0xff]  ;;  %4871 = vmatpush.bf16.msrb.mxu1 %v7397_v17 }
 0x255   : > { %v2516_v31 = vunpack.c.l.b16 %v2423_v16  ;;  %v2515_v37 = vunpack.c.l.b16 %v2413_v58  ;;  %v4118_v16 = vunpack.c.l.b16 %v3893_v48  ;;  %v2432_v53 = vrot.slane %v2431_v46, 4  ;;  %v3682_v17 = vld [vmem:[#allocation2 + $0xa8] sm:$0xf] }
 0x256   : > { %9832 = vst [vmem:[#allocation46_spill] sm:$0xff] %v8975_v29  ;;  %v2444_v29 = vshll.u32 %v2081_v3, 16  ;;  %v9001_v44 = vpop.f32.mrf.mxu0  ;;  %v3898_v3 = vshll.u32 %v3678_v22, 16 }
 0x257   : > { %v1828_v62 = vpop.f32.mrf.mxu2  ;;  %v2534_v7 = vpack.c.b16 %v2516_v31, %v2515_v37  ;;  %9834 = vst [vmem:[#allocation48_spill] sm:$0xff] %v9001_v44  ;;  %v2082_v31 = vld [vmem:[#allocation2 + $0xf4] sm:$0xf]  ;;  %v3680_v37 = vld [vmem:[#allocation2 + $0x9c] sm:$0x1]  ;;  %v2437_v46 = vsel %vm8507_vm10, %v2432_v53, %v8988_v33 }
 0x258   : > { %4253 = vmatmul.bf16.gmra.mxu3 %v4141_v12  ;;  %5166 = vmatmul.bf16.gmra.mxu0 %v7381_v13  ;;  %v3878_v13 = vrot.slane %v3877_v49, 4  ;;  %v2442_v49 = vrot.slane %v2441_v51, 4  ;;  %v2446_v30 = vrot.slane %v2444_v29, 5  ;;  %v2452_v29 = vshll.u32 %v2082_v31, 16 }
 0x259   : > { %v3900_v22 = vrot.slane %v3898_v3, 5 }
 0x25a   : > { %v2447_v48 = vsel %vm8507_vm10, %v2442_v49, %v2446_v30  ;;  %v7396_v30 = vld [vmem:[#allocation11 + $0x188] sm:$0xff] }
 0x25b   : > { %v2027_v19 = vpop.f32.mrf.mxu3  ;;  %v2635_v12 = vpop.f32.mrf.mxu1  ;;  %4872 = vmatpush.bf16.msrb.mxu1 %v7396_v30 }
 0x25c   : > { %v8990_v23 = vadd.f32 %v2027_v19, %v1826_v2  ;;  %v8993_v45 = vadd.f32 %v2635_v12, %v8658_v43  ;;  %3576 = vmatmul.bf16.gmra.mxu2 %v7346_v27  ;;  %v3883_v2 = vsel %vm8507_vm10, %v3878_v13, %v8973_v11  ;;  %v3910_v11 = vrot.slane %v3908_v52, 4  ;;  %v2083_v19 = vld [vmem:[#allocation2 + $0xf8] sm:$0xf] }
 0x25d   : > { %v4117_v58 = vunpack.c.l.b16 %v3883_v2  ;;  %v2449_v13 = vshrl.u32 %v2082_v31, 16  ;;  %v2458_v51 = vshll.u32 %v2083_v19, 16  ;;  %v2462_v2 = vshrl.u32 %v2083_v19, 16 }
 0x25e   : > { %2674 = vmatmul.bf16.gmra.mxu1 %v2534_v7  ;;  %v3897_v52 = vrot.slane %v3895_v42, 4  ;;  %v3911_v24 = vor.u32 %v3910_v11, %v9003_v10  ;;  %v2518_v31 = vunpack.c.l.b16 %v2447_v48  ;;  %v9018_v19 = vpop.f32.mrf.mxu0  ;;  %v2084_v11 = vld [vmem:[#allocation2 + $0xfc] sm:$0x1] }
 0x25f   : > { %v1831_v43 = vpop.f32.mrf.mxu2  ;;  %v4142_v12 = vpack.c.b16 %v4118_v16, %v4117_v58  ;;  %v3914_v16 = vshll.u32 %v3680_v37, 16  ;;  %v2451_v53 = vrot.slane %v2449_v13, 4  ;;  %v2454_v58 = vrot.slane %v2452_v29, 5 }
 0x260   : > { %v2464_v49 = vrot.slane %v2462_v2, 4  ;;  %v3901_v42 = vor.u32 %v3900_v22, %v3897_v52  ;;  %v3912_v3 = vrot.slane %v3911_v24, 4  ;;  %v2468_v2 = vshll.u32 %v2084_v11, 16  ;;  %v7413_v52 = vld [vmem:[#allocation11 + $0x210] sm:$0xff] }
 0x261   : > { %v3916_v44 = vrot.slane %v3914_v16, 5  ;;  %v2455_v29 = vor.u32 %v2454_v58, %v2451_v53  ;;  %v3928_v24 = vshll.u32 %v3682_v17, 16  ;;  %v3932_v16 = vshrl.u32 %v3682_v17, 16  ;;  %v3681_v58 = vld [vmem:[#allocation2 + $0xa4] sm:$0xf]  ;;  %5835 = vmatpush.bf16.msra.mxu2 %v7413_v52 }
 0x262   : > { %v3902_v22 = vrot.slane %v3901_v42, 4  ;;  %v3340_v53 = vadd.f32 %v8591_v39, %v8837_v54  ;;  %v2470_v42 = vrot.slane %v2468_v2, 5  ;;  %v3922_v11 = vshll.u32 %v3681_v58, 16 }
 0x263   : > { %v2029_v59 = vpop.f32.mrf.mxu3  ;;  %v2637_v57 = vpop.f32.mrf.mxu1  ;;  %v3934_v17 = vrot.slane %v3932_v16, 4  ;;  %v4339_v16 = vld [vmem:[#allocation2 + $0x28] sm:$0xf] }
 0x264   : > { %v9005_v27 = vadd.f32 %v2029_v59, %v1828_v62  ;;  %v9011_v7 = vadd.f32 %v2637_v57, %v8692_v36  ;;  %v7382_v62 = vld [vmem:[#allocation2 + $0x54] sm:$0xff]  ;;  %v2517_v36 = vunpack.c.l.b16 %v2437_v46  ;;  %v9016_v59 = vrot.slane %v2458_v51, 5 }
 0x266   : > { %v2535_v48 = vpack.c.b16 %v2518_v31, %v2517_v36  ;;  %v2465_v51 = vor.u32 %v2464_v49, %v9016_v59  ;;  %v3907_v36 = vsel %vm8507_vm10, %v3902_v22, %v9003_v10  ;;  %v2456_v31 = vrot.slane %v2455_v29, 4 }
 0x267   : > { %v1833_v33 = vpop.f32.mrf.mxu2  ;;  %v4119_v54 = vunpack.c.l.b16 %v3907_v36 }
 0x268   : > { %4258 = vmatmul.bf16.gmra.mxu3 %v4142_v12  ;;  %5171 = vmatmul.bf16.gmra.mxu0 %v7382_v62  ;;  %v7347_v12 = vld [vmem:[#allocation2 + $0x94] sm:$0xff]  ;;  %v7395_v62 = vld [vmem:[#allocation11 + $0x180] sm:$0xff] }
 0x269   : > { %4873 = vmatpush.bf16.msrb.mxu1 %v7395_v62  ;;  %v7383_v62 = vld [vmem:[#allocation2 + $0x64] sm:$0xff] }
 0x26b   : > { %v2032_v57 = vpop.f32.mrf.mxu3  ;;  %v2640_v13 = vpop.f32.mrf.mxu1 }
 0x26c   : > { %v9020_v37 = vadd.f32 %v2032_v57, %v1831_v43  ;;  %v9023_v46 = vadd.f32 %v2640_v13, %v8712_v1  ;;  %3581 = vmatmul.bf16.gmra.mxu2 %v7347_v12  ;;  %v3917_v43 = vsel %vm8507_vm10, %v3912_v3, %v3916_v44  ;;  %v2466_v57 = vrot.slane %v2465_v51, 4  ;;  %v3683_v13 = vld [vmem:[#allocation2 + $0xac] sm:$0x1] }
 0x26d   : > { %v4120_v30 = vunpack.c.l.b16 %v3917_v43  ;;  %v3919_v3 = vshrl.u32 %v3681_v58, 16  ;;  %v9033_v12 = vrot.slane %v3928_v24, 5  ;;  %v2461_v51 = vsel %vm8507_vm10, %v2456_v31, %v9016_v59  ;;  %v4338_v58 = vld [vmem:[#allocation2 + $0x24] sm:$0xf] }
 0x26e   : > { %2679 = vmatmul.bf16.gmra.mxu1 %v2535_v48  ;;  %v9037_v48 = vpop.f32.mrf.mxu0  ;;  %v2471_v2 = vsel %vm8507_vm10, %v2466_v57, %v2470_v42  ;;  %v3938_v24 = vshll.u32 %v3683_v13, 16  ;;  %v2519_v36 = vunpack.c.l.b16 %v2461_v51  ;;  %v4400_v31 = vshrl.u32 %v4339_v16, 16 }
 0x26f   : > { %v3542_v1 = vpop.f32.mrf.mxu2  ;;  %v4143_v29 = vpack.c.b16 %v4120_v30, %v4119_v54  ;;  %v3921_v22 = vrot.slane %v3919_v3, 4  ;;  %v3935_v43 = vor.u32 %v3934_v17, %v9033_v12  ;;  %v2520_v59 = vunpack.c.l.b16 %v2471_v2  ;;  %v3685_v54 = vld [vmem:[#allocation2 + $0xb8] sm:$0xf] }
 0x270   : > { %v3622_v49 = vadd.f32 %v3542_v1, %v3340_v53  ;;  %v4391_v17 = vshrl.u32 %v4338_v58, 16 }
 0x271   : > { %v3936_v42 = vrot.slane %v3935_v43, 4 }
 0x272   : > { %v4393_v43 = vrot.slane %v4391_v17, 7 }
 0x273   : > { %v2034_v44 = vpop.f32.mrf.mxu3  ;;  %v2642_v52 = vpop.f32.mrf.mxu1 }
 0x274   : > { %v9035_v39 = vadd.f32 %v2034_v44, %v1833_v33  ;;  %v9040_v10 = vadd.f32 %v2642_v52, %v8734_v20  ;;  %v3924_v33 = vrot.slane %v3922_v11, 5  ;;  %v3341_v20 = vadd.f32 %v8614_v15, %v8853_v18  ;;  %v7348_v11 = vld [vmem:[#allocation2 + $0xa4] sm:$0xff]  ;;  %v4337_v18 = vld [vmem:[#allocation2 + $0x20] sm:$0x8] }
 0x275   : > { %v3940_v44 = vrot.slane %v3938_v24, 5  ;;  %v2536_v15 = vpack.c.b16 %v2520_v59, %v2519_v36  ;;  %v4403_v24 = vshll.u32 %v4339_v16, 16  ;;  %v4386_v59 = vshrl.u32 %v4337_v18, 16 }
 0x276   : > { %v3925_v57 = vor.u32 %v3924_v33, %v3921_v22  ;;  %v9055_v51 = vpop.f32.mrf.mxu0  ;;  %v3952_v22 = vshll.u32 %v3685_v54, 16  ;;  %v3342_v33 = vadd.f32 %v8644_v5, %v8871_v47  ;;  %v4398_v17 = vrot.slane %v4393_v43, 4 }
 0x277   : > { %v3544_v53 = vpop.f32.mrf.mxu2  ;;  %9836 = vst [vmem:[#allocation50_spill] sm:$0xff] %v9055_v51  ;;  %v7048_v51 = vrot.slane %v4386_v59, 11 }
 0x278   : > { %4263 = vmatmul.bf16.gmra.mxu3 %v4143_v29  ;;  %5176 = vmatmul.bf16.gmra.mxu0 %v7383_v62  ;;  %v3623_v1 = vadd.f32 %v3544_v53, %v3341_v20  ;;  %v4402_v29 = vrot.slane %v4400_v31, 7  ;;  %v3926_v2 = vrot.slane %v3925_v57, 4  ;;  %v3941_v62 = vsel %vm8507_vm10, %v3936_v42, %v3940_v44  ;;  %v7425_v20 = vld [vmem:[#allocation12 + $0x30] sm:$0xff] }
 0x279   : > { %v4394_v57 = vshll.u32 %v4338_v58, 16  ;;  %6072 = vmatpush.bf16.msra.mxu3 %v7425_v20 }
 0x27a   : > { %v3931_v36 = vsel %vm8507_vm10, %v3926_v2, %v9033_v12  ;;  %v4405_v42 = vor.u32 %v4403_v24, %v4402_v29  ;;  %v7384_v2 = vld [vmem:[#allocation2 + $0x74] sm:$0xff]  ;;  %v3343_v24 = vadd.f32 %v8668_v55, %v8889_v56  ;;  %v3688_v56 = vld [vmem:[#allocation2 + $0xc8] sm:$0xf] }
 0x27b   : > { %v4224_v30 = vpop.f32.mrf.mxu3  ;;  %v2645_v13 = vpop.f32.mrf.mxu1  ;;  %v4121_v16 = vunpack.c.l.b16 %v3931_v36  ;;  %v4396_v12 = vor.u32 %v4394_v57, %v4393_v43  ;;  %v4341_v43 = vld [vmem:[#allocation2 + $0x34] sm:$0xf] }
 0x27c   : > { %v9050_v3 = vadd.f32 %v4224_v30, %v3622_v49  ;;  %v9053_v52 = vadd.f32 %v2645_v13, %v8750_v14  ;;  %3586 = vmatmul.bf16.gmra.mxu2 %v7348_v11  ;;  %v3956_v49 = vshrl.u32 %v3685_v54, 16  ;;  %v3684_v14 = vld [vmem:[#allocation2 + $0xb4] sm:$0xf]  ;;  %v4122_v30 = vunpack.c.l.b16 %v3941_v62 }
 0x27d   : > { %v3943_v11 = vshrl.u32 %v3684_v14, 16  ;;  %v3946_v54 = vshll.u32 %v3684_v14, 16  ;;  %v9064_v13 = vrot.slane %v3952_v22, 5  ;;  %v4406_v29 = vsel %vm8349_vm7, %v4398_v17, %v4405_v42  ;;  %v4340_v17 = vld [vmem:[#allocation2 + $0x30] sm:$0x8] }
 0x27e   : > { %9835 = vst [vmem:[#allocation49_spill] sm:$0xff] %v9050_v3  ;;  %2684 = vmatmul.bf16.gmra.mxu1 %v2536_v15  ;;  %v3958_v5 = vrot.slane %v3956_v49, 4  ;;  %v3686_v15 = vld [vmem:[#allocation2 + $0xbc] sm:$0x1]  ;;  %v4144_v58 = vpack.c.b16 %v4122_v30, %v4121_v16  ;;  %v9076_v14 = vpop.f32.mrf.mxu0  ;;  %v4413_v55 = vshrl.u32 %v4341_v43, 16 }
 0x27f   : > { %v3547_v53 = vpop.f32.mrf.mxu2  ;;  %v3945_v62 = vrot.slane %v3943_v11, 4  ;;  %v3948_v22 = vrot.slane %v3946_v54, 5  ;;  %v7349_v11 = vld [vmem:[#allocation2 + $0xb4] sm:$0xff] }
 0x280   : > { %v3624_v31 = vadd.f32 %v3547_v53, %v3342_v33  ;;  %v3959_v49 = vor.u32 %v3958_v5, %v9064_v13  ;;  %v4342_v33 = vld [vmem:[#allocation2 + $0x38] sm:$0xf]  ;;  %v4755_v53 = vunpack.c.l.b16 %v4406_v29 }
 0x281   : > { %v4422_v36 = vshrl.u32 %v4342_v33, 16  ;;  %v3949_v30 = vor.u32 %v3948_v22, %v3945_v62  ;;  %v3344_v62 = vadd.f32 %v8699_v35, %v8905_v4  ;;  %v4415_v22 = vrot.slane %v4413_v55, 7 }
 0x282   : > { %v3960_v57 = vrot.slane %v3959_v49, 4  ;;  %v4425_v49 = vshll.u32 %v4342_v33, 16 }
 0x283   : > { %v4226_v44 = vpop.f32.mrf.mxu3  ;;  %v2647_v3 = vpop.f32.mrf.mxu1  ;;  %v4420_v55 = vrot.slane %v4415_v22, 4 }
 0x284   : > { %v9066_v47 = vadd.f32 %v4226_v44, %v3623_v1  ;;  %v9069_v18 = vadd.f32 %v2647_v3, %v8770_v26  ;;  %v3962_v1 = vshll.u32 %v3686_v15, 16  ;;  %v4397_v3 = vsel %vm8349_vm7, %v7048_v51, %v4396_v12  ;;  %v7412_v12 = vld [vmem:[#allocation11 + $0x208] sm:$0xff] }
 0x285   : > { %v4754_v54 = vunpack.c.l.b16 %v4397_v3  ;;  %v4424_v15 = vrot.slane %v4422_v36, 7  ;;  %5836 = vmatpush.bf16.msra.mxu2 %v7412_v12  ;;  %v4416_v36 = vshll.u32 %v4341_v43, 16  ;;  %v7385_v12 = vld [vmem:[#allocation2 + $0x84] sm:$0xff] }
 0x286   : > { %v3964_v42 = vrot.slane %v3962_v1, 5  ;;  %v3687_v1 = vld [vmem:[#allocation2 + $0xc4] sm:$0xf] }
 0x287   : > { %v3549_v26 = vpop.f32.mrf.mxu2  ;;  %v4786_v51 = vpack.c.b16 %v4755_v53, %v4754_v54 }
 0x288   : > { %4268 = vmatmul.bf16.gmra.mxu3 %v4144_v58  ;;  %5181 = vmatmul.bf16.gmra.mxu0 %v7384_v2  ;;  %v3625_v20 = vadd.f32 %v3549_v26, %v3343_v24  ;;  %v3950_v58 = vrot.slane %v3949_v30, 4  ;;  %v3965_v29 = vsel %vm8507_vm10, %v3960_v57, %v3964_v42  ;;  %v3976_v2 = vshll.u32 %v3688_v56, 16  ;;  %v9092_v30 = vpop.f32.mrf.mxu0 }
 0x289   : > { %v4408_v26 = vshrl.u32 %v4340_v17, 16  ;;  %v4124_v53 = vunpack.c.l.b16 %v3965_v29  ;;  %v3967_v42 = vshrl.u32 %v3687_v1, 16 }
 0x28a   : > { %v3955_v24 = vsel %vm8507_vm10, %v3950_v58, %v9064_v13  ;;  %v9094_v35 = vrot.slane %v3976_v2, 5 }
 0x28b   : > { %v4229_v59 = vpop.f32.mrf.mxu3  ;;  %v2650_v5 = vpop.f32.mrf.mxu1  ;;  %v4123_v54 = vunpack.c.l.b16 %v3955_v24  ;;  %v7049_v13 = vrot.slane %v4408_v26, 11  ;;  %v3969_v58 = vrot.slane %v3967_v42, 4  ;;  %v7350_v42 = vld [vmem:[#allocation2 + $0xc4] sm:$0xff] }
 0x28c   : > { %v9080_v44 = vadd.f32 %v4229_v59, %v3624_v31  ;;  %v9083_v16 = vadd.f32 %v2650_v5, %v8791_v40  ;;  %3591 = vmatmul.bf16.gmra.mxu2 %v7349_v11  ;;  %v3980_v31 = vshrl.u32 %v3688_v56, 16  ;;  %v4427_v59 = vor.u32 %v4425_v49, %v4424_v15  ;;  %v3689_v56 = vld [vmem:[#allocation2 + $0xcc] sm:$0x1]  ;;  %v4344_v49 = vld [vmem:[#allocation2 + $0x44] sm:$0xf] }
 0x28d   : > { %v3970_v11 = vshll.u32 %v3687_v1, 16  ;;  %v4145_v43 = vpack.c.b16 %v4124_v53, %v4123_v54  ;;  %v3691_v54 = vld [vmem:[#allocation2 + $0xd8] sm:$0xf] }
 0x28e   : > { %4874 = vmatmul.bf16.vlgmr.msrb.gmra.mxu1 %v4786_v51  ;;  %v3982_v4 = vrot.slane %v3980_v31, 4  ;;  %v4418_v51 = vor.u32 %v4416_v36, %v4415_v22  ;;  %v4428_v15 = vsel %vm8349_vm7, %v4420_v55, %v4427_v59  ;;  %v4345_v31 = vld [vmem:[#allocation2 + $0x48] sm:$0xf]  ;;  %v9839_v55 = vld [vmem:[#allocation36_spill] sm:$0xff] }
 0x28f   : > { %v3552_v40 = vpop.f32.mrf.mxu2  ;;  %v3972_v29 = vrot.slane %v3970_v11, 5  ;;  %v4444_v24 = vshrl.u32 %v4345_v31, 16 }
 0x290   : > { %v3626_v3 = vadd.f32 %v3552_v40, %v3344_v62  ;;  %v3983_v2 = vor.u32 %v3982_v4, %v9094_v35  ;;  %v3345_v62 = vadd.f32 %v8718_v60, %v8918_v61  ;;  %v4757_v40 = vunpack.c.l.b16 %v4428_v15  ;;  %v9110_v60 = vpop.f32.mrf.mxu0 }
 0x291   : > { %v3973_v53 = vor.u32 %v3972_v29, %v3969_v58  ;;  %v4435_v4 = vshrl.u32 %v4344_v49, 16  ;;  %v9840_v58 = vld [vmem:[#allocation31_spill] sm:$0xff] }
 0x292   : > { %v3984_v36 = vrot.slane %v3983_v2, 4  ;;  %v3346_v29 = vadd.f32 %v9840_v58, %v8933_v34 }
 0x293   : > { %v4231_v57 = vpop.f32.mrf.mxu3  ;;  %v2652_v5 = vpop.f32.mrf.mxu1  ;;  %v4437_v2 = vrot.slane %v4435_v4, 7 }
 0x294   : > { %v9096_v33 = vadd.f32 %v4231_v57, %v3625_v20  ;;  %v9099_v17 = vadd.f32 %v2652_v5, %v8810_v0  ;;  %v3986_v20 = vshll.u32 %v3689_v56, 16  ;;  %v4419_v0 = vsel %vm8349_vm7, %v7049_v13, %v4418_v51  ;;  %v4343_v13 = vld [vmem:[#allocation2 + $0x40] sm:$0x8] }
 0x295   : > { %v4756_v11 = vunpack.c.l.b16 %v4419_v0  ;;  %v4446_v51 = vrot.slane %v4444_v24, 7  ;;  %v4430_v24 = vshrl.u32 %v4343_v13, 16  ;;  %v4348_v13 = vld [vmem:[#allocation2 + $0x58] sm:$0xf] }
 0x296   : > { %9837 = vst [vmem:[#allocation51_spill] sm:$0xff] %v9096_v33  ;;  %v3988_v59 = vrot.slane %v3986_v20, 5  ;;  %v4447_v20 = vshll.u32 %v4345_v31, 16 }
 0x297   : > { %v3554_v22 = vpop.f32.mrf.mxu2  ;;  %v4787_v5 = vpack.c.b16 %v4757_v40, %v4756_v11 }
 0x298   : > { %4273 = vmatmul.bf16.gmra.mxu3 %v4145_v43  ;;  %5186 = vmatmul.bf16.gmra.mxu0 %v7385_v12  ;;  %v3627_v1 = vadd.f32 %v3554_v22, %v3345_v62  ;;  %v3974_v43 = vrot.slane %v3973_v53, 4  ;;  %v3989_v15 = vsel %vm8507_vm10, %v3984_v36, %v3988_v59  ;;  %v4004_v12 = vshrl.u32 %v3691_v54, 16  ;;  %v3690_v62 = vld [vmem:[#allocation2 + $0xd4] sm:$0xf]  ;;  %v7424_v22 = vld [vmem:[#allocation12 + $0x28] sm:$0xff] }
 0x299   : > { %v4126_v53 = vunpack.c.l.b16 %v3989_v15  ;;  %v4449_v36 = vor.u32 %v4447_v20, %v4446_v51  ;;  %6073 = vmatpush.bf16.msra.mxu3 %v7424_v22  ;;  %v3991_v11 = vshrl.u32 %v3690_v62, 16  ;;  %v9131_v15 = vpop.f32.mrf.mxu0  ;;  %v4347_v22 = vld [vmem:[#allocation2 + $0x54] sm:$0xf] }
 0x29a   : > { %v3979_v40 = vsel %vm8507_vm10, %v3974_v43, %v9094_v35  ;;  %v4006_v34 = vrot.slane %v4004_v12, 4 }
 0x29b   : > { %v4234_v26 = vpop.f32.mrf.mxu3  ;;  %v2655_v61 = vpop.f32.mrf.mxu1  ;;  %v4125_v4 = vunpack.c.l.b16 %v3979_v40  ;;  %v3993_v12 = vrot.slane %v3991_v11, 4 }
 0x29c   : > { %v9108_v57 = vadd.f32 %v4234_v26, %v3626_v3  ;;  %v9113_v56 = vadd.f32 %v2655_v61, %v9839_v55  ;;  %3596 = vmatmul.bf16.gmra.mxu2 %v7350_v42  ;;  %v4000_v3 = vshll.u32 %v3691_v54, 16  ;;  %v4438_v42 = vshll.u32 %v4344_v49, 16 }
 0x29d   : > { %v3994_v54 = vshll.u32 %v3690_v62, 16  ;;  %v4442_v55 = vrot.slane %v4437_v2, 4  ;;  %v4146_v49 = vpack.c.b16 %v4126_v53, %v4125_v4  ;;  %v9842_v62 = vld [vmem:[#allocation32_spill] sm:$0xff]  ;;  %v4457_v4 = vshrl.u32 %v4347_v22, 16 }
 0x29e   : > { %9838 = vst [vmem:[#allocation52_spill] sm:$0xff] %v9108_v57  ;;  %4879 = vmatmul.bf16.gmra.mxu1 %v4787_v5  ;;  %v9122_v61 = vrot.slane %v4000_v3, 5  ;;  %v3692_v5 = vld [vmem:[#allocation2 + $0xdc] sm:$0x1]  ;;  %v7050_v57 = vrot.slane %v4430_v24, 11  ;;  %v4440_v35 = vor.u32 %v4438_v42, %v4437_v2  ;;  %v7386_v3 = vld [vmem:[#allocation2 + $0x94] sm:$0xff]  ;;  %v3347_v2 = vadd.f32 %v9842_v62, %v8949_v38 }
 0x29f   : > { %v3557_v0 = vpop.f32.mrf.mxu2  ;;  %v4450_v51 = vsel %vm8349_vm7, %v4442_v55, %v4449_v36  ;;  %v4010_v20 = vshll.u32 %v3692_v5, 16  ;;  %v3693_v24 = vld [vmem:[#allocation2 + $0xe4] sm:$0xf]  ;;  %v3694_v36 = vld [vmem:[#allocation2 + $0xe8] sm:$0xf]  ;;  %v7351_v5 = vld [vmem:[#allocation2 + $0xd4] sm:$0xff] }
 0x2a0   : > { %v3628_v26 = vadd.f32 %v3557_v0, %v3346_v29  ;;  %v4007_v29 = vor.u32 %v4006_v34, %v9122_v61  ;;  %v4466_v0 = vshrl.u32 %v4348_v13, 16  ;;  %v4441_v40 = vsel %vm8349_vm7, %v7050_v57, %v4440_v35 }
 0x2a1   : > { %v4759_v42 = vunpack.c.l.b16 %v4450_v51  ;;  %v4012_v34 = vrot.slane %v4010_v20, 5  ;;  %v4758_v38 = vunpack.c.l.b16 %v4441_v40  ;;  %v4024_v33 = vshll.u32 %v3694_v36, 16 }
 0x2a2   : > { %v4028_v57 = vshrl.u32 %v3694_v36, 16  ;;  %v4460_v40 = vshll.u32 %v4347_v22, 16 }
 0x2a3   : > { %v4236_v59 = vpop.f32.mrf.mxu3  ;;  %v2657_v58 = vpop.f32.mrf.mxu1  ;;  %v4788_v51 = vpack.c.b16 %v4759_v42, %v4758_v38 }
 0x2a4   : > { %v9124_v31 = vadd.f32 %v4236_v59, %v3627_v1  ;;  %v9127_v43 = vadd.f32 %v2657_v58, %v8849_v63  ;;  %v3996_v1 = vrot.slane %v3994_v54, 5  ;;  %v4008_v54 = vrot.slane %v4007_v29, 4  ;;  %v4346_v58 = vld [vmem:[#allocation2 + $0x50] sm:$0x8] }
 0x2a5   : > { %v4452_v20 = vshrl.u32 %v4346_v58, 16 }
 0x2a6   : > { %9841 = vst [vmem:[#allocation36_spill] sm:$0xff] %v9124_v31  ;;  %v3997_v11 = vor.u32 %v3996_v1, %v3993_v12  ;;  %v4018_v31 = vshll.u32 %v3693_v24, 16  ;;  %v4469_v12 = vshll.u32 %v4348_v13, 16  ;;  %v7411_v1 = vld [vmem:[#allocation11 + $0x200] sm:$0xff] }
 0x2a7   : > { %v3559_v63 = vpop.f32.mrf.mxu2  ;;  %5837 = vmatpush.bf16.msra.mxu2 %v7411_v1  ;;  %v7051_v58 = vrot.slane %v4452_v20, 11 }
 0x2a8   : > { %4278 = vmatmul.bf16.gmra.mxu3 %v4146_v49  ;;  %5191 = vmatmul.bf16.gmra.mxu0 %v7386_v3  ;;  %v3629_v53 = vadd.f32 %v3559_v63, %v3347_v2  ;;  %v4468_v49 = vrot.slane %v4466_v0, 7  ;;  %v4015_v3 = vshrl.u32 %v3693_v24, 16  ;;  %v3998_v29 = vrot.slane %v3997_v11, 4  ;;  %v9843_v0 = vld [vmem:[#allocation33_spill] sm:$0xff] }
 0x2a9   : > { %v4459_v2 = vrot.slane %v4457_v4, 7  ;;  %v3348_v63 = vadd.f32 %v9843_v0, %v8967_v41  ;;  %v4020_v42 = vrot.slane %v4018_v31, 5  ;;  %v4026_v11 = vrot.slane %v4024_v33, 5  ;;  %v4350_v0 = vld [vmem:[#allocation2 + $0x64] sm:$0xf] }
 0x2aa   : > { %v4471_v24 = vor.u32 %v4469_v12, %v4468_v49  ;;  %v4017_v36 = vrot.slane %v4015_v3, 4  ;;  %v4003_v13 = vsel %vm8507_vm10, %v3998_v29, %v9122_v61  ;;  %v7387_v29 = vld [vmem:[#allocation2 + $0xa4] sm:$0xff] }
 0x2ab   : > { %v4239_v59 = vpop.f32.mrf.mxu3  ;;  %v2660_v62 = vpop.f32.mrf.mxu1  ;;  %v4462_v41 = vor.u32 %v4460_v40, %v4459_v2  ;;  %v4464_v22 = vrot.slane %v4459_v2, 4  ;;  %v4127_v3 = vunpack.c.l.b16 %v4003_v13 }
 0x2ac   : > { %v9138_v55 = vadd.f32 %v4239_v59, %v3628_v26  ;;  %v9141_v35 = vadd.f32 %v2660_v62, %v8866_v9  ;;  %3601 = vmatmul.bf16.gmra.mxu2 %v7351_v5  ;;  %v4013_v26 = vsel %vm8507_vm10, %v4008_v54, %v4012_v34  ;;  %v9147_v9 = vpop.f32.mrf.mxu0  ;;  %v4030_v54 = vrot.slane %v4028_v57, 4  ;;  %v3695_v5 = vld [vmem:[#allocation2 + $0xec] sm:$0x1]  ;;  %v4351_v57 = vld [vmem:[#allocation2 + $0x68] sm:$0xf] }
 0x2ad   : > { %v4128_v4 = vunpack.c.l.b16 %v4013_v26  ;;  %v4021_v12 = vor.u32 %v4020_v42, %v4017_v36  ;;  %v4034_v61 = vshll.u32 %v3695_v5, 16  ;;  %v4463_v26 = vsel %vm8349_vm7, %v7051_v58, %v4462_v41  ;;  %v3696_v42 = vld [vmem:[#allocation2 + $0xf4] sm:$0xf] }
 0x2ae   : > { %4884 = vmatmul.bf16.gmra.mxu1 %v4788_v51  ;;  %v4472_v51 = vsel %vm8349_vm7, %v4464_v22, %v4471_v24  ;;  %v4031_v1 = vor.u32 %v4030_v54, %v4026_v11  ;;  %v4760_v13 = vunpack.c.l.b16 %v4463_v26  ;;  %v4479_v5 = vshrl.u32 %v4350_v0, 16 }
 0x2af   : > { %v3562_v59 = vpop.f32.mrf.mxu2  ;;  %v4147_v31 = vpack.c.b16 %v4128_v4, %v4127_v3  ;;  %v4761_v2 = vunpack.c.l.b16 %v4472_v51  ;;  %v4022_v40 = vrot.slane %v4021_v12, 4  ;;  %v4036_v36 = vrot.slane %v4034_v61, 5  ;;  %v4349_v51 = vld [vmem:[#allocation2 + $0x60] sm:$0x8] }
 0x2b0   : > { %v3630_v34 = vadd.f32 %v3562_v59, %v3348_v63  ;;  %v4032_v24 = vrot.slane %v4031_v1, 4  ;;  %v4488_v59 = vshrl.u32 %v4351_v57, 16  ;;  %v4039_v1 = vshrl.u32 %v3696_v42, 16 }
 0x2b1   : > { %v4789_v41 = vpack.c.b16 %v4761_v2, %v4760_v13  ;;  %v4027_v3 = vsel %vm8507_vm10, %v4022_v40, %v4026_v11  ;;  %v4481_v26 = vrot.slane %v4479_v5, 7  ;;  %v4474_v11 = vshrl.u32 %v4349_v51, 16  ;;  %v7423_v40 = vld [vmem:[#allocation12 + $0x20] sm:$0xff]  ;;  %v3698_v5 = vld [vmem:[#allocation2 + $0xfc] sm:$0x1] }
 0x2b2   : > { %v4490_v12 = vrot.slane %v4488_v59, 7  ;;  %6074 = vmatpush.bf16.msra.mxu3 %v7423_v40 }
 0x2b3   : > { %v4241_v38 = vpop.f32.mrf.mxu3  ;;  %v2662_v62 = vpop.f32.mrf.mxu1 }
 0x2b4   : > { %v9152_v49 = vadd.f32 %v4241_v38, %v3629_v53  ;;  %v9157_v33 = vadd.f32 %v2662_v62, %v8883_v50  ;;  %v9845_v53 = vld [vmem:[#allocation34_spill] sm:$0xff]  ;;  %v9165_v54 = vpop.f32.mrf.mxu0  ;;  %v3697_v38 = vld [vmem:[#allocation2 + $0xf8] sm:$0xf]  ;;  %v4037_v62 = vsel %vm8507_vm10, %v4032_v24, %v4036_v36  ;;  %v4129_v36 = vunpack.c.l.b16 %v4027_v3 }
 0x2b5   : > { %v3349_v20 = vadd.f32 %v9845_v53, %v8978_v6  ;;  %v7352_v6 = vld [vmem:[#allocation2 + $0xe4] sm:$0xff]  ;;  %v4491_v53 = vshll.u32 %v4351_v57, 16  ;;  %v4130_v59 = vunpack.c.l.b16 %v4037_v62  ;;  %v4486_v57 = vrot.slane %v4481_v26, 4 }
 0x2b6   : > { %9844 = vst [vmem:[#allocation31_spill] sm:$0xff] %v9152_v49 }
 0x2b7   : > { %v3564_v63 = vpop.f32.mrf.mxu2  ;;  %v4493_v13 = vor.u32 %v4491_v53, %v4490_v12  ;;  %v4148_v51 = vpack.c.b16 %v4130_v59, %v4129_v36  ;;  %v9850_v53 = vld [vmem:[#allocation37_spill] sm:$0xff]  ;;  %v4353_v59 = vld [vmem:[#allocation2 + $0x74] sm:$0xf] }
 0x2b8   : > { %4283 = vmatmul.bf16.gmra.mxu3 %v4147_v31  ;;  %5196 = vmatmul.bf16.gmra.mxu0 %v7387_v29  ;;  %v9163_v50 = vadd.f32 %v3564_v63, %v3349_v20  ;;  %v4042_v31 = vshll.u32 %v3696_v42, 16  ;;  %v4048_v29 = vshll.u32 %v3697_v38, 16  ;;  %v9848_v20 = vld [vmem:[#allocation35_spill] sm:$0xff]  ;;  %v4482_v63 = vshll.u32 %v4350_v0, 16 }
 0x2b9   : > { %v3350_v2 = vadd.f32 %v9848_v20, %v8993_v45  ;;  %v4494_v3 = vsel %vm8349_vm7, %v4486_v57, %v4493_v13  ;;  %v3351_v20 = vadd.f32 %v9850_v53, %v9011_v7  ;;  %v3699_v57 = vld [vmem:[#allocation2 + $0x104] sm:$0xf]  ;;  %v3700_v7 = vld [vmem:[#allocation2 + $0x108] sm:$0xf] }
 0x2ba   : > { %9846 = vst [vmem:[#allocation32_spill] sm:$0xff] %v9163_v50  ;;  %v4072_v53 = vshll.u32 %v3700_v7, 16  ;;  %v9855_v50 = vld [vmem:[#allocation43_spill] sm:$0xff] }
 0x2bb   : > { %v4244_v4 = vpop.f32.mrf.mxu3  ;;  %v2665_v22 = vpop.f32.mrf.mxu1 }
 0x2bc   : > { %v9167_v58 = vadd.f32 %v4244_v4, %v3630_v34  ;;  %v9174_v61 = vadd.f32 %v2665_v22, %v8900_v8  ;;  %3606 = vmatmul.bf16.gmra.mxu2 %v7352_v6  ;;  %v4052_v34 = vshrl.u32 %v3697_v38, 16  ;;  %v4041_v4 = vrot.slane %v4039_v1, 4  ;;  %v9180_v45 = vpop.f32.mrf.mxu0 }
 0x2bd   : > { %v4044_v22 = vrot.slane %v4042_v31, 5  ;;  %v4050_v6 = vrot.slane %v4048_v29, 5  ;;  %v4058_v31 = vshll.u32 %v3698_v5, 16  ;;  %v4354_v29 = vld [vmem:[#allocation2 + $0x78] sm:$0xf] }
 0x2be   : > { %9847 = vst [vmem:[#allocation33_spill] sm:$0xff] %v9167_v58  ;;  %4889 = vmatmul.bf16.gmra.mxu1 %v4789_v41  ;;  %v4054_v42 = vrot.slane %v4052_v34, 4  ;;  %v7052_v41 = vrot.slane %v4474_v11, 11  ;;  %v4484_v58 = vor.u32 %v4482_v63, %v4481_v26  ;;  %v7388_v34 = vld [vmem:[#allocation2 + $0xb4] sm:$0xff]  ;;  %v4763_v11 = vunpack.c.l.b16 %v4494_v3 }
 0x2bf   : > { %v3567_v24 = vpop.f32.mrf.mxu2  ;;  %v4045_v12 = vor.u32 %v4044_v22, %v4041_v4  ;;  %v4510_v63 = vshrl.u32 %v4354_v29, 16  ;;  %v4060_v36 = vrot.slane %v4058_v31, 5  ;;  %v4063_v31 = vshrl.u32 %v3699_v57, 16 }
 0x2c0   : > { %v3632_v8 = vadd.f32 %v3567_v24, %v3350_v2  ;;  %v4055_v1 = vor.u32 %v4054_v42, %v4050_v6  ;;  %v4485_v26 = vsel %vm8349_vm7, %v7052_v41, %v4484_v58  ;;  %v7353_v42 = vld [vmem:[#allocation2 + $0xf4] sm:$0xff]  ;;  %v4501_v58 = vshrl.u32 %v4353_v59, 16 }
 0x2c1   : > { %v4762_v4 = vunpack.c.l.b16 %v4485_v26  ;;  %v9853_v26 = vld [vmem:[#allocation38_spill] sm:$0xff] }
 0x2c2   : > { %v4056_v24 = vrot.slane %v4055_v1, 4  ;;  %v4512_v1 = vrot.slane %v4510_v63, 7 }
 0x2c3   : > { %v9178_v38 = vpop.f32.mrf.mxu3  ;;  %v2667_v0 = vpop.f32.mrf.mxu1 }
 0x2c4   : > { %9849 = vst [vmem:[#allocation34_spill] sm:$0xff] %v9178_v38  ;;  %v9185_v62 = vadd.f32 %v2667_v0, %v8915_v25  ;;  %v4046_v25 = vrot.slane %v4045_v12, 4  ;;  %v4790_v0 = vpack.c.b16 %v4763_v11, %v4762_v4  ;;  %v4061_v3 = vsel %vm8507_vm10, %v4056_v24, %v4060_v36  ;;  %v4352_v12 = vld [vmem:[#allocation2 + $0x70] sm:$0x8]  ;;  %v3701_v38 = vld [vmem:[#allocation2 + $0x10c] sm:$0x1] }
 0x2c5   : > { %v4503_v4 = vrot.slane %v4501_v58, 7  ;;  %v4132_v36 = vunpack.c.l.b16 %v4061_v3 }
 0x2c7   : > { %v3569_v2 = vpop.f32.mrf.mxu2 }
 0x2c8   : > { %4288 = vmatmul.bf16.gmra.mxu3 %v4148_v51  ;;  %5201 = vmatmul.bf16.gmra.mxu0 %v7388_v34  ;;  %v9191_v40 = vadd.f32 %v3569_v2, %v3351_v20  ;;  %v4051_v51 = vsel %vm8507_vm10, %v4046_v25, %v4050_v6  ;;  %v4066_v34 = vshll.u32 %v3699_v57, 16  ;;  %v4076_v20 = vshrl.u32 %v3700_v7, 16  ;;  %v5270_v25 = vld [vmem:[#allocation2 + $0x28] sm:$0xf] }
 0x2c9   : > { %v4513_v2 = vshll.u32 %v4354_v29, 16  ;;  %v4504_v6 = vshll.u32 %v4353_v59, 16  ;;  %v4131_v24 = vunpack.c.l.b16 %v4051_v51  ;;  %v5331_v29 = vshrl.u32 %v5270_v25, 16 }
 0x2ca   : > { %9851 = vst [vmem:[#allocation35_spill] sm:$0xff] %v9191_v40  ;;  %v4068_v57 = vrot.slane %v4066_v34, 5  ;;  %v9208_v40 = vrot.slane %v4072_v53, 5  ;;  %v4078_v7 = vrot.slane %v4076_v20, 4  ;;  %v4508_v59 = vrot.slane %v4503_v4, 4 }
 0x2cb   : > { %v4249_v13 = vpop.f32.mrf.mxu3  ;;  %v2670_v5 = vpop.f32.mrf.mxu1  ;;  %v4515_v63 = vor.u32 %v4513_v2, %v4512_v1  ;;  %v4506_v58 = vor.u32 %v4504_v6, %v4503_v4  ;;  %v4149_v51 = vpack.c.b16 %v4132_v36, %v4131_v24  ;;  %v7389_v2 = vld [vmem:[#allocation2 + $0xc4] sm:$0xff]  ;;  %v4082_v20 = vshll.u32 %v3701_v38, 16 }
 0x2cc   : > { %v9193_v22 = vadd.f32 %v4249_v13, %v3632_v8  ;;  %v9196_v41 = vadd.f32 %v2670_v5, %v8930_v21  ;;  %3611 = vmatmul.bf16.gmra.mxu2 %v7353_v42  ;;  %v9202_v8 = vpop.f32.mrf.mxu0  ;;  %v3352_v21 = vadd.f32 %v9853_v26, %v9023_v46  ;;  %v4496_v13 = vshrl.u32 %v4352_v12, 16 }
 0x2cd   : > { %v5327_v46 = vshll.u32 %v5270_v25, 16  ;;  %v4079_v53 = vor.u32 %v4078_v7, %v9208_v40  ;;  %v5333_v4 = vrot.slane %v5331_v29, 4 }
 0x2ce   : > { %9852 = vst [vmem:[#allocation37_spill] sm:$0xff] %v9193_v22  ;;  %4894 = vmatmul.bf16.gmra.mxu1 %v4790_v0  ;;  %v4065_v22 = vrot.slane %v4063_v31, 4  ;;  %v5269_v0 = vld [vmem:[#allocation2 + $0x24] sm:$0xf]  ;;  %v7053_v12 = vrot.slane %v4496_v13, 11  ;;  %v4516_v31 = vsel %vm8349_vm7, %v4508_v59, %v4515_v63  ;;  %v4084_v59 = vrot.slane %v4082_v20, 5 }
 0x2cf   : > { %v3572_v11 = vpop.f32.mrf.mxu2  ;;  %v5318_v3 = vshrl.u32 %v5269_v0, 16  ;;  %v5321_v1 = vshll.u32 %v5269_v0, 16  ;;  %v9218_v6 = vrot.slane %v5327_v46, 5  ;;  %v5271_v63 = vld [vmem:[#allocation2 + $0x2c] sm:$0x1]  ;;  %v4080_v46 = vrot.slane %v4079_v53, 4 }
 0x2d0   : > { %v3634_v42 = vadd.f32 %v3572_v11, %v3352_v21  ;;  %v4069_v34 = vor.u32 %v4068_v57, %v4065_v22  ;;  %v9856_v11 = vld [vmem:[#allocation39_spill] sm:$0xff]  ;;  %v4507_v36 = vsel %vm8349_vm7, %v7053_v12, %v4506_v58  ;;  %v4765_v57 = vunpack.c.l.b16 %v4516_v31  ;;  %v4356_v0 = vld [vmem:[#allocation2 + $0x84] sm:$0xf]  ;;  %v9860_v53 = vld [vmem:[#allocation40_spill] sm:$0xff] }
 0x2d1   : > { %v3353_v13 = vadd.f32 %v9856_v11, %v9040_v10  ;;  %v5320_v38 = vrot.slane %v5318_v3, 4  ;;  %v5323_v7 = vrot.slane %v5321_v1, 5  ;;  %v7354_v11 = vld [vmem:[#allocation2 + $0x104] sm:$0xff]  ;;  %v5337_v49 = vshll.u32 %v5271_v63, 16  ;;  %v4355_v1 = vld [vmem:[#allocation2 + $0x80] sm:$0x8] }
 0x2d2   : > { %v4070_v10 = vrot.slane %v4069_v34, 4  ;;  %v4523_v58 = vshrl.u32 %v4356_v0, 16  ;;  %v3354_v20 = vadd.f32 %v9860_v53, %v9053_v52 }
 0x2d3   : > { %v9206_v5 = vpop.f32.mrf.mxu3  ;;  %v2672_v26 = vpop.f32.mrf.mxu1  ;;  %v5339_v63 = vrot.slane %v5337_v49, 5 }
 0x2d4   : > { %9854 = vst [vmem:[#allocation38_spill] sm:$0xff] %v9206_v5  ;;  %v9211_v21 = vadd.f32 %v2672_v26, %v9855_v50  ;;  %v4357_v50 = vld [vmem:[#allocation2 + $0x88] sm:$0xf]  ;;  %v9220_v25 = vpop.f32.mrf.mxu0  ;;  %v5334_v5 = vor.u32 %v5333_v4, %v9218_v6  ;;  %v4075_v31 = vsel %vm8507_vm10, %v4070_v10, %v9208_v40  ;;  %v5324_v4 = vor.u32 %v5323_v7, %v5320_v38 }
 0x2d5   : > { %v4532_v29 = vshrl.u32 %v4357_v50, 16 }
 0x2d6   : > { %v5325_v52 = vrot.slane %v5324_v4, 4 }
 0x2d7   : > { %v3574_v24 = vpop.f32.mrf.mxu2  ;;  %v4534_v34 = vrot.slane %v4532_v29, 7 }
 0x2d8   : > { %4293 = vmatmul.bf16.gmra.mxu3 %v4149_v51  ;;  %5206 = vmatmul.bf16.gmra.mxu0 %v7389_v2  ;;  %v9224_v22 = vadd.f32 %v3574_v24, %v3353_v13  ;;  %v4764_v2 = vunpack.c.l.b16 %v4507_v36  ;;  %v9859_v13 = vld [vmem:[#allocation44_spill] sm:$0xff]  ;;  %v5335_v36 = vrot.slane %v5334_v5, 4  ;;  %v5272_v5 = vld [vmem:[#allocation2 + $0x34] sm:$0xf] }
 0x2da   : > { %9857 = vst [vmem:[#allocation43_spill] sm:$0xff] %v9224_v22  ;;  %v4791_v3 = vpack.c.b16 %v4765_v57, %v4764_v2  ;;  %v4525_v57 = vrot.slane %v4523_v58, 7  ;;  %v4535_v2 = vshll.u32 %v4357_v50, 16  ;;  %v4133_v22 = vunpack.c.l.b16 %v4075_v31  ;;  %v9861_v31 = vld [vmem:[#allocation46_spill] sm:$0xff] }
 0x2db   : > { %v4254_v26 = vpop.f32.mrf.mxu3  ;;  %v2675_v12 = vpop.f32.mrf.mxu1  ;;  %v5340_v49 = vsel %vm8507_vm10, %v5335_v36, %v5339_v63  ;;  %v5342_v36 = vshrl.u32 %v5272_v5, 16  ;;  %v5345_v63 = vshll.u32 %v5272_v5, 16 }
 0x2dc   : > { %v9226_v51 = vadd.f32 %v4254_v26, %v3634_v42  ;;  %v9230_v24 = vadd.f32 %v2675_v12, %v9859_v13  ;;  %3616 = vmatmul.bf16.gmra.mxu2 %v7354_v11  ;;  %v4085_v42 = vsel %vm8507_vm10, %v4080_v46, %v4084_v59  ;;  %v7422_v26 = vld [vmem:[#allocation12 + $0x18] sm:$0xff]  ;;  %v4518_v11 = vshrl.u32 %v4355_v1, 16  ;;  %v9239_v10 = vpop.f32.mrf.mxu0 }
 0x2dd   : > { %v5273_v13 = vld [vmem:[#allocation2 + $0x38] sm:$0xf]  ;;  %v4134_v40 = vunpack.c.l.b16 %v4085_v42  ;;  %6075 = vmatpush.bf16.msra.mxu3 %v7422_v26  ;;  %v4526_v59 = vshll.u32 %v4356_v0, 16  ;;  %v4537_v29 = vor.u32 %v4535_v2, %v4534_v34  ;;  %v4530_v1 = vrot.slane %v4525_v57, 4  ;;  %v9862_v26 = vld [vmem:[#allocation41_spill] sm:$0xff] }
 0x2de   : > { %9858 = vst [vmem:[#allocation39_spill] sm:$0xff] %v9226_v51  ;;  %4899 = vmatmul.bf16.gmra.mxu1 %v4791_v3  ;;  %v5351_v38 = vshll.u32 %v5273_v13, 16  ;;  %v5355_v7 = vshrl.u32 %v5273_v13, 16  ;;  %v7054_v50 = vrot.slane %v4518_v11, 11  ;;  %v5330_v0 = vsel %vm8507_vm10, %v5325_v52, %v9218_v6  ;;  %v7390_v34 = vld [vmem:[#allocation2 + $0xd4] sm:$0xff] }
 0x2df   : > { %v3577_v12 = vpop.f32.mrf.mxu2  ;;  %v4528_v3 = vor.u32 %v4526_v59, %v4525_v57  ;;  %v4150_v53 = vpack.c.b16 %v4134_v40, %v4133_v22  ;;  %v4538_v4 = vsel %vm8349_vm7, %v4530_v1, %v4537_v29  ;;  %v4360_v2 = vld [vmem:[#allocation2 + $0x98] sm:$0xf]  ;;  %v5718_v13 = vunpack.c.l.b16 %v5330_v0  ;;  %v5274_v40 = vld [vmem:[#allocation2 + $0x3c] sm:$0x1]  ;;  %v4359_v52 = vld [vmem:[#allocation2 + $0x94] sm:$0xf] }
 0x2e0   : > { %v3636_v51 = vadd.f32 %v3577_v12, %v3354_v20  ;;  %v5719_v20 = vunpack.c.l.b16 %v5340_v49  ;;  %v3355_v12 = vadd.f32 %v9862_v26, %v9069_v18  ;;  %v9255_v11 = vrot.slane %v5351_v38, 5  ;;  %v4358_v26 = vld [vmem:[#allocation2 + $0x90] sm:$0x8] }
 0x2e1   : > { %v5357_v57 = vrot.slane %v5355_v7, 4  ;;  %v4529_v6 = vsel %vm8349_vm7, %v7054_v50, %v4528_v3  ;;  %v4767_v29 = vunpack.c.l.b16 %v4538_v4  ;;  %v5347_v1 = vrot.slane %v5345_v63, 5 }
 0x2e2   : > { %v5750_v5 = vpack.c.b16 %v5719_v20, %v5718_v13  ;;  %v4554_v18 = vshrl.u32 %v4360_v2, 16  ;;  %v4766_v7 = vunpack.c.l.b16 %v4529_v6  ;;  %v4545_v50 = vshrl.u32 %v4359_v52, 16 }
 0x2e3   : > { %v9241_v46 = vpop.f32.mrf.mxu3  ;;  %v2677_v58 = vpop.f32.mrf.mxu1  ;;  %v4540_v13 = vshrl.u32 %v4358_v26, 16 }
 0x2e4   : > { %v9246_v42 = vadd.f32 %v2677_v58, %v9861_v31  ;;  %v5344_v58 = vrot.slane %v5342_v36, 4  ;;  %v5358_v31 = vor.u32 %v5357_v57, %v9255_v11  ;;  %v9264_v0 = vpop.f32.mrf.mxu0  ;;  %v4792_v4 = vpack.c.b16 %v4767_v29, %v4766_v7  ;;  %v9865_v36 = vld [vmem:[#allocation42_spill] sm:$0xff]  ;;  %v5275_v7 = vld [vmem:[#allocation2 + $0x44] sm:$0xf] }
 0x2e5   : > { %v4556_v20 = vrot.slane %v4554_v18, 7  ;;  %v4547_v6 = vrot.slane %v4545_v50, 7 }
 0x2e6   : > { %v5348_v63 = vor.u32 %v5347_v1, %v5344_v58  ;;  %v7055_v58 = vrot.slane %v4540_v13, 11  ;;  %v5277_v13 = vld [vmem:[#allocation2 + $0x4c] sm:$0x1] }
 0x2e7   : > { %v3579_v22 = vpop.f32.mrf.mxu2 }
 0x2e8   : > { %4298 = vmatmul.bf16.gmra.mxu3 %v4150_v53  ;;  %5211 = vmatmul.bf16.gmra.mxu0 %v7390_v34  ;;  %v9259_v59 = vadd.f32 %v3579_v22, %v3355_v12  ;;  %v5361_v53 = vshll.u32 %v5274_v40, 16  ;;  %v5359_v12 = vrot.slane %v5358_v31, 4  ;;  %v4557_v40 = vshll.u32 %v4360_v2, 16 }
 0x2e9   : > { %v5349_v29 = vrot.slane %v5348_v63, 4  ;;  %v4552_v31 = vrot.slane %v4547_v6, 4 }
 0x2ea   : > { %9863 = vst [vmem:[#allocation44_spill] sm:$0xff] %v9259_v59  ;;  %v5363_v22 = vrot.slane %v5361_v53, 5 }
 0x2eb   : > { %v4259_v49 = vpop.f32.mrf.mxu3  ;;  %v2680_v34 = vpop.f32.mrf.mxu1 }
 0x2ec   : > { %v9261_v38 = vadd.f32 %v4259_v49, %v3636_v51  ;;  %v9267_v3 = vadd.f32 %v2680_v34, %v8990_v23  ;;  %5838 = vmatmul.bf16.vlgmr.msra.gmra.mxu2 %v5750_v5  ;;  %v3356_v51 = vadd.f32 %v9865_v36, %v9083_v16  ;;  %v5276_v49 = vld [vmem:[#allocation2 + $0x48] sm:$0xf]  ;;  %v4548_v23 = vshll.u32 %v4359_v52, 16  ;;  %v9278_v2 = vpop.f32.mrf.mxu0 }
 0x2ed   : > { %v4559_v5 = vor.u32 %v4557_v40, %v4556_v20  ;;  %v5364_v18 = vsel %vm8507_vm10, %v5359_v12, %v5363_v22  ;;  %v5375_v34 = vshll.u32 %v5276_v49, 16  ;;  %v5379_v53 = vshrl.u32 %v5276_v49, 16  ;;  %v4363_v22 = vld [vmem:[#allocation2 + $0xa8] sm:$0xf] }
 0x2ee   : > { %9864 = vst [vmem:[#allocation40_spill] sm:$0xff] %v9261_v38  ;;  %4904 = vmatmul.bf16.gmra.mxu1 %v4792_v4  ;;  %v4550_v1 = vor.u32 %v4548_v23, %v4547_v6  ;;  %v7391_v4 = vld [vmem:[#allocation2 + $0xe4] sm:$0xff]  ;;  %v5354_v52 = vsel %vm8507_vm10, %v5349_v29, %v9255_v11  ;;  %v5366_v20 = vshrl.u32 %v5275_v7, 16  ;;  %v5369_v36 = vshll.u32 %v5275_v7, 16 }
 0x2ef   : > { %v3582_v57 = vpop.f32.mrf.mxu2  ;;  %v4560_v26 = vsel %vm8349_vm7, %v4552_v31, %v4559_v5  ;;  %v5721_v12 = vunpack.c.l.b16 %v5364_v18  ;;  %v9289_v6 = vrot.slane %v5375_v34, 5  ;;  %v5381_v40 = vrot.slane %v5379_v53, 4  ;;  %v4362_v5 = vld [vmem:[#allocation2 + $0xa4] sm:$0xf] }
 0x2f0   : > { %v3638_v38 = vadd.f32 %v3582_v57, %v3356_v51  ;;  %v9867_v51 = vld [vmem:[#allocation45_spill] sm:$0xff]  ;;  %v4551_v57 = vsel %vm8349_vm7, %v7055_v58, %v4550_v1  ;;  %v5720_v49 = vunpack.c.l.b16 %v5354_v52  ;;  %v4769_v23 = vunpack.c.l.b16 %v4560_v26 }
 0x2f1   : > { %v3357_v63 = vadd.f32 %v9867_v51, %v9099_v17  ;;  %v5368_v7 = vrot.slane %v5366_v20, 4  ;;  %v4576_v17 = vshrl.u32 %v4363_v22, 16  ;;  %v5385_v51 = vshll.u32 %v5277_v13, 16  ;;  %v4361_v52 = vld [vmem:[#allocation2 + $0xa0] sm:$0x8]  ;;  %v9869_v20 = vld [vmem:[#allocation47_spill] sm:$0xff] }
 0x2f2   : > { %v5751_v31 = vpack.c.b16 %v5721_v12, %v5720_v49  ;;  %v5382_v58 = vor.u32 %v5381_v40, %v9289_v6  ;;  %v4567_v34 = vshrl.u32 %v4362_v5, 16  ;;  %v5279_v12 = vld [vmem:[#allocation2 + $0x58] sm:$0xf]  ;;  %v4562_v49 = vshrl.u32 %v4361_v52, 16 }
 0x2f3   : > { %v9271_v59 = vpop.f32.mrf.mxu3  ;;  %v2682_v16 = vpop.f32.mrf.mxu1  ;;  %v4578_v26 = vrot.slane %v4576_v17, 7  ;;  %v4570_v17 = vshll.u32 %v4362_v5, 16 }
 0x2f4   : > { %9866 = vst [vmem:[#allocation46_spill] sm:$0xff] %v9271_v59  ;;  %v9276_v50 = vadd.f32 %v2682_v16, %v9005_v27  ;;  %v5371_v16 = vrot.slane %v5369_v36, 5  ;;  %v3358_v36 = vadd.f32 %v9869_v20, %v9113_v56  ;;  %v5383_v40 = vrot.slane %v5382_v58, 4 }
 0x2f5   : > { %v5403_v56 = vshrl.u32 %v5279_v12, 16  ;;  %v7056_v20 = vrot.slane %v4562_v49, 11 }
 0x2f7   : > { %v3584_v27 = vpop.f32.mrf.mxu2 }
 0x2f8   : > { %5216 = vmatmul.bf16.gmra.mxu0 %v7391_v4  ;;  %v9291_v11 = vadd.f32 %v3584_v27, %v3357_v63  ;;  %v4768_v4 = vunpack.c.l.b16 %v4551_v57  ;;  %v5387_v63 = vrot.slane %v5385_v51, 5  ;;  %v7421_v27 = vld [vmem:[#allocation12 + $0x10] sm:$0xff]  ;;  %v9301_v57 = vpop.f32.mrf.mxu0 }
 0x2f9   : > { %6076 = vmatpush.bf16.msra.mxu3 %v7421_v27 }
 0x2fa   : > { %v4793_v53 = vpack.c.b16 %v4769_v23, %v4768_v4  ;;  %v5278_v4 = vld [vmem:[#allocation2 + $0x54] sm:$0xf]  ;;  %v5388_v51 = vsel %vm8507_vm10, %v5383_v40, %v5387_v63  ;;  %v9871_v63 = vld [vmem:[#allocation48_spill] sm:$0xff] }
 0x2fb   : > { %v4264_v29 = vpop.f32.mrf.mxu3  ;;  %v2685_v59 = vpop.f32.mrf.mxu1  ;;  %v5393_v52 = vshll.u32 %v5278_v4, 16  ;;  %v3359_v27 = vadd.f32 %v9871_v63, %v9127_v43  ;;  %v4366_v40 = vld [vmem:[#allocation2 + $0xb8] sm:$0xf] }
 0x2fc   : > { %v9293_v18 = vadd.f32 %v4264_v29, %v3638_v38  ;;  %v9297_v1 = vadd.f32 %v2685_v59, %v9020_v37  ;;  %5843 = vmatmul.bf16.gmra.mxu2 %v5751_v31  ;;  %v5372_v38 = vor.u32 %v5371_v16, %v5368_v7  ;;  %v4569_v29 = vrot.slane %v4567_v34, 7 }
 0x2fd   : > { %v4579_v37 = vshll.u32 %v4363_v22, 16  ;;  %v5390_v22 = vshrl.u32 %v5278_v4, 16  ;;  %v4365_v4 = vld [vmem:[#allocation2 + $0xb4] sm:$0xf] }
 0x2fe   : > { %9868 = vst [vmem:[#allocation41_spill] sm:$0xff] %v9293_v18  ;;  %4909 = vmatmul.bf16.gmra.mxu1 %v4793_v53  ;;  %v5399_v53 = vshll.u32 %v5279_v12, 16  ;;  %v5373_v7 = vrot.slane %v5372_v38, 4  ;;  %v4572_v18 = vor.u32 %v4570_v17, %v4569_v29  ;;  %v4574_v58 = vrot.slane %v4569_v29, 4  ;;  %v5280_v29 = vld [vmem:[#allocation2 + $0x5c] sm:$0x1] }
 0x2ff   : > { %v3587_v13 = vpop.f32.mrf.mxu2  ;;  %v4581_v31 = vor.u32 %v4579_v37, %v4578_v26  ;;  %v5405_v12 = vrot.slane %v5403_v56, 4  ;;  %v5392_v56 = vrot.slane %v5390_v22, 4  ;;  %v5409_v63 = vshll.u32 %v5280_v29, 16 }
 0x300   : > { %v3640_v59 = vadd.f32 %v3587_v13, %v3358_v36  ;;  %v7392_v36 = vld [vmem:[#allocation2 + $0xf4] sm:$0xff]  ;;  %v5378_v5 = vsel %vm8507_vm10, %v5373_v7, %v9289_v6  ;;  %v9315_v38 = vrot.slane %v5399_v53, 5  ;;  %v5723_v13 = vunpack.c.l.b16 %v5388_v51 }
 0x301   : > { %v4582_v26 = vsel %vm8349_vm7, %v4574_v58, %v4581_v31  ;;  %v4573_v49 = vsel %vm8349_vm7, %v7056_v20, %v4572_v18  ;;  %v5722_v6 = vunpack.c.l.b16 %v5378_v5  ;;  %v9323_v31 = vpop.f32.mrf.mxu0  ;;  %v5395_v7 = vrot.slane %v5393_v52, 5 }
 0x302   : > { %v4771_v17 = vunpack.c.l.b16 %v4582_v26  ;;  %v5406_v43 = vor.u32 %v5405_v12, %v9315_v38  ;;  %v4589_v18 = vshrl.u32 %v4365_v4, 16  ;;  %v3360_v26 = vadd.f32 %v9018_v19, %v9141_v35 }
 0x303   : > { %v9303_v23 = vpop.f32.mrf.mxu3  ;;  %v2687_v16 = vpop.f32.mrf.mxu1  ;;  %v5752_v58 = vpack.c.b16 %v5723_v13, %v5722_v6  ;;  %v5411_v52 = vrot.slane %v5409_v63, 5  ;;  %v4592_v29 = vshll.u32 %v4365_v4, 16 }
 0x304   : > { %9870 = vst [vmem:[#allocation42_spill] sm:$0xff] %v9303_v23  ;;  %v9308_v34 = vadd.f32 %v2687_v16, %v9035_v39  ;;  %v4598_v16 = vshrl.u32 %v4366_v40, 16  ;;  %v5407_v22 = vrot.slane %v5406_v43, 4  ;;  %v4591_v23 = vrot.slane %v4589_v18, 7 }
 0x306   : > { %v4600_v5 = vrot.slane %v4598_v16, 7  ;;  %v5412_v16 = vsel %vm8507_vm10, %v5407_v22, %v5411_v52  ;;  %v4596_v43 = vrot.slane %v4591_v23, 4  ;;  %v4369_v22 = vld [vmem:[#allocation2 + $0xc8] sm:$0xf] }
 0x307   : > { %v3589_v39 = vpop.f32.mrf.mxu2  ;;  %v5725_v63 = vunpack.c.l.b16 %v5412_v16 }
 0x308   : > { %5221 = vmatmul.bf16.gmra.mxu0 %v7392_v36  ;;  %v9321_v37 = vadd.f32 %v3589_v39, %v3359_v27  ;;  %v4770_v36 = vunpack.c.l.b16 %v4573_v49  ;;  %v4364_v27 = vld [vmem:[#allocation2 + $0xb0] sm:$0x8]  ;;  %v5396_v39 = vor.u32 %v5395_v7, %v5392_v56  ;;  %v4594_v7 = vor.u32 %v4592_v29, %v4591_v23 }
 0x309   : > { %v4584_v12 = vshrl.u32 %v4364_v27, 16  ;;  %v9334_v35 = vpop.f32.mrf.mxu0  ;;  %v1108_v27 = vld [vmem:[#allocation2 + $0x110] sm:$0x8] }
 0x30a   : > { %9872 = vst [vmem:[#allocation45_spill] sm:$0xff] %v9321_v37  ;;  %v4794_v20 = vpack.c.b16 %v4771_v17, %v4770_v36  ;;  %v5397_v17 = vrot.slane %v5396_v39, 4  ;;  %v1109_v52 = vsel %vm8268_vm2, 0, %v1108_v27 }
 0x30b   : > { %v4269_v53 = vpop.f32.mrf.mxu3  ;;  %v7057_v56 = vrot.slane %v4584_v12, 11  ;;  %1110 = vst [vmem:[#allocation2 + $0x110] sm:$0x8] %v1109_v52 }
 0x30c   : > { %v9326_v51 = vadd.f32 %v4269_v53, %v3640_v59  ;;  %5848 = vmatmul.bf16.gmra.mxu2 %v5752_v58  ;;  %v4601_v59 = vshll.u32 %v4366_v40, 16  ;;  %v5282_v53 = vld [vmem:[#allocation2 + $0x68] sm:$0xf]  ;;  %v5281_v58 = vld [vmem:[#allocation2 + $0x64] sm:$0xf]  ;;  %v5402_v40 = vsel %vm8507_vm10, %v5397_v17, %v9315_v38 }
 0x30d   : > { %v5423_v36 = vshll.u32 %v5282_v53, 16  ;;  %v5427_v19 = vshrl.u32 %v5282_v53, 16  ;;  %v5414_v18 = vshrl.u32 %v5281_v58, 16  ;;  %v5724_v12 = vunpack.c.l.b16 %v5402_v40  ;;  %v5283_v53 = vld [vmem:[#allocation2 + $0x6c] sm:$0x1] }
 0x30e   : > { %4914 = vmatmul.bf16.gmra.mxu1 %v4794_v20  ;;  %v4603_v6 = vor.u32 %v4601_v59, %v4600_v5  ;;  %v5417_v20 = vshll.u32 %v5281_v58, 16  ;;  %v3361_v5 = vadd.f32 %v9037_v48, %v9157_v33  ;;  %v4595_v59 = vsel %vm8349_vm7, %v7057_v56, %v4594_v7  ;;  %v4368_v17 = vld [vmem:[#allocation2 + $0xc4] sm:$0xf]  ;;  %v4367_v7 = vld [vmem:[#allocation2 + $0xc0] sm:$0x8] }
 0x30f   : > { %v3592_v37 = vpop.f32.mrf.mxu2  ;;  %v5429_v39 = vrot.slane %v5427_v19, 4  ;;  %v5753_v33 = vpack.c.b16 %v5725_v63, %v5724_v12  ;;  %v5416_v16 = vrot.slane %v5414_v18, 4  ;;  %v5433_v40 = vshll.u32 %v5283_v53, 16  ;;  %v5285_v53 = vld [vmem:[#allocation2 + $0x78] sm:$0xf] }
 0x310   : > { %v3642_v13 = vadd.f32 %v3592_v37, %v3360_v26  ;;  %v7393_v37 = vld [vmem:[#allocation2 + $0x104] sm:$0xff]  ;;  %v4604_v4 = vsel %vm8349_vm7, %v4596_v43, %v4603_v6  ;;  %v9343_v26 = vrot.slane %v5423_v36, 5  ;;  %v5419_v58 = vrot.slane %v5417_v20, 5 }
 0x311   : > { %v4773_v6 = vunpack.c.l.b16 %v4604_v4  ;;  %v4620_v36 = vshrl.u32 %v4369_v22, 16  ;;  %v4772_v43 = vunpack.c.l.b16 %v4595_v59  ;;  %v4611_v27 = vshrl.u32 %v4368_v17, 16  ;;  %v9354_v23 = vpop.f32.mrf.mxu0  ;;  %v9875_v4 = vld [vmem:[#allocation50_spill] sm:$0xff] }
 0x312   : > { %v3362_v63 = vadd.f32 %v9875_v4, %v9174_v61  ;;  %v5420_v18 = vor.u32 %v5419_v58, %v5416_v16  ;;  %v5435_v52 = vrot.slane %v5433_v40, 5  ;;  %v4606_v12 = vshrl.u32 %v4367_v7, 16  ;;  %v5284_v61 = vld [vmem:[#allocation2 + $0x74] sm:$0xf] }
 0x313   : > { %v9330_v49 = vpop.f32.mrf.mxu3  ;;  %v4795_v56 = vpack.c.b16 %v4773_v6, %v4772_v43  ;;  %v4613_v59 = vrot.slane %v4611_v27, 7  ;;  %v5447_v16 = vshll.u32 %v5285_v53, 16  ;;  %v5451_v58 = vshrl.u32 %v5285_v53, 16  ;;  %v7394_v27 = vld [vmem:[#allocation2 + $0x114] sm:$0xff] }
 0x315   : > { %v4618_v4 = vrot.slane %v4613_v59, 4 }
 0x317   : > { %v3594_v38 = vpop.f32.mrf.mxu2 }
 0x318   : > { %5226 = vmatmul.bf16.gmra.mxu0 %v7393_v37  ;;  %v9349_v29 = vadd.f32 %v3594_v38, %v3361_v5  ;;  %v5430_v37 = vor.u32 %v5429_v39, %v9343_v26  ;;  %v4622_v5 = vrot.slane %v4620_v36, 7  ;;  %v4623_v39 = vshll.u32 %v4369_v22, 16 }
 0x319   : > { %v5421_v36 = vrot.slane %v5420_v18, 4  ;;  %v3363_v18 = vadd.f32 %v9076_v14, %v9185_v62 }
 0x31a   : > { %v5431_v20 = vrot.slane %v5430_v37, 4  ;;  %v4625_v43 = vor.u32 %v4623_v39, %v4622_v5  ;;  %v7058_v37 = vrot.slane %v4606_v12, 11  ;;  %v5438_v5 = vshrl.u32 %v5284_v61, 16  ;;  %v5286_v39 = vld [vmem:[#allocation2 + $0x7c] sm:$0x1] }
 0x31b   : > { %v4274_v48 = vpop.f32.mrf.mxu3  ;;  %v5426_v22 = vsel %vm8507_vm10, %v5421_v36, %v9343_v26  ;;  %v9377_v36 = vpop.f32.mrf.mxu1 }
 0x31c   : > { %v9351_v19 = vadd.f32 %v4274_v48, %v3642_v13  ;;  %5853 = vmatmul.bf16.gmra.mxu2 %v5753_v33  ;;  %v7420_v13 = vld [vmem:[#allocation12 + $0x8] sm:$0xff]  ;;  %v4614_v33 = vshll.u32 %v4368_v17, 16  ;;  %v4626_v17 = vsel %vm8349_vm7, %v4618_v4, %v4625_v43  ;;  %v4371_v43 = vld [vmem:[#allocation2 + $0xd4] sm:$0xf] }
 0x31d   : > { %6077 = vmatpush.bf16.msra.mxu3 %v7420_v13  ;;  %v4372_v13 = vld [vmem:[#allocation2 + $0xd8] sm:$0xf] }
 0x31e   : > { %9874 = vst [vmem:[#allocation47_spill] sm:$0xff] %v9351_v19  ;;  %4919 = vmatmul.bf16.gmra.mxu1 %v4795_v56  ;;  %v5436_v56 = vsel %vm8507_vm10, %v5431_v20, %v5435_v52  ;;  %v4616_v40 = vor.u32 %v4614_v33, %v4613_v59  ;;  %v9369_v20 = vrot.slane %v5447_v16, 5  ;;  %v5453_v52 = vrot.slane %v5451_v58, 4 }
 0x31f   : > { %v3597_v38 = vpop.f32.mrf.mxu2  ;;  %v5727_v7 = vunpack.c.l.b16 %v5436_v56  ;;  %v5726_v59 = vunpack.c.l.b16 %v5426_v22  ;;  %v4775_v33 = vunpack.c.l.b16 %v4626_v17  ;;  %v5440_v56 = vrot.slane %v5438_v5, 4 }
 0x320   : > { %v3644_v48 = vadd.f32 %v3597_v38, %v3362_v63  ;;  %v5441_v63 = vshll.u32 %v5284_v61, 16  ;;  %v9371_v38 = vpop.f32.mrf.mxu0  ;;  %v4617_v26 = vsel %vm8349_vm7, %v7058_v37, %v4616_v40  ;;  %v4642_v16 = vshrl.u32 %v4372_v13, 16  ;;  %v4370_v40 = vld [vmem:[#allocation2 + $0xd0] sm:$0x8] }
 0x321   : > { %v5754_v62 = vpack.c.b16 %v5727_v7, %v5726_v59  ;;  %v4774_v4 = vunpack.c.l.b16 %v4617_v26  ;;  %v5454_v22 = vor.u32 %v5453_v52, %v9369_v20  ;;  %v4633_v19 = vshrl.u32 %v4371_v43, 16  ;;  %v5288_v26 = vld [vmem:[#allocation2 + $0x88] sm:$0xf] }
 0x322   : > { %v5443_v61 = vrot.slane %v5441_v63, 5  ;;  %v3364_v17 = vadd.f32 %v9092_v30, %v9196_v41  ;;  %v4628_v59 = vshrl.u32 %v4370_v40, 16 }
 0x323   : > { %v9358_v6 = vpop.f32.mrf.mxu3  ;;  %v4796_v37 = vpack.c.b16 %v4775_v33, %v4774_v4  ;;  %v5455_v7 = vrot.slane %v5454_v22, 4  ;;  %v5471_v4 = vshll.u32 %v5288_v26, 16  ;;  %v5475_v22 = vshrl.u32 %v5288_v26, 16  ;;  %v5289_v26 = vld [vmem:[#allocation2 + $0x8c] sm:$0x1] }
 0x324   : > { %9876 = vst [vmem:[#allocation48_spill] sm:$0xff] %v9358_v6  ;;  %v7059_v30 = vrot.slane %v4628_v59, 11 }
 0x325   : > { %v5477_v59 = vrot.slane %v5475_v22, 4  ;;  %v5481_v22 = vshll.u32 %v5289_v26, 16  ;;  %v5291_v26 = vld [vmem:[#allocation2 + $0x98] sm:$0xf] }
 0x327   : > { %v3599_v12 = vpop.f32.mrf.mxu2 }
 0x328   : > { %5231 = vmatmul.bf16.gmra.mxu0 %v7394_v27  ;;  %v9375_v53 = vadd.f32 %v3599_v12, %v3363_v18  ;;  %v5457_v27 = vshll.u32 %v5286_v39, 16  ;;  %v4644_v18 = vrot.slane %v4642_v16, 7  ;;  %v5444_v12 = vor.u32 %v5443_v61, %v5440_v56  ;;  %v5287_v61 = vld [vmem:[#allocation2 + $0x84] sm:$0xf] }
 0x329   : > { %v4636_v39 = vshll.u32 %v4371_v43, 16  ;;  %v3365_v43 = vadd.f32 %v9110_v60, %v9211_v21  ;;  %v5462_v40 = vshrl.u32 %v5287_v61, 16  ;;  %v1165_v21 = vld [vmem:[#allocation2 + $0x11c] sm:$0x1] }
 0x32a   : > { %9877 = vst [vmem:[#allocation29_spill] sm:$0xff] %v9375_v53  ;;  %v5459_v5 = vrot.slane %v5457_v27, 5  ;;  %v5445_v33 = vrot.slane %v5444_v12, 4  ;;  %v7419_v53 = vld [vmem:[#allocation12] sm:$0xff] }
 0x32b   : > { %v4279_v14 = vpop.f32.mrf.mxu3  ;;  %6078 = vmatpush.bf16.msra.mxu3 %v7419_v53 }
 0x32c   : > { %v9379_v58 = vadd.f32 %v4279_v14, %v3644_v48  ;;  %5858 = vmatmul.bf16.gmra.mxu2 %v5754_v62  ;;  %v4635_v48 = vrot.slane %v4633_v19, 7  ;;  %v4645_v14 = vshll.u32 %v4372_v13, 16  ;;  %v5460_v16 = vsel %vm8507_vm10, %v5455_v7, %v5459_v5 }
 0x32d   : > { %v5450_v19 = vsel %vm8507_vm10, %v5445_v33, %v9369_v20  ;;  %v5729_v27 = vunpack.c.l.b16 %v5460_v16  ;;  %v5465_v5 = vshll.u32 %v5287_v61, 16 }
 0x32e   : > { %9878 = vst [vmem:[#allocation50_spill] sm:$0xff] %v9379_v58  ;;  %4924 = vmatmul.bf16.gmra.mxu1 %v4796_v37  ;;  %v4647_v62 = vor.u32 %v4645_v14, %v4644_v18  ;;  %v9388_v37 = vpop.f32.mrf.mxu1  ;;  %v4638_v41 = vor.u32 %v4636_v39, %v4635_v48  ;;  %v4640_v56 = vrot.slane %v4635_v48, 4  ;;  %v4374_v18 = vld [vmem:[#allocation2 + $0xe4] sm:$0xf]  ;;  %v5728_v20 = vunpack.c.l.b16 %v5450_v19 }
 0x32f   : > { %v3602_v63 = vpop.f32.mrf.mxu2  ;;  %v4655_v33 = vshrl.u32 %v4374_v18, 16 }
 0x330   : > { %v3646_v58 = vadd.f32 %v3602_v63, %v3364_v17  ;;  %v4648_v13 = vsel %vm8349_vm7, %v4640_v56, %v4647_v62  ;;  %v4375_v17 = vld [vmem:[#allocation2 + $0xe8] sm:$0xf]  ;;  %v4639_v7 = vsel %vm8349_vm7, %v7059_v30, %v4638_v41  ;;  %v5473_v63 = vrot.slane %v5471_v4, 5  ;;  %v4373_v62 = vld [vmem:[#allocation2 + $0xe0] sm:$0x8] }
 0x331   : > { %v4777_v14 = vunpack.c.l.b16 %v4648_v13  ;;  %v4664_v60 = vshrl.u32 %v4375_v17, 16  ;;  %v5755_v56 = vpack.c.b16 %v5729_v27, %v5728_v20  ;;  %v1166_v30 = vsel %vm8276_vm5, 0, %v1165_v21 }
 0x332   : > { %v5464_v41 = vrot.slane %v5462_v40, 4  ;;  %v5467_v4 = vrot.slane %v5465_v5, 5  ;;  %v5478_v61 = vor.u32 %v5477_v59, %v5473_v63  ;;  %1167 = vst [vmem:[#allocation2 + $0x11c] sm:$0x1] %v1166_v30  ;;  %v4650_v13 = vshrl.u32 %v4373_v62, 16 }
 0x333   : > { %v9384_v52 = vpop.f32.mrf.mxu3  ;;  %v4666_v6 = vrot.slane %v4664_v60, 7  ;;  %v3366_v27 = vadd.f32 %v9131_v15, %v9230_v24  ;;  %v5483_v59 = vrot.slane %v5481_v22, 5  ;;  %v5495_v60 = vshll.u32 %v5291_v26, 16  ;;  %v5290_v24 = vld [vmem:[#allocation2 + $0x94] sm:$0xf] }
 0x334   : > { %9879 = vst [vmem:[#allocation53_spill] sm:$0xff] %v9384_v52  ;;  %v4776_v52 = vunpack.c.l.b16 %v4639_v7  ;;  %v5468_v40 = vor.u32 %v5467_v4, %v5464_v41  ;;  %v5479_v5 = vrot.slane %v5478_v61, 4  ;;  %v5499_v15 = vshrl.u32 %v5291_v26, 16  ;;  %v4377_v41 = vld [vmem:[#allocation2 + $0xf4] sm:$0xf] }
 0x335   : > { %v4378_v4 = vld [vmem:[#allocation2 + $0xf8] sm:$0xf]  ;;  %v4677_v26 = vshrl.u32 %v4377_v41, 16 }
 0x336   : > { %v4797_v19 = vpack.c.b16 %v4777_v14, %v4776_v52  ;;  %v7060_v14 = vrot.slane %v4650_v13, 11  ;;  %v5489_v13 = vshll.u32 %v5290_v24, 16 }
 0x337   : > { %v3604_v12 = vpop.f32.mrf.mxu2 }
 0x338   : > { %v9399_v48 = vadd.f32 %v3604_v12, %v3365_v43  ;;  %v9405_v43 = vpop.f32.mrf.mxu1  ;;  %v4657_v12 = vrot.slane %v4655_v33, 7  ;;  %v5469_v33 = vrot.slane %v5468_v40, 4  ;;  %v5292_v40 = vld [vmem:[#allocation2 + $0x9c] sm:$0x1] }
 0x33a   : > { %9880 = vst [vmem:[#allocation54_spill] sm:$0xff] %v9399_v48  ;;  %v4658_v48 = vshll.u32 %v4374_v18, 16  ;;  %v4662_v62 = vrot.slane %v4657_v12, 4  ;;  %v5474_v21 = vsel %vm8507_vm10, %v5469_v33, %v5473_v63  ;;  %v5505_v33 = vshll.u32 %v5292_v40, 16 }
 0x33b   : > { %v4284_v39 = vpop.f32.mrf.mxu3 }
 0x33c   : > { %v9401_v16 = vadd.f32 %v4284_v39, %v3646_v58  ;;  %5863 = vmatmul.bf16.gmra.mxu2 %v5755_v56  ;;  %v4667_v58 = vshll.u32 %v4375_v17, 16  ;;  %v4660_v39 = vor.u32 %v4658_v48, %v4657_v12  ;;  %v5484_v17 = vsel %vm8507_vm10, %v5479_v5, %v5483_v59  ;;  %v4376_v59 = vld [vmem:[#allocation2 + $0xf0] sm:$0x8] }
 0x33d   : > { %v3367_v48 = vadd.f32 %v9147_v9, %v9246_v42  ;;  %v5497_v12 = vrot.slane %v5495_v60, 5  ;;  %v4686_v9 = vshrl.u32 %v4378_v4, 16  ;;  %v4672_v60 = vshrl.u32 %v4376_v59, 16 }
 0x33e   : > { %4929 = vmatmul.bf16.gmra.mxu1 %v4797_v19  ;;  %v4669_v18 = vor.u32 %v4667_v58, %v4666_v6  ;;  %v4661_v56 = vsel %vm8349_vm7, %v7060_v14, %v4660_v39  ;;  %v5731_v6 = vunpack.c.l.b16 %v5484_v17  ;;  %v5486_v19 = vshrl.u32 %v5290_v24, 16 }
 0x33f   : > { %v3607_v7 = vpop.f32.mrf.mxu2  ;;  %v5501_v58 = vrot.slane %v5499_v15, 4  ;;  %v4778_v53 = vunpack.c.l.b16 %v4661_v56  ;;  %v4679_v15 = vrot.slane %v4677_v26, 7  ;;  %v4680_v24 = vshll.u32 %v4377_v41, 16 }
 0x340   : > { %v3648_v20 = vadd.f32 %v3607_v7, %v3366_v27  ;;  %v4670_v30 = vsel %vm8349_vm7, %v4662_v62, %v4669_v18  ;;  %v9421_v61 = vpop.f32.mrf.mxu1  ;;  %v5730_v27 = vunpack.c.l.b16 %v5474_v21  ;;  %v5488_v39 = vrot.slane %v5486_v19, 4  ;;  %v5294_v19 = vld [vmem:[#allocation2 + $0xa8] sm:$0xf] }
 0x341   : > { %v4779_v7 = vunpack.c.l.b16 %v4670_v30  ;;  %v5491_v62 = vrot.slane %v5489_v13, 5  ;;  %v5502_v18 = vor.u32 %v5501_v58, %v5497_v12  ;;  %v4688_v21 = vrot.slane %v4686_v9, 7 }
 0x342   : > { %v5756_v14 = vpack.c.b16 %v5731_v6, %v5730_v27  ;;  %v4689_v56 = vshll.u32 %v4378_v4, 16  ;;  %v3368_v30 = vadd.f32 %v9165_v54, %v9267_v3  ;;  %v7061_v27 = vrot.slane %v4672_v60, 11  ;;  %v5293_v3 = vld [vmem:[#allocation2 + $0xa4] sm:$0xf] }
 0x343   : > { %v9409_v52 = vpop.f32.mrf.mxu3  ;;  %v4798_v17 = vpack.c.b16 %v4779_v7, %v4778_v53  ;;  %v4682_v53 = vor.u32 %v4680_v24, %v4679_v15  ;;  %v4684_v7 = vrot.slane %v4679_v15, 4  ;;  %v5519_v59 = vshll.u32 %v5294_v19, 16 }
 0x344   : > { %v4691_v41 = vor.u32 %v4689_v56, %v4688_v21  ;;  %v5523_v54 = vshrl.u32 %v5294_v19, 16  ;;  %v5510_v60 = vshrl.u32 %v5293_v3, 16  ;;  %v5513_v15 = vshll.u32 %v5293_v3, 16 }
 0x345   : > { %v4683_v9 = vsel %vm8349_vm7, %v7061_v27, %v4682_v53  ;;  %v5521_v24 = vrot.slane %v5519_v59, 5 }
 0x346   : > { %v5525_v21 = vrot.slane %v5523_v54, 4 }
 0x347   : > { %v3609_v22 = vpop.f32.mrf.mxu2 }
 0x348   : > { %v9423_v63 = vadd.f32 %v3609_v22, %v3367_v48  ;;  %v5492_v22 = vor.u32 %v5491_v62, %v5488_v39  ;;  %v9429_v13 = vpop.f32.mrf.mxu1  ;;  %v3369_v39 = vadd.f32 %v9180_v45, %v9276_v50 }
 0x34a   : > { %v5493_v40 = vrot.slane %v5492_v22, 4  ;;  %v5295_v22 = vld [vmem:[#allocation2 + $0xac] sm:$0x1] }
 0x34b   : > { %v4289_v5 = vpop.f32.mrf.mxu3 }
 0x34c   : > { %v9425_v42 = vadd.f32 %v4289_v5, %v3648_v20  ;;  %5868 = vmatmul.bf16.gmra.mxu2 %v5756_v14  ;;  %v5503_v20 = vrot.slane %v5502_v18, 4  ;;  %v5507_v5 = vrot.slane %v5505_v33, 5  ;;  %v5498_v26 = vsel %vm8507_vm10, %v5493_v40, %v5497_v12  ;;  %v4380_v18 = vld [vmem:[#allocation2 + $0x104] sm:$0xf]  ;;  %v4381_v33 = vld [vmem:[#allocation2 + $0x108] sm:$0xf] }
 0x34d   : > { %v4692_v14 = vsel %vm8349_vm7, %v4684_v7, %v4691_v41  ;;  %v5732_v12 = vunpack.c.l.b16 %v5498_v26  ;;  %v4699_v19 = vshrl.u32 %v4380_v18, 16  ;;  %v4708_v27 = vshrl.u32 %v4381_v33, 16 }
 0x34e   : > { %4934 = vmatmul.bf16.gmra.mxu1 %v4798_v17  ;;  %v5508_v4 = vsel %vm8507_vm10, %v5503_v20, %v5507_v5  ;;  %v4379_v5 = vld [vmem:[#allocation2 + $0x100] sm:$0x8]  ;;  %v5512_v7 = vrot.slane %v5510_v60, 4  ;;  %v5515_v41 = vrot.slane %v5513_v15, 5  ;;  %v5526_v40 = vor.u32 %v5525_v21, %v5521_v24  ;;  %v5297_v60 = vld [vmem:[#allocation2 + $0xb8] sm:$0xf] }
 0x34f   : > { %v3612_v48 = vpop.f32.mrf.mxu2  ;;  %v5733_v62 = vunpack.c.l.b16 %v5508_v4  ;;  %v5529_v4 = vshll.u32 %v5295_v22, 16  ;;  %v4694_v54 = vshrl.u32 %v4379_v5, 16  ;;  %v4701_v3 = vrot.slane %v4699_v19, 7 }
 0x350   : > { %v3650_v6 = vadd.f32 %v3612_v48, %v3368_v30  ;;  %v4780_v30 = vunpack.c.l.b16 %v4683_v9  ;;  %v4781_v48 = vunpack.c.l.b16 %v4692_v14  ;;  %v9447_v50 = vpop.f32.mrf.mxu1  ;;  %v4702_v26 = vshll.u32 %v4380_v18, 16 }
 0x351   : > { %v5757_v45 = vpack.c.b16 %v5733_v62, %v5732_v12  ;;  %v4710_v9 = vrot.slane %v4708_v27, 7  ;;  %v4711_v14 = vshll.u32 %v4381_v33, 16  ;;  %v5527_v62 = vrot.slane %v5526_v40, 4  ;;  %v5296_v27 = vld [vmem:[#allocation2 + $0xb4] sm:$0xf] }
 0x352   : > { %v4799_v59 = vpack.c.b16 %v4781_v48, %v4780_v30  ;;  %v5531_v12 = vrot.slane %v5529_v4, 5  ;;  %v7062_v21 = vrot.slane %v4694_v54, 11  ;;  %v4704_v22 = vor.u32 %v4702_v26, %v4701_v3  ;;  %v4383_v4 = vld [vmem:[#allocation2 + $0x114] sm:$0xf] }
 0x353   : > { %v9431_v58 = vpop.f32.mrf.mxu3  ;;  %v4706_v30 = vrot.slane %v4701_v3, 4  ;;  %v4713_v48 = vor.u32 %v4711_v14, %v4710_v9  ;;  %v5543_v33 = vshll.u32 %v5297_v60, 16  ;;  %v5547_v19 = vshrl.u32 %v5297_v60, 16  ;;  %v4382_v60 = vld [vmem:[#allocation2 + $0x110] sm:$0x8] }
 0x354   : > { %v5532_v18 = vsel %vm8507_vm10, %v5527_v62, %v5531_v12  ;;  %v5534_v3 = vshrl.u32 %v5296_v27, 16  ;;  %v5537_v26 = vshll.u32 %v5296_v27, 16  ;;  %v5298_v62 = vld [vmem:[#allocation2 + $0xbc] sm:$0x1] }
 0x355   : > { %v5735_v40 = vunpack.c.l.b16 %v5532_v18  ;;  %v5545_v9 = vrot.slane %v5543_v33, 5  ;;  %v5549_v14 = vrot.slane %v5547_v19, 4  ;;  %v5553_v18 = vshll.u32 %v5298_v62, 16 }
 0x356   : > { %v4716_v19 = vshrl.u32 %v4382_v60, 16 }
 0x357   : > { %v3614_v17 = vpop.f32.mrf.mxu2 }
 0x358   : > { %v9443_v56 = vadd.f32 %v3614_v17, %v3369_v39  ;;  %v3370_v39 = vadd.f32 %v9202_v8, %v9297_v1  ;;  %v5516_v17 = vor.u32 %v5515_v41, %v5512_v7  ;;  %v9455_v8 = vpop.f32.mrf.mxu1  ;;  %v4714_v7 = vsel %vm8349_vm7, %v4706_v30, %v4713_v48 }
 0x359   : > { %v3371_v41 = vadd.f32 %v9220_v25, %v9308_v34  ;;  %v5536_v34 = vrot.slane %v5534_v3, 4  ;;  %v5539_v48 = vrot.slane %v5537_v26, 5  ;;  %v5300_v3 = vld [vmem:[#allocation2 + $0xc8] sm:$0xf]  ;;  %v7063_v26 = vrot.slane %v4716_v19, 11 }
 0x35a   : > { %v5517_v5 = vrot.slane %v5516_v17, 4  ;;  %v4783_v17 = vunpack.c.l.b16 %v4714_v7  ;;  %v5567_v62 = vshll.u32 %v5300_v3, 16  ;;  %v5571_v60 = vshrl.u32 %v5300_v3, 16 }
 0x35b   : > { %v4294_v20 = vpop.f32.mrf.mxu3  ;;  %v5577_v3 = vshll.u32 %v5301_v32, 16 }
 0x35c   : > { %v9445_v53 = vadd.f32 %v4294_v20, %v3650_v6  ;;  %5873 = vmatmul.bf16.gmra.mxu2 %v5757_v45  ;;  %v5522_v1 = vsel %vm8507_vm10, %v5517_v5, %v5521_v24  ;;  %v4705_v45 = vsel %vm8349_vm7, %v7062_v21, %v4704_v22  ;;  %v4721_v21 = vshrl.u32 %v4383_v4, 16 }
 0x35d   : > { %v5734_v24 = vunpack.c.l.b16 %v5522_v1  ;;  %v5550_v5 = vor.u32 %v5549_v14, %v5545_v9 }
 0x35e   : > { %9882 = vst [vmem:[#allocation30_spill] sm:$0xff] %v9445_v53  ;;  %4939 = vmatmul.bf16.gmra.mxu1 %v4799_v59  ;;  %v4384_v59 = vld [vmem:[#allocation2 + $0x118] sm:$0xf]  ;;  %v4723_v27 = vrot.slane %v4721_v21, 7 }
 0x35f   : > { %v3617_v6 = vpop.f32.mrf.mxu2  ;;  %v4730_v22 = vshrl.u32 %v4384_v59, 16  ;;  %v5758_v25 = vpack.c.b16 %v5735_v40, %v5734_v24  ;;  %v5551_v53 = vrot.slane %v5550_v5, 4 }
 0x360   : > { %v3652_v20 = vadd.f32 %v3617_v6, %v3370_v39  ;;  %v4782_v6 = vunpack.c.l.b16 %v4705_v45  ;;  %v4733_v45 = vshll.u32 %v4384_v59, 16  ;;  %v9469_v7 = vpop.f32.mrf.mxu1  ;;  %v4728_v24 = vrot.slane %v4723_v27, 4 }
 0x361   : > { %v4732_v1 = vrot.slane %v4730_v22, 7  ;;  %v5299_v22 = vld [vmem:[#allocation2 + $0xc4] sm:$0xf] }
 0x362   : > { %v4800_v33 = vpack.c.b16 %v4783_v17, %v4782_v6  ;;  %v5561_v5 = vshll.u32 %v5299_v22, 16 }
 0x363   : > { %v9451_v15 = vpop.f32.mrf.mxu3  ;;  %v4735_v6 = vor.u32 %v4733_v45, %v4732_v1 }
 0x367   : > { %v3619_v54 = vpop.f32.mrf.mxu2 }
 0x368   : > { %v9465_v39 = vadd.f32 %v3619_v54, %v3371_v41  ;;  %v4724_v41 = vshll.u32 %v4383_v4, 16  ;;  %v4956_v4 = vadd.f32 %v9388_v37, %v9066_v47  ;;  %v9487_v47 = vld [vmem:[%s9765_s6] ss:$0 sm:$0xff]  ;;  %v9490_v1 = vpop.f32.mrf.mxu1 }
 0x36a   : > { %9883 = vst [vmem:[#allocation55_spill] sm:$0xff] %v9465_v39  ;;  %v5540_v39 = vor.u32 %v5539_v48, %v5536_v34  ;;  %v4726_v14 = vor.u32 %v4724_v41, %v4723_v27  ;;  %v4736_v34 = vsel %vm8349_vm7, %v4728_v24, %v4735_v6  ;;  %v5238_v37 = vadd.f32 %v9264_v0, %v4956_v4  ;;  %v9494_v24 = vpop.f32.mrf.mxu0 }
 0x36b   : > { %v4299_v12 = vpop.f32.mrf.mxu3  ;;  %v4785_v41 = vunpack.c.l.b16 %v4736_v34  ;;  %v5563_v0 = vrot.slane %v5561_v5, 5 }
 0x36c   : > { %v9467_v30 = vadd.f32 %v4299_v12, %v3652_v20  ;;  %5878 = vmatmul.bf16.gmra.mxu2 %v5758_v25  ;;  %v5555_v20 = vrot.slane %v5553_v18, 5  ;;  %v9884_v12 = vld [vmem:[#allocation49_spill] sm:$0xff]  ;;  %v5541_v17 = vrot.slane %v5540_v39, 4  ;;  %v4727_v25 = vsel %vm8349_vm7, %v7063_v26, %v4726_v14 }
 0x36d   : > { %v4955_v40 = vadd.f32 %v9377_v36, %v9884_v12  ;;  %v5558_v39 = vshrl.u32 %v5299_v22, 16  ;;  %v5569_v18 = vrot.slane %v5567_v62, 5  ;;  %v4784_v27 = vunpack.c.l.b16 %v4727_v25 }
 0x36e   : > { %4944 = vmatmul.bf16.gmra.mxu1 %v4800_v33  ;;  %v5556_v59 = vsel %vm8507_vm10, %v5551_v53, %v5555_v20  ;;  %v5546_v36 = vsel %vm8507_vm10, %v5541_v17, %v5545_v9  ;;  %v5573_v9 = vrot.slane %v5571_v60, 4  ;;  %v4957_v62 = vadd.f32 %v9405_v43, %v9080_v44  ;;  %v5303_v60 = vld [vmem:[#allocation2 + $0xd8] sm:$0xf] }
 0x36f   : > { %v5839_v54 = vpop.f32.mrf.mxu2  ;;  %v5237_v21 = vadd.f32 %v9239_v10, %v4955_v40  ;;  %v5737_v53 = vunpack.c.l.b16 %v5556_v59  ;;  %v5736_v19 = vunpack.c.l.b16 %v5546_v36  ;;  %v5560_v12 = vrot.slane %v5558_v39, 4 }
 0x370   : > { %v5574_v40 = vor.u32 %v5573_v9, %v5569_v18  ;;  %v4801_v14 = vpack.c.b16 %v4785_v41, %v4784_v27  ;;  %v5579_v59 = vrot.slane %v5577_v3, 5  ;;  %v9500_v36 = vpop.f32.mrf.mxu1 }
 0x371   : > { %v5919_v48 = vadd.f32 %v5839_v54, %v5237_v21  ;;  %v5759_v20 = vpack.c.b16 %v5737_v53, %v5736_v19  ;;  %v5564_v4 = vor.u32 %v5563_v0, %v5560_v12  ;;  %v9885_v21 = vld [vmem:[#allocation51_spill] sm:$0xff]  ;;  %v5239_v53 = vadd.f32 %v9278_v2, %v4957_v62 }
 0x372   : > { %v5575_v17 = vrot.slane %v5574_v40, 4  ;;  %v4958_v22 = vadd.f32 %v9421_v61, %v9885_v21 }
 0x373   : > { %v5955_v45 = vadd.f32 %v9487_v47, %v5919_v48  ;;  %v5565_v25 = vrot.slane %v5564_v4, 4  ;;  %v5591_v48 = vshll.u32 %v5303_v60, 16 }
 0x374   : > { %v5580_v34 = vsel %vm8507_vm10, %v5575_v17, %v5579_v59  ;;  %v5240_v44 = vadd.f32 %v9301_v57, %v4958_v22 }
 0x375   : > { %v5570_v39 = vsel %vm8507_vm10, %v5565_v25, %v5569_v18  ;;  %v5739_v43 = vunpack.c.l.b16 %v5580_v34  ;;  %v5593_v19 = vrot.slane %v5591_v48, 5 }
 0x376   : > { %v5738_v32 = vunpack.c.l.b16 %v5570_v39 }
 0x377   : > { %v5841_v10 = vpop.f32.mrf.mxu2 }
 0x378   : > { %v5920_v33 = vadd.f32 %v5841_v10, %v5238_v37  ;;  %v5595_v37 = vshrl.u32 %v5303_v60, 16  ;;  %v5302_v10 = vld [vmem:[#allocation2 + $0xd4] sm:$0xf]  ;;  %v5760_v12 = vpack.c.b16 %v5739_v43, %v5738_v32  ;;  %v9886_v60 = vld [vmem:[#allocation52_spill] sm:$0xff] }
 0x379   : > { %v5582_v61 = vshrl.u32 %v5302_v10, 16  ;;  %v4959_v21 = vadd.f32 %v9429_v13, %v9886_v60  ;;  %v4961_v60 = vadd.f32 %v9455_v8, %v9138_v55 }
 0x37a   : > { %v5956_v54 = vadd.f32 %v9487_v47, %v5920_v33  ;;  %v5585_v33 = vshll.u32 %v5302_v10, 16  ;;  %v5597_v27 = vrot.slane %v5595_v37, 4  ;;  %v9887_v37 = vld [vmem:[#allocation36_spill] sm:$0xff] }
 0x37b   : > { %v5584_v18 = vrot.slane %v5582_v61, 4 }
 0x37c   : > { %v5987_v26 = vpack.c.bf16 %v5956_v54, %v5955_v45  ;;  %5883 = vmatmul.bf16.gmra.mxu2 %v5759_v20  ;;  %v5304_v45 = vld [vmem:[#allocation2 + $0xdc] sm:$0x1]  ;;  %v9508_v54 = vpop.f32.mrf.mxu0  ;;  %v5587_v0 = vrot.slane %v5585_v33, 5  ;;  %v5598_v40 = vor.u32 %v5597_v27, %v5593_v19 }
 0x37d   : > { %v5601_v57 = vshll.u32 %v5304_v45, 16 }
 0x37e   : > { %4949 = vmatmul.bf16.gmra.mxu1 %v4801_v14  ;;  %6079 = vmatmul.bf16.vlgmr.msra.gmra.mxu3 %v5987_v26  ;;  %v9512_v26 = vpop.f32.mrf.mxu1  ;;  %v5305_v14 = vld [vmem:[#allocation2 + $0xe4] sm:$0xf]  ;;  %v5588_v17 = vor.u32 %v5587_v0, %v5584_v18  ;;  %v5599_v59 = vrot.slane %v5598_v40, 4 }
 0x37f   : > { %v5844_v6 = vpop.f32.mrf.mxu2  ;;  %v5603_v62 = vrot.slane %v5601_v57, 5  ;;  %v5606_v22 = vshrl.u32 %v5305_v14, 16  ;;  %v5609_v25 = vshll.u32 %v5305_v14, 16 }
 0x380   : > { %v5921_v5 = vadd.f32 %v5844_v6, %v5239_v53  ;;  %v5306_v6 = vld [vmem:[#allocation2 + $0xe8] sm:$0xf]  ;;  %v4960_v53 = vadd.f32 %v9447_v50, %v9887_v37  ;;  %v5589_v39 = vrot.slane %v5588_v17, 4  ;;  %v5308_v17 = vld [vmem:[#allocation2 + $0xf4] sm:$0xf] }
 0x381   : > { %v5615_v34 = vshll.u32 %v5306_v6, 16  ;;  %v5619_v48 = vshrl.u32 %v5306_v6, 16  ;;  %v5608_v43 = vrot.slane %v5606_v22, 4  ;;  %v5611_v13 = vrot.slane %v5609_v25, 5 }
 0x382   : > { %v5957_v2 = vadd.f32 %v9487_v47, %v5921_v5  ;;  %v5604_v5 = vsel %vm8507_vm10, %v5599_v59, %v5603_v62  ;;  %v5309_v62 = vld [vmem:[#allocation2 + $0xf8] sm:$0xf]  ;;  %v5630_v25 = vshrl.u32 %v5308_v17, 16 }
 0x383   : > { %v5617_v61 = vrot.slane %v5615_v34, 5  ;;  %v5621_v33 = vrot.slane %v5619_v48, 4  ;;  %v5741_v32 = vunpack.c.l.b16 %v5604_v5  ;;  %v5612_v18 = vor.u32 %v5611_v13, %v5608_v43  ;;  %v9888_v48 = vld [vmem:[#allocation31_spill] sm:$0xff] }
 0x384   : > { %v9518_v10 = vpop.f32.mrf.mxu0  ;;  %v5633_v34 = vshll.u32 %v5308_v17, 16  ;;  %v4962_v37 = vadd.f32 %v9469_v7, %v9888_v48  ;;  %v5643_v5 = vshrl.u32 %v5309_v62, 16  ;;  %v5632_v55 = vrot.slane %v5630_v25, 4  ;;  %v5310_v7 = vld [vmem:[#allocation2 + $0xfc] sm:$0x1]  ;;  %v9890_v17 = vld [vmem:[#allocation34_spill] sm:$0xff] }
 0x385   : > { %v5622_v0 = vor.u32 %v5621_v33, %v5617_v61 }
 0x386   : > { %v9526_v50 = vpop.f32.mrf.mxu1  ;;  %v5635_v8 = vrot.slane %v5633_v34, 5  ;;  %v5244_v33 = vadd.f32 %v9371_v38, %v4962_v37 }
 0x387   : > { %v5846_v9 = vpop.f32.mrf.mxu2  ;;  %v5623_v6 = vrot.slane %v5622_v0, 4  ;;  %v5649_v0 = vshll.u32 %v5310_v7, 16 }
 0x388   : > { %v5922_v41 = vadd.f32 %v5846_v9, %v5240_v44  ;;  %v5241_v44 = vadd.f32 %v9323_v31, %v4959_v21  ;;  %v5594_v9 = vsel %vm8507_vm10, %v5589_v39, %v5593_v19  ;;  %v5639_v39 = vshll.u32 %v5309_v62, 16  ;;  %v9891_v62 = vld [vmem:[#allocation33_spill] sm:$0xff] }
 0x38a   : > { %v5958_v20 = vadd.f32 %v9487_v47, %v5922_v41  ;;  %v5242_v41 = vadd.f32 %v9334_v35, %v4960_v53  ;;  %v5613_v35 = vrot.slane %v5612_v18, 4 }
 0x38c   : > { %5888 = vmatmul.bf16.gmra.mxu2 %v5760_v12  ;;  %v5988_v3 = vpack.c.bf16 %v5958_v20, %v5957_v2  ;;  %v5307_v2 = vld [vmem:[#allocation2 + $0xec] sm:$0x1]  ;;  %v5740_v12 = vunpack.c.l.b16 %v5594_v9  ;;  %v9530_v14 = vpop.f32.mrf.mxu0  ;;  %v5618_v22 = vsel %vm8507_vm10, %v5613_v35, %v5617_v61  ;;  %v5641_v61 = vrot.slane %v5639_v39, 5 }
 0x38d   : > { %v5625_v57 = vshll.u32 %v5307_v2, 16  ;;  %v5742_v43 = vunpack.c.l.b16 %v5618_v22 }
 0x38e   : > { %6084 = vmatmul.bf16.gmra.mxu3 %v5988_v3  ;;  %v5761_v19 = vpack.c.b16 %v5741_v32, %v5740_v12  ;;  %v9534_v21 = vpop.f32.mrf.mxu1 }
 0x38f   : > { %v5849_v4 = vpop.f32.mrf.mxu2 }
 0x390   : > { %v5923_v27 = vadd.f32 %v5849_v4, %v5241_v44  ;;  %v5627_v4 = vrot.slane %v5625_v57, 5  ;;  %v5243_v44 = vadd.f32 %v9354_v23, %v4961_v60  ;;  %v5651_v57 = vrot.slane %v5649_v0, 5 }
 0x391   : > { %v4963_v60 = vadd.f32 %v9490_v1, %v9891_v62  ;;  %v5315_v62 = vld [vmem:[#allocation2 + $0x118] sm:$0xf] }
 0x392   : > { %v5959_v31 = vadd.f32 %v9487_v47, %v5923_v27  ;;  %v5628_v53 = vsel %vm8507_vm10, %v5623_v6, %v5627_v4  ;;  %v5645_v27 = vrot.slane %v5643_v5, 4  ;;  %v5312_v6 = vld [vmem:[#allocation2 + $0x108] sm:$0xf]  ;;  %v9889_v4 = vld [vmem:[#allocation32_spill] sm:$0xff] }
 0x393   : > { %v5743_v9 = vunpack.c.l.b16 %v5628_v53  ;;  %v5663_v39 = vshll.u32 %v5312_v6, 16  ;;  %v5667_v5 = vshrl.u32 %v5312_v6, 16 }
 0x394   : > { %v5646_v18 = vor.u32 %v5645_v27, %v5641_v61 }
 0x395   : > { %v5762_v2 = vpack.c.b16 %v5743_v9, %v5742_v43  ;;  %v5669_v27 = vrot.slane %v5667_v5, 4 }
 0x397   : > { %v5851_v45 = vpop.f32.mrf.mxu2 }
 0x398   : > { %v5924_v20 = vadd.f32 %v5851_v45, %v5242_v41  ;;  %v9544_v41 = vpop.f32.mrf.mxu0 }
 0x39a   : > { %v5960_v40 = vadd.f32 %v9487_v47, %v5924_v20  ;;  %v5636_v20 = vor.u32 %v5635_v8, %v5632_v55 }
 0x39c   : > { %5893 = vmatmul.bf16.gmra.mxu2 %v5761_v19  ;;  %v5989_v3 = vpack.c.bf16 %v5960_v40, %v5959_v31  ;;  %v9548_v31 = vpop.f32.mrf.mxu1  ;;  %v5637_v38 = vrot.slane %v5636_v20, 4  ;;  %v5647_v19 = vrot.slane %v5646_v18, 4 }
 0x39e   : > { %6089 = vmatmul.bf16.gmra.mxu3 %v5989_v3  ;;  %v5311_v3 = vld [vmem:[#allocation2 + $0x104] sm:$0xf]  ;;  %v5642_v25 = vsel %vm8507_vm10, %v5637_v38, %v5641_v61  ;;  %v5652_v53 = vsel %vm8507_vm10, %v5647_v19, %v5651_v57  ;;  %v5665_v61 = vrot.slane %v5663_v39, 5  ;;  %v5691_v39 = vshrl.u32 %v5315_v62, 16 }
 0x39f   : > { %v5854_v59 = vpop.f32.mrf.mxu2  ;;  %v5654_v34 = vshrl.u32 %v5311_v3, 16  ;;  %v5657_v48 = vshll.u32 %v5311_v3, 16  ;;  %v5744_v9 = vunpack.c.l.b16 %v5642_v25  ;;  %v5745_v1 = vunpack.c.l.b16 %v5652_v53  ;;  %v9892_v3 = vld [vmem:[#allocation35_spill] sm:$0xff] }
 0x3a0   : > { %v5925_v13 = vadd.f32 %v5854_v59, %v5243_v44  ;;  %v4313_v59 = vadd.f32 %v9890_v17, %v9889_v4  ;;  %v9554_v22 = vpop.f32.mrf.mxu0  ;;  %v5245_v44 = vadd.f32 %v9494_v24, %v4963_v60  ;;  %v9894_v4 = vld [vmem:[#allocation37_spill] sm:$0xff]  ;;  %v5687_v53 = vshll.u32 %v5315_v62, 16 }
 0x3a1   : > { %v5656_v55 = vrot.slane %v5654_v34, 4  ;;  %v5659_v8 = vrot.slane %v5657_v48, 5  ;;  %v4965_v17 = vadd.f32 %v9512_v26, %v9894_v4 }
 0x3a2   : > { %v5961_v12 = vadd.f32 %v9487_v47, %v5925_v13  ;;  %v4964_v37 = vadd.f32 %v9500_v36, %v4313_v59  ;;  %v5313_v36 = vld [vmem:[#allocation2 + $0x10c] sm:$0x1]  ;;  %v5314_v59 = vld [vmem:[#allocation2 + $0x114] sm:$0xf] }
 0x3a3   : > { %v5678_v48 = vshrl.u32 %v5314_v59, 16  ;;  %v5247_v5 = vadd.f32 %v9518_v10, %v4965_v17 }
 0x3a4   : > { %v9562_v43 = vpop.f32.mrf.mxu1 }
 0x3a7   : > { %v5856_v32 = vpop.f32.mrf.mxu2 }
 0x3a8   : > { %v5926_v45 = vadd.f32 %v5856_v32, %v5244_v33  ;;  %v5246_v33 = vadd.f32 %v9508_v54, %v4964_v37  ;;  %v9567_v18 = vpop.f32.mrf.mxu0  ;;  %v5681_v37 = vshll.u32 %v5314_v59, 16 }
 0x3aa   : > { %v5962_v23 = vadd.f32 %v9487_v47, %v5926_v45  ;;  %v5763_v45 = vpack.c.b16 %v5745_v1, %v5744_v9 }
 0x3ac   : > { %5898 = vmatmul.bf16.gmra.mxu2 %v5762_v2  ;;  %v5990_v40 = vpack.c.bf16 %v5962_v23, %v5961_v12  ;;  %v5660_v2 = vor.u32 %v5659_v8, %v5656_v55  ;;  %v5670_v12 = vor.u32 %v5669_v27, %v5665_v61  ;;  %v5673_v23 = vshll.u32 %v5313_v36, 16  ;;  %v9569_v19 = vpop.f32.mrf.mxu1 }
 0x3ae   : > { %6094 = vmatmul.bf16.gmra.mxu3 %v5990_v40  ;;  %v5661_v40 = vrot.slane %v5660_v2, 4  ;;  %v5671_v54 = vrot.slane %v5670_v12, 4  ;;  %v5675_v38 = vrot.slane %v5673_v23, 5 }
 0x3af   : > { %v5859_v35 = vpop.f32.mrf.mxu2 }
 0x3b0   : > { %v5927_v13 = vadd.f32 %v5859_v35, %v5245_v44  ;;  %v9893_v35 = vld [vmem:[#allocation38_spill] sm:$0xff]  ;;  %v5666_v25 = vsel %vm8507_vm10, %v5661_v40, %v5665_v61  ;;  %v5676_v34 = vsel %vm8507_vm10, %v5671_v54, %v5675_v38  ;;  %v5194_v44 = vpop.f32.mrf.mxu0  ;;  %v5693_v61 = vrot.slane %v5691_v39, 4  ;;  %v9895_v38 = vld [vmem:[#allocation43_spill] sm:$0xff] }
 0x3b1   : > { %v4315_v6 = vadd.f32 %v9893_v35, %v9892_v3  ;;  %v5746_v1 = vunpack.c.l.b16 %v5666_v25  ;;  %v5747_v55 = vunpack.c.l.b16 %v5676_v34  ;;  %v9896_v3 = vld [vmem:[#allocation39_spill] sm:$0xff] }
 0x3b2   : > { %v5963_v20 = vadd.f32 %v9487_v47, %v5927_v13  ;;  %v5683_v13 = vrot.slane %v5681_v37, 5  ;;  %v4967_v35 = vadd.f32 %v9534_v21, %v9896_v3 }
 0x3b3   : > { %v4966_v60 = vadd.f32 %v9526_v50, %v4315_v6  ;;  %v5680_v50 = vrot.slane %v5678_v48, 4  ;;  %v5764_v2 = vpack.c.b16 %v5747_v55, %v5746_v1  ;;  %v9899_v55 = vld [vmem:[#allocation40_spill] sm:$0xff] }
 0x3b4   : > { %v4915_v36 = vpop.f32.mrf.mxu1  ;;  %v5249_v62 = vadd.f32 %v9544_v41, %v4967_v35  ;;  %v9898_v41 = vld [vmem:[#allocation46_spill] sm:$0xff]  ;;  %v9608_v35 = vpop.f32.mrf.mxu3 }
 0x3b5   : > { %v5248_v26 = vadd.f32 %v9530_v14, %v4966_v60  ;;  %v5684_v10 = vor.u32 %v5683_v13, %v5680_v50 }
 0x3b7   : > { %v5861_v32 = vpop.f32.mrf.mxu2 }
 0x3b8   : > { %v5928_v7 = vadd.f32 %v5861_v32, %v5246_v33  ;;  %v5689_v33 = vrot.slane %v5687_v53, 5  ;;  %v5316_v32 = vld [vmem:[#allocation2 + $0x11c] sm:$0x1]  ;;  %v5197_v12 = vpop.f32.mrf.mxu0 }
 0x3ba   : > { %v5964_v24 = vadd.f32 %v9487_v47, %v5928_v7 }
 0x3bc   : > { %5903 = vmatmul.bf16.gmra.mxu2 %v5763_v45  ;;  %v5991_v0 = vpack.c.bf16 %v5964_v24, %v5963_v20  ;;  %v5694_v20 = vor.u32 %v5693_v61, %v5689_v33  ;;  %v5697_v24 = vshll.u32 %v5316_v32, 16  ;;  %v4917_v4 = vpop.f32.mrf.mxu1 }
 0x3be   : > { %6099 = vmatmul.bf16.gmra.mxu3 %v5991_v0  ;;  %v5685_v0 = vrot.slane %v5684_v10, 4  ;;  %v5695_v40 = vrot.slane %v5694_v20, 4  ;;  %v5699_v54 = vrot.slane %v5697_v24, 5 }
 0x3bf   : > { %v5864_v57 = vpop.f32.mrf.mxu2 }
 0x3c0   : > { %v5929_v9 = vadd.f32 %v5864_v57, %v5247_v5  ;;  %v4317_v57 = vadd.f32 %v9241_v46, %v9895_v38  ;;  %v5690_v17 = vsel %vm8507_vm10, %v5685_v0, %v5689_v33  ;;  %v5700_v59 = vsel %vm8507_vm10, %v5695_v40, %v5699_v54  ;;  %v5199_v53 = vpop.f32.mrf.mxu0 }
 0x3c1   : > { %v5748_v34 = vunpack.c.l.b16 %v5690_v17  ;;  %v5749_v48 = vunpack.c.l.b16 %v5700_v59 }
 0x3c2   : > { %v5965_v7 = vadd.f32 %v9487_v47, %v5929_v9  ;;  %v4968_v6 = vadd.f32 %v9548_v31, %v4317_v57 }
 0x3c3   : > { %v5765_v39 = vpack.c.b16 %v5749_v48, %v5748_v34  ;;  %v9618_v48 = vld [vmem:[%s9767_s8] ss:$0 sm:$0xff] }
 0x3c4   : > { %v5250_v25 = vadd.f32 %v9554_v22, %v4968_v6  ;;  %v4920_v9 = vpop.f32.mrf.mxu1  ;;  %v4969_v22 = vadd.f32 %v9562_v43, %v9899_v55  ;;  %v9900_v43 = vld [vmem:[#allocation42_spill] sm:$0xff] }
 0x3c6   : > { %v5251_v13 = vadd.f32 %v9567_v18, %v4969_v22 }
 0x3c7   : > { %v5866_v8 = vpop.f32.mrf.mxu2 }
 0x3c8   : > { %v5930_v27 = vadd.f32 %v5866_v8, %v5248_v26  ;;  %v9897_v26 = vld [vmem:[#allocation44_spill] sm:$0xff]  ;;  %v5202_v50 = vpop.f32.mrf.mxu0 }
 0x3c9   : > { %v4319_v1 = vadd.f32 %v9898_v41, %v9897_v26 }
 0x3ca   : > { %v5966_v45 = vadd.f32 %v9487_v47, %v5930_v27 }
 0x3cb   : > { %v4970_v8 = vadd.f32 %v9569_v19, %v4319_v1  ;;  %v9901_v19 = vld [vmem:[#allocation41_spill] sm:$0xff] }
 0x3cc   : > { %5908 = vmatmul.bf16.gmra.mxu2 %v5764_v2  ;;  %v5992_v14 = vpack.c.bf16 %v5966_v45, %v5965_v7  ;;  %v4922_v27 = vpop.f32.mrf.mxu1 }
 0x3cd   : > { %v5252_v61 = vadd.f32 %v5194_v44, %v4970_v8 }
 0x3ce   : > { %6104 = vmatmul.bf16.gmra.mxu3 %v5992_v14  ;;  %v4321_v14 = vadd.f32 %v9900_v43, %v9291_v11  ;;  %v7573_v43 = vld [vmem:[%s8233_s11 + $0x8] sm:$0xff]  }
 0x3cf   : > { %v5869_v23 = vpop.f32.mrf.mxu2 }
 0x3d0   : > { %v5931_v60 = vadd.f32 %v5869_v23, %v5249_v62  ;;  %v5204_v20 = vpop.f32.mrf.mxu0  ;;  %v4971_v23 = vadd.f32 %v4915_v36, %v9901_v19  ;;  %v4972_v18 = vadd.f32 %v4917_v4, %v4321_v14  ;;  %v9902_v36 = vld [vmem:[#allocation45_spill] sm:$0xff] }
 0x3d1   : > { %v4323_v4 = vadd.f32 %v9330_v49, %v9902_v36 }
 0x3d2   : > { %v5967_v21 = vadd.f32 %v9487_v47, %v5931_v60  ;;  %v5253_v40 = vadd.f32 %v5197_v12, %v4971_v23  ;;  %v5254_v54 = vadd.f32 %v5199_v53, %v4972_v18  ;;  %v4973_v12 = vadd.f32 %v4920_v9, %v9326_v51 }
 0x3d3   : > { %v4974_v34 = vadd.f32 %v4922_v27, %v4323_v4 }
 0x3d4   : > { %v4925_v0 = vpop.f32.mrf.mxu1 }
 0x3d7   : > { %v5871_v46 = vpop.f32.mrf.mxu2 }
 0x3d8   : > { %v5932_v37 = vadd.f32 %v5871_v46, %v5250_v25  ;;  %v5207_v38 = vpop.f32.mrf.mxu0  ;;  %v7429_v46 = vld [vmem:[%s8233_s11] sm:$0xff]  }
 0x3d9   : > { %v7431_v26 = vunpack.c.h.bf16 %v7429_v46 }
 0x3da   : > { %v5968_v31 = vadd.f32 %v9487_v47, %v5932_v37  ;;  %v5255_v37 = vadd.f32 %v5202_v50, %v4973_v12 }
 0x3dc   : > { %5913 = vmatmul.bf16.gmra.mxu2 %v5765_v39  ;;  %v5993_v5 = vpack.c.bf16 %v5968_v31, %v5967_v21  ;;  %v4927_v59 = vpop.f32.mrf.mxu1  ;;  %v7430_v39 = vunpack.c.l.bf16 %v7429_v46 }
 0x3de   : > { %6109 = vmatmul.bf16.gmra.mxu3 %v5993_v5  ;;  %v5256_v5 = vadd.f32 %v5204_v20, %v4974_v34  ;;  %v9906_v34 = vld [vmem:[#allocation53_spill] sm:$0xff] }
 0x3df   : > { %v5874_v28 = vpop.f32.mrf.mxu2 }
 0x3e0   : > { %v5933_v33 = vadd.f32 %v5874_v28, %v5251_v13  ;;  %v5209_v60 = vpop.f32.mrf.mxu0 }
 0x3e2   : > { %v5969_v45 = vadd.f32 %v9487_v47, %v5933_v33 }
 0x3e4   : > { %v4930_v53 = vpop.f32.mrf.mxu1 }
 0x3e7   : > { %v5876_v32 = vpop.f32.mrf.mxu2 }
 0x3e8   : > { %v5934_v7 = vadd.f32 %v5876_v32, %v5252_v61  ;;  %v5212_v22 = vpop.f32.mrf.mxu0  ;;  %v9903_v32 = vld [vmem:[#allocation48_spill] sm:$0xff] }
 0x3ea   : > { %v5970_v2 = vadd.f32 %v9487_v47, %v5934_v7  ;;  %v4325_v7 = vadd.f32 %v9903_v32, %v9349_v29 }
 0x3ec   : > { %v5994_v10 = vpack.c.bf16 %v5970_v2, %v5969_v45  ;;  %v4932_v61 = vpop.f32.mrf.mxu1  ;;  %v9904_v45 = vld [vmem:[#allocation47_spill] sm:$0xff] }
 0x3ed   : > { %v4975_v2 = vadd.f32 %v4925_v0, %v9904_v45 }
 0x3ee   : > { %6114 = vmatmul.bf16.gmra.mxu3 %v5994_v10 }
 0x3ef   : > { %v5879_v24 = vpop.f32.mrf.mxu2  ;;  %v5257_v14 = vadd.f32 %v5207_v38, %v4975_v2 }
 0x3f0   : > { %v5935_v44 = vadd.f32 %v5879_v24, %v5253_v40  ;;  %v4976_v24 = vadd.f32 %v4927_v59, %v4325_v7  ;;  %v5214_v19 = vpop.f32.mrf.mxu0  ;;  %v7434_v40 = vunpack.c.l.bf16 %v7573_v43 }
 0x3f2   : > { %v5971_v6 = vadd.f32 %v9487_v47, %v5935_v44  ;;  %v5258_v44 = vadd.f32 %v5209_v60, %v4976_v24  ;;  %v9908_v24 = vld [vmem:[#allocation54_spill] sm:$0xff] }
 0x3f4   : > { %v4935_v0 = vpop.f32.mrf.mxu1 }
 0x3f7   : > { %v5881_v57 = vpop.f32.mrf.mxu2 }
 0x3f8   : > { %v5936_v3 = vadd.f32 %v5881_v57, %v5254_v54  ;;  %v7435_v57 = vunpack.c.h.bf16 %v7573_v43  ;;  %v5217_v12 = vpop.f32.mrf.mxu0  ;;  %v4329_v43 = vadd.f32 %v9409_v52, %v9908_v24 }
 0x3fa   : > { %v5972_v17 = vadd.f32 %v9487_v47, %v5936_v3 }
 0x3fc   : > { %v5995_v62 = vpack.c.bf16 %v5972_v17, %v5971_v6 }
 0x3fe   : > { %6119 = vmatmul.bf16.gmra.mxu3 %v5995_v62 }
 0x3ff   : > { %v5884_v11 = vpop.f32.mrf.mxu2 }
 0x400   : > { %v5937_v21 = vadd.f32 %v5884_v11, %v5255_v37  ;;  %v9907_v37 = vld [vmem:[#allocation50_spill] sm:$0xff] }
 0x401   : > { %v6080_v25 = vpop.f32.mrf.mxu3 }
 0x402   : > { %v6081_v31 = vadd.f32 %v9618_v48, %v6080_v25  ;;  %v5973_v9 = vadd.f32 %v9487_v47, %v5937_v21  ;;  %v9905_v25 = vld [vmem:[#allocation29_spill] sm:$0xff]  ;;  %v4977_v21 = vadd.f32 %v4930_v53, %v9907_v37  ;;  %v4331_v37 = vadd.f32 %v9431_v58, %v9423_v63 }
 0x403   : > { %v4327_v46 = vadd.f32 %v9906_v34, %v9905_v25 }
 0x404   : > { %v6224_v41 = vadd.f32 %v7430_v39, %v6081_v31 }
 0x406   : > { %v6256_v13 = vmax.f32 %v6224_v41, 0.0 }
 0x407   : > { %v5886_v28 = vpop.f32.mrf.mxu2 }
 0x408   : > { %v5938_v49 = vadd.f32 %v5886_v28, %v5256_v5  ;;  %v4978_v5 = vadd.f32 %v4932_v61, %v4327_v46  ;;  %v4937_v28 = vpop.f32.mrf.mxu1 }
 0x409   : > { %v6082_v51 = vpop.f32.mrf.mxu3 }
 0x40a   : > { %v5974_v1 = vadd.f32 %v9487_v47, %v5938_v49  ;;  %v6083_v55 = vadd.f32 %v9618_v48, %v6082_v51  ;;  %v7574_v49 = vld [vmem:[%s8233_s11 + $0x10] sm:$0xff]  }
 0x40b   : > { %v7438_v41 = vunpack.c.l.bf16 %v7574_v49 }
 0x40c   : > { %v6225_v8 = vadd.f32 %v7431_v26, %v6083_v55  ;;  %v5996_v50 = vpack.c.bf16 %v5974_v1, %v5973_v9  ;;  %v5259_v26 = vadd.f32 %v5212_v22, %v4977_v21  ;;  %v5260_v1 = vadd.f32 %v5214_v19, %v4978_v5 }
 0x40e   : > { %v6257_v33 = vmax.f32 %v6225_v8, 0.0  ;;  %6124 = vmatmul.bf16.gmra.mxu3 %v5996_v50  ;;  %v7439_v50 = vunpack.c.h.bf16 %v7574_v49  ;;  %v7576_v49 = vld [vmem:[%s8233_s11 + $0x20] sm:$0xff]  }
 0x40f   : > { %v5889_v27 = vpop.f32.mrf.mxu2 }
 0x410   : > { %v7495_v10 = vpack.c.bf16 %v6257_v33, %v6256_v13  ;;  %v5939_v23 = vadd.f32 %v5889_v27, %v5257_v14  ;;  %v5219_v13 = vpop.f32.mrf.mxu0  ;;  %v4940_v45 = vpop.f32.mrf.mxu1  ;;  %v4979_v14 = vadd.f32 %v4935_v0, %v9401_v16 }
 0x411   : > { %v6085_v20 = vpop.f32.mrf.mxu3  ;;  %v4981_v21 = vadd.f32 %v4940_v45, %v9425_v42 }
 0x412   : > { %7496 = vst [vmem:[%s9630_s14] sm:$0xff] %v7495_v10   ;;  %v6086_v18 = vadd.f32 %v9618_v48, %v6085_v20  ;;  %v5975_v6 = vadd.f32 %v9487_v47, %v5939_v23 }
 0x414   : > { %v6226_v17 = vadd.f32 %v7434_v40, %v6086_v18  ;;  %v4980_v18 = vadd.f32 %v4937_v28, %v4329_v43 }
 0x416   : > { %v6258_v36 = vmax.f32 %v6226_v17, 0.0 }
 0x417   : > { %v5891_v54 = vpop.f32.mrf.mxu2 }
 0x418   : > { %v5940_v29 = vadd.f32 %v5891_v54, %v5258_v44  ;;  %v5222_v40 = vpop.f32.mrf.mxu0  ;;  %v7575_v44 = vld [vmem:[%s8233_s11 + $0x18] sm:$0xff]   ;;  %v5261_v54 = vadd.f32 %v5217_v12, %v4979_v14  ;;  %v4942_v17 = vpop.f32.mrf.mxu1 }
 0x419   : > { %v6087_v3 = vpop.f32.mrf.mxu3  ;;  %v4982_v28 = vadd.f32 %v4942_v17, %v4331_v37 }
 0x41a   : > { %v5976_v59 = vadd.f32 %v9487_v47, %v5940_v29  ;;  %v6088_v38 = vadd.f32 %v9618_v48, %v6087_v3  ;;  %v7442_v3 = vunpack.c.l.bf16 %v7575_v44 }
 0x41c   : > { %v6227_v62 = vadd.f32 %v7435_v57, %v6088_v38  ;;  %v5997_v11 = vpack.c.bf16 %v5976_v59, %v5975_v6  ;;  %v5262_v6 = vadd.f32 %v5219_v13, %v4980_v18  ;;  %v7447_v13 = vunpack.c.h.bf16 %v7576_v49 }
 0x41e   : > { %v6259_v4 = vmax.f32 %v6227_v62, 0.0  ;;  %6129 = vmatmul.bf16.gmra.mxu3 %v5997_v11  ;;  %v7443_v62 = vunpack.c.h.bf16 %v7575_v44 }
 0x41f   : > { %v5894_v60 = vpop.f32.mrf.mxu2 }
 0x420   : > { %v7500_v31 = vpack.c.bf16 %v6259_v4, %v6258_v36  ;;  %v5941_v51 = vadd.f32 %v5894_v60, %v5259_v26  ;;  %v5224_v60 = vpop.f32.mrf.mxu0  ;;  %v5263_v26 = vadd.f32 %v5222_v40, %v4981_v21 }
 0x421   : > { %v6090_v39 = vpop.f32.mrf.mxu3 }
 0x422   : > { %7588 = vst [vmem:[%s9630_s14 + $0x8] sm:$0xff] %v7500_v31   ;;  %v6091_v9 = vadd.f32 %v9618_v48, %v6090_v39  ;;  %v5977_v27 = vadd.f32 %v9487_v47, %v5941_v51  ;;  %v4945_v39 = vpop.f32.mrf.mxu1 }
 0x424   : > { %v6228_v53 = vadd.f32 %v7438_v41, %v6091_v9  ;;  %v7446_v41 = vunpack.c.l.bf16 %v7576_v49 }
 0x426   : > { %v6260_v2 = vmax.f32 %v6228_v53, 0.0 }
 0x427   : > { %v5896_v55 = vpop.f32.mrf.mxu2 }
 0x428   : > { %v5942_v8 = vadd.f32 %v5896_v55, %v5260_v1  ;;  %v5264_v1 = vadd.f32 %v5224_v60, %v4982_v28  ;;  %v5227_v55 = vpop.f32.mrf.mxu0  ;;  %v9910_v60 = vld [vmem:[#allocation55_spill] sm:$0xff] }
 0x429   : > { %v6092_v33 = vpop.f32.mrf.mxu3 }
 0x42a   : > { %v5978_v61 = vadd.f32 %v9487_v47, %v5942_v8  ;;  %v6093_v32 = vadd.f32 %v9618_v48, %v6092_v33  ;;  %v4947_v53 = vpop.f32.mrf.mxu1 }
 0x42c   : > { %v6229_v22 = vadd.f32 %v7439_v50, %v6093_v32  ;;  %v5998_v7 = vpack.c.bf16 %v5978_v61, %v5977_v27 }
 0x42e   : > { %v6261_v10 = vmax.f32 %v6229_v22, 0.0  ;;  %6134 = vmatmul.bf16.gmra.mxu3 %v5998_v7 }
 0x42f   : > { %v5899_v20 = vpop.f32.mrf.mxu2 }
 0x430   : > { %v7505_v19 = vpack.c.bf16 %v6261_v10, %v6260_v2  ;;  %v5943_v29 = vadd.f32 %v5899_v20, %v5261_v54  ;;  %v4333_v2 = vadd.f32 %v9451_v15, %v9443_v56  ;;  %v9909_v10 = vld [vmem:[#allocation30_spill] sm:$0xff]  ;;  %v5229_v43 = vpop.f32.mrf.mxu0 }
 0x431   : > { %v6095_v23 = vpop.f32.mrf.mxu3  ;;  %v4983_v20 = vadd.f32 %v4945_v39, %v9909_v10 }
 0x432   : > { %7589 = vst [vmem:[%s9630_s14 + $0x10] sm:$0xff] %v7505_v19   ;;  %v6096_v57 = vadd.f32 %v9618_v48, %v6095_v23  ;;  %v5979_v52 = vadd.f32 %v9487_v47, %v5943_v29  ;;  %v4984_v19 = vadd.f32 %v4947_v53, %v4333_v2  ;;  %v7577_v23 = vld [vmem:[%s8233_s11 + $0x28] sm:$0xff]   ;;  %v4950_v40 = vpop.f32.mrf.mxu1  ;;  %v7579_v53 = vld [vmem:[%s8233_s11 + $0x38] sm:$0xff]  }
 0x433   : > { %v5265_v18 = vadd.f32 %v5227_v55, %v4983_v20  ;;  %v7450_v29 = vunpack.c.l.bf16 %v7577_v23  ;;  %v7451_v17 = vunpack.c.h.bf16 %v7577_v23 }
 0x434   : > { %v6230_v16 = vadd.f32 %v7442_v3, %v6096_v57  ;;  %v5266_v57 = vadd.f32 %v5229_v43, %v4984_v19 }
 0x436   : > { %v6262_v25 = vmax.f32 %v6230_v16, 0.0 }
 0x437   : > { %v5901_v59 = vpop.f32.mrf.mxu2 }
 0x438   : > { %v5944_v38 = vadd.f32 %v5901_v59, %v5262_v6 }
 0x439   : > { %v6097_v11 = vpop.f32.mrf.mxu3 }
 0x43a   : > { %v5980_v0 = vadd.f32 %v9487_v47, %v5944_v38  ;;  %v6098_v36 = vadd.f32 %v9618_v48, %v6097_v11  ;;  %v5232_v11 = vpop.f32.mrf.mxu0 }
 0x43c   : > { %v6231_v4 = vadd.f32 %v7443_v62, %v6098_v36  ;;  %v5999_v12 = vpack.c.bf16 %v5980_v0, %v5979_v52 }
 0x43e   : > { %v6263_v34 = vmax.f32 %v6231_v4, 0.0  ;;  %6139 = vmatmul.bf16.gmra.mxu3 %v5999_v12  ;;  %v4952_v4 = vpop.f32.mrf.mxu1 }
 0x43f   : > { %v5904_v46 = vpop.f32.mrf.mxu2 }
 0x440   : > { %v7510_v31 = vpack.c.bf16 %v6263_v34, %v6262_v25  ;;  %v5945_v51 = vadd.f32 %v5904_v46, %v5263_v26  ;;  %v4335_v25 = vadd.f32 %v9608_v35, %v9910_v60  ;;  %v4985_v34 = vadd.f32 %v4950_v40, %v9467_v30  ;;  %v7582_v60 = vld [vmem:[%s8233_s11 + $0x50] sm:$0xff]  }
 0x441   : > { %v6100_v5 = vpop.f32.mrf.mxu3 }
 0x442   : > { %7590 = vst [vmem:[%s9630_s14 + $0x18] sm:$0xff] %v7510_v31   ;;  %v6101_v9 = vadd.f32 %v9618_v48, %v6100_v5  ;;  %v5981_v63 = vadd.f32 %v9487_v47, %v5945_v51  ;;  %v4986_v21 = vadd.f32 %v4952_v4, %v4335_v25  ;;  %v7578_v31 = vld [vmem:[%s8233_s11 + $0x30] sm:$0xff]   ;;  %v5267_v39 = vadd.f32 %v5232_v11, %v4985_v34  ;;  %v5234_v5 = vpop.f32.mrf.mxu0 }
 0x443   : > { %v7454_v26 = vunpack.c.l.bf16 %v7578_v31  ;;  %v7470_v34 = vunpack.c.l.bf16 %v7582_v60 }
 0x444   : > { %v6232_v42 = vadd.f32 %v7446_v41, %v6101_v9  ;;  %v5268_v51 = vadd.f32 %v5234_v5, %v4986_v21 }
 0x446   : > { %v6264_v22 = vmax.f32 %v6232_v42, 0.0 }
 0x447   : > { %v5906_v8 = vpop.f32.mrf.mxu2 }
 0x448   : > { %v5946_v50 = vadd.f32 %v5906_v8, %v5264_v1  ;;  %v7455_v1 = vunpack.c.h.bf16 %v7578_v31 }
 0x449   : > { %v6102_v33 = vpop.f32.mrf.mxu3 }
 0x44a   : > { %v5982_v58 = vadd.f32 %v9487_v47, %v5946_v50  ;;  %v6103_v27 = vadd.f32 %v9618_v48, %v6102_v33 }
 0x44c   : > { %v6233_v61 = vadd.f32 %v7447_v13, %v6103_v27  ;;  %v6000_v32 = vpack.c.bf16 %v5982_v58, %v5981_v63 }
 0x44e   : > { %v6265_v7 = vmax.f32 %v6233_v61, 0.0  ;;  %6144 = vmatmul.bf16.gmra.mxu3 %v6000_v32  ;;  %v7458_v32 = vunpack.c.l.bf16 %v7579_v53 }
 0x44f   : > { %v5909_v45 = vpop.f32.mrf.mxu2 }
 0x450   : > { %v7515_v24 = vpack.c.bf16 %v6265_v7, %v6264_v22  ;;  %v5947_v44 = vadd.f32 %v5909_v45, %v5265_v18  ;;  %v7459_v22 = vunpack.c.h.bf16 %v7579_v53 }
 0x451   : > { %v6105_v14 = vpop.f32.mrf.mxu3 }
 0x452   : > { %7591 = vst [vmem:[%s9630_s14 + $0x20] sm:$0xff] %v7515_v24   ;;  %v6106_v54 = vadd.f32 %v9618_v48, %v6105_v14  ;;  %v5983_v56 = vadd.f32 %v9487_v47, %v5947_v44  ;;  %v7580_v14 = vld [vmem:[%s8233_s11 + $0x40] sm:$0xff]  }
 0x453   : > { %v7462_v23 = vunpack.c.l.bf16 %v7580_v14  ;;  %v7463_v18 = vunpack.c.h.bf16 %v7580_v14 }
 0x454   : > { %v6234_v15 = vadd.f32 %v7450_v29, %v6106_v54 }
 0x456   : > { %v6266_v0 = vmax.f32 %v6234_v15, 0.0 }
 0x457   : > { %v5911_v3 = vpop.f32.mrf.mxu2 }
 0x458   : > { %v5948_v6 = vadd.f32 %v5911_v3, %v5266_v57 }
 0x459   : > { %v6107_v59 = vpop.f32.mrf.mxu3 }
 0x45a   : > { %v5984_v38 = vadd.f32 %v9487_v47, %v5948_v6  ;;  %v6108_v62 = vadd.f32 %v9618_v48, %v6107_v59  ;;  %v7581_v59 = vld [vmem:[%s8233_s11 + $0x48] sm:$0xff]  }
 0x45b   : > { %v7466_v15 = vunpack.c.l.bf16 %v7581_v59 }
 0x45c   : > { %v6235_v52 = vadd.f32 %v7451_v17, %v6108_v62  ;;  %v6001_v16 = vpack.c.bf16 %v5984_v38, %v5983_v56  ;;  %v7467_v38 = vunpack.c.h.bf16 %v7581_v59 }
 0x45e   : > { %v6267_v36 = vmax.f32 %v6235_v52, 0.0  ;;  %6149 = vmatmul.bf16.gmra.mxu3 %v6001_v16 }
 0x45f   : > { %v5914_v12 = vpop.f32.mrf.mxu2 }
 0x460   : > { %v7520_v46 = vpack.c.bf16 %v6267_v36, %v6266_v0  ;;  %v5949_v28 = vadd.f32 %v5914_v12, %v5267_v39 }
 0x461   : > { %v6110_v37 = vpop.f32.mrf.mxu3 }
 0x462   : > { %7592 = vst [vmem:[%s9630_s14 + $0x28] sm:$0xff] %v7520_v46   ;;  %v6111_v49 = vadd.f32 %v9618_v48, %v6110_v37  ;;  %v5985_v30 = vadd.f32 %v9487_v47, %v5949_v28  ;;  %v7471_v46 = vunpack.c.h.bf16 %v7582_v60 }
 0x464   : > { %v6236_v55 = vadd.f32 %v7454_v26, %v6111_v49 }
 0x466   : > { %v6268_v63 = vmax.f32 %v6236_v55, 0.0 }
 0x467   : > { %v5916_v9 = vpop.f32.mrf.mxu2 }
 0x468   : > { %v5950_v41 = vadd.f32 %v5916_v9, %v5268_v51  ;;  %v7583_v51 = vld [vmem:[%s8233_s11 + $0x58] sm:$0xff]  }
 0x469   : > { %v6112_v35 = vpop.f32.mrf.mxu3 }
 0x46a   : > { %v5986_v8 = vadd.f32 %v9487_v47, %v5950_v41  ;;  %v6113_v50 = vadd.f32 %v9618_v48, %v6112_v35  ;;  %v7474_v41 = vunpack.c.l.bf16 %v7583_v51 }
 0x46c   : > { %v6237_v13 = vadd.f32 %v7455_v1, %v6113_v50  ;;  %v6002_v33 = vpack.c.bf16 %v5986_v8, %v5985_v30  ;;  %v7475_v1 = vunpack.c.h.bf16 %v7583_v51 }
 0x46e   : > { %v6269_v42 = vmax.f32 %v6237_v13, 0.0  ;;  %6154 = vmatmul.bf16.gmra.mxu3 %v6002_v33 }
 0x470   : > { %v7525_v58 = vpack.c.bf16 %v6269_v42, %v6268_v63  ;;  %v7584_v42 = vld [vmem:[%s8233_s11 + $0x60] sm:$0xff]  }
 0x471   : > { %v6115_v27 = vpop.f32.mrf.mxu3  ;;  %v7479_v53 = vunpack.c.h.bf16 %v7584_v42 }
 0x472   : > { %7593 = vst [vmem:[%s9630_s14 + $0x30] sm:$0xff] %v7525_v58   ;;  %v6116_v61 = vadd.f32 %v9618_v48, %v6115_v27  ;;  %v7478_v27 = vunpack.c.l.bf16 %v7584_v42 }
 0x474   : > { %v6238_v45 = vadd.f32 %v7458_v32, %v6116_v61 }
 0x476   : > { %v6270_v10 = vmax.f32 %v6238_v45, 0.0 }
 0x479   : > { %v6117_v7 = vpop.f32.mrf.mxu3 }
 0x47a   : > { %v6118_v47 = vadd.f32 %v9618_v48, %v6117_v7 }
 0x47c   : > { %v6239_v2 = vadd.f32 %v7459_v22, %v6118_v47 }
 0x47e   : > { %v6271_v20 = vmax.f32 %v6239_v2, 0.0 }
 0x480   : > { %v7530_v24 = vpack.c.bf16 %v6271_v20, %v6270_v10  ;;  %v7585_v20 = vld [vmem:[%s8233_s11 + $0x68] sm:$0xff]  }
 0x481   : > { %v6120_v43 = vpop.f32.mrf.mxu3  ;;  %v7483_v14 = vunpack.c.h.bf16 %v7585_v20 }
 0x482   : > { %7594 = vst [vmem:[%s9630_s14 + $0x38] sm:$0xff] %v7530_v24   ;;  %v6121_v19 = vadd.f32 %v9618_v48, %v6120_v43  ;;  %v7482_v43 = vunpack.c.l.bf16 %v7585_v20 }
 0x484   : > { %v6240_v44 = vadd.f32 %v7462_v23, %v6121_v19 }
 0x486   : > { %v6272_v57 = vmax.f32 %v6240_v44, 0.0 }
 0x489   : > { %v6122_v40 = vpop.f32.mrf.mxu3 }
 0x48a   : > { %v6123_v54 = vadd.f32 %v9618_v48, %v6122_v40 }
 0x48c   : > { %v6241_v29 = vadd.f32 %v7463_v18, %v6123_v54 }
 0x48e   : > { %v6273_v3 = vmax.f32 %v6241_v29, 0.0 }
 0x490   : > { %v7535_v6 = vpack.c.bf16 %v6273_v3, %v6272_v57  ;;  %v7586_v3 = vld [vmem:[%s8233_s11 + $0x70] sm:$0xff]  }
 0x491   : > { %v6125_v17 = vpop.f32.mrf.mxu3  ;;  %v7487_v59 = vunpack.c.h.bf16 %v7586_v3 }
 0x492   : > { %7595 = vst [vmem:[%s9630_s14 + $0x40] sm:$0xff] %v7535_v6   ;;  %v6126_v56 = vadd.f32 %v9618_v48, %v6125_v17  ;;  %v7486_v17 = vunpack.c.l.bf16 %v7586_v3 }
 0x494   : > { %v6242_v11 = vadd.f32 %v7466_v15, %v6126_v56 }
 0x496   : > { %v6274_v0 = vmax.f32 %v6242_v11, 0.0 }
 0x499   : > { %v6127_v62 = vpop.f32.mrf.mxu3 }
 0x49a   : > { %v6128_v52 = vadd.f32 %v9618_v48, %v6127_v62 }
 0x49c   : > { %v6243_v16 = vadd.f32 %v7467_v38, %v6128_v52 }
 0x49e   : > { %v6275_v36 = vmax.f32 %v6243_v16, 0.0 }
 0x4a0   : > { %v7540_v4 = vpack.c.bf16 %v6275_v36, %v6274_v0  ;;  %v7587_v36 = vld [vmem:[%s8233_s11 + $0x78] sm:$0xff]   ;;  %s6353_s11 = scalar_lea.sflag [#allocation5], %s8227_s20 }
 0x4a1   : > { %v6130_v12 = vpop.f32.mrf.mxu3  ;;  %v7491_v60 = vunpack.c.h.bf16 %v7587_v36 }
 0x4a2   : > { %7596 = vst [vmem:[%s9630_s14 + $0x48] sm:$0xff] %v7540_v4   ;;  %v6131_v25 = vadd.f32 %v9618_v48, %v6130_v12  ;;  %v7490_v12 = vunpack.c.l.bf16 %v7587_v36 }
 0x4a4   : > { %v6244_v21 = vadd.f32 %v7470_v34, %v6131_v25 }
 0x4a6   : > { %v6276_v5 = vmax.f32 %v6244_v21, 0.0 }
 0x4a9   : > { %v6132_v37 = vpop.f32.mrf.mxu3 }
 0x4aa   : > { %v6133_v31 = vadd.f32 %v9618_v48, %v6132_v37 }
 0x4ac   : > { %v6245_v39 = vadd.f32 %v7471_v46, %v6133_v31 }
 0x4ae   : > { %v6277_v28 = vmax.f32 %v6245_v39, 0.0 }
 0x4b0   : > { %v7545_v49 = vpack.c.bf16 %v6277_v28, %v6276_v5 }
 0x4b1   : > { %v6135_v26 = vpop.f32.mrf.mxu3 }
 0x4b2   : > { %7597 = vst [vmem:[%s9630_s14 + $0x50] sm:$0xff] %v7545_v49   ;;  %v6136_v9 = vadd.f32 %v9618_v48, %v6135_v26 }
 0x4b4   : > { %v6246_v30 = vadd.f32 %v7474_v41, %v6136_v9 }
 0x4b6   : > { %v6278_v50 = vmax.f32 %v6246_v30, 0.0 }
 0x4b9   : > { %v6137_v35 = vpop.f32.mrf.mxu3 }
 0x4ba   : > { %v6138_v55 = vadd.f32 %v9618_v48, %v6137_v35 }
 0x4bc   : > { %v6247_v8 = vadd.f32 %v7475_v1, %v6138_v55 }
 0x4be   : > { %v6279_v13 = vmax.f32 %v6247_v8, 0.0 }
 0x4c0   : > { %v7550_v33 = vpack.c.bf16 %v6279_v13, %v6278_v50 }
 0x4c1   : > { %v6140_v63 = vpop.f32.mrf.mxu3 }
 0x4c2   : > { %7598 = vst [vmem:[%s9630_s14 + $0x58] sm:$0xff] %v7550_v33   ;;  %v6141_v58 = vadd.f32 %v9618_v48, %v6140_v63 }
 0x4c4   : > { %v6248_v32 = vadd.f32 %v7478_v27, %v6141_v58 }
 0x4c6   : > { %v6280_v45 = vmax.f32 %v6248_v32, 0.0 }
 0x4c9   : > { %v6142_v61 = vpop.f32.mrf.mxu3 }
 0x4ca   : > { %v6143_v22 = vadd.f32 %v9618_v48, %v6142_v61 }
 0x4cc   : > { %v6249_v7 = vadd.f32 %v7479_v53, %v6143_v22 }
 0x4ce   : > { %v6281_v47 = vmax.f32 %v6249_v7, 0.0 }
 0x4d0   : > { %v7555_v2 = vpack.c.bf16 %v6281_v47, %v6280_v45 }
 0x4d1   : > { %v6145_v10 = vpop.f32.mrf.mxu3 }
 0x4d2   : > { %7599 = vst [vmem:[%s9630_s14 + $0x60] sm:$0xff] %v7555_v2   ;;  %v6146_v24 = vadd.f32 %v9618_v48, %v6145_v10 }
 0x4d4   : > { %v6250_v23 = vadd.f32 %v7482_v43, %v6146_v24 }
 0x4d6   : > { %v6282_v44 = vmax.f32 %v6250_v23, 0.0 }
 0x4d9   : > { %v6147_v19 = vpop.f32.mrf.mxu3 }
 0x4da   : > { %v6148_v18 = vadd.f32 %v9618_v48, %v6147_v19 }
 0x4dc   : > { %v6251_v40 = vadd.f32 %v7483_v14, %v6148_v18 }
 0x4de   : > { %v6283_v54 = vmax.f32 %v6251_v40, 0.0 }
 0x4e0   : > { %v7560_v29 = vpack.c.bf16 %v6283_v54, %v6282_v44 }
 0x4e1   : > { %v6150_v57 = vpop.f32.mrf.mxu3 }
 0x4e2   : > { %7600 = vst [vmem:[%s9630_s14 + $0x68] sm:$0xff] %v7560_v29   ;;  %v6151_v6 = vadd.f32 %v9618_v48, %v6150_v57 }
 0x4e4   : > { %v6252_v15 = vadd.f32 %v7486_v17, %v6151_v6 }
 0x4e6   : > { %v6284_v11 = vmax.f32 %v6252_v15, 0.0 }
 0x4e9   : > { %v6152_v56 = vpop.f32.mrf.mxu3 }
 0x4ea   : > { %v6153_v38 = vadd.f32 %v9618_v48, %v6152_v56 }
 0x4ec   : > { %v6253_v62 = vadd.f32 %v7487_v59, %v6153_v38 }
 0x4ee   : > { %v6285_v52 = vmax.f32 %v6253_v62, 0.0 }
 0x4f0   : > { %v7565_v16 = vpack.c.bf16 %v6285_v52, %v6284_v11 }
 0x4f1   : > { %v6155_v0 = vpop.f32.mrf.mxu3 }
 0x4f2   : > { %7601 = vst [vmem:[%s9630_s14 + $0x70] sm:$0xff] %v7565_v16   ;;  %v6156_v4 = vadd.f32 %v9618_v48, %v6155_v0 }
 0x4f4   : > { %v6254_v34 = vadd.f32 %v7490_v12, %v6156_v4 }
 0x4f6   : > { %v6286_v21 = vmax.f32 %v6254_v34, 0.0 }
 0x4f9   : > { %v6157_v25 = vpop.f32.mrf.mxu3 }
 0x4fa   : > { %v6158_v46 = vadd.f32 %v9618_v48, %v6157_v25 }
 0x4fc   : > { %v6255_v37 = vadd.f32 %v7491_v60, %v6158_v46 }
 0x4fe   : > { %v6287_v31 = vmax.f32 %v6255_v37, 0.0 }
 0x500   : > { %v7570_v39 = vpack.c.bf16 %v6287_v31, %v6286_v21 }
 0x502   : > { %7602 = vst [vmem:[%s9630_s14 + $0x78] sm:$0xff] %v7570_v39  }
 0x503   : > { %7947 = shalt.err (!%p7944_p12)
}
 0x504   : > { %s8021_s20 = smov 64   ;;  %s8022_s3 = smov 4  }
 0x505   : > { %7645 = dma.vmem_to_hbm [thread:$0]  (%p8153_p5), %s6369_s15, 2048, %s6371_s17, %s6353_s11, %s8021_s20, %s8021_s20, %s8022_s3  }
 0x506 PF: > { %s9915_s25 = sld [smem:[#allocation20_spill]] }
 0x507   : > { %s9917_s14 = sld [smem:[#allocation24_spill]] }
 0x50c   : > { %s6385_s27 = sand.u32 1, %s9915_s25  }
 0x50d   : > { %p9918_p13 = scmp.ge.s32.totalorder %s9917_s14, 2  ;;  %s6386_s21 = scalar_lea.sflag [#allocation5], %s6385_s27 }
 0x50f   : > { %p7668_p0 = pnand %p9918_p13, %p8118_p6 }
 0x511   : > { %p7669_p3 = pneg %p7668_p0 }
 0x513   : > { %7989 = dma.done.wait (%p7669_p3), %s6386_s21, 2048  }
 0x514   : > { %7991 = vsyncadd (%p7669_p3), %s6386_s21, 4294965248  ;;  %s30_s14 = sadd.s32 1, %s9917_s14   ;;  %s9919_s24 = sld [smem:[#allocation21_spill]] }
 0x515   : > { %p27_p7 = scmp.ge.s32.totalorder %s30_s14, 4   ;;  %s9920_s11 = sld [smem:[#allocation28_spill]] }
 0x516   : > { %s9921_s12 = sld [smem:[#allocation23_spill]]  ;;  %s9923_s30 = smov %s7998_s10 }
 0x517   : > { %s9922_s13 = sld [smem:[#allocation26_spill]]  ;;  %29 = sbr.rel (!%p27_p7) target bundleno = 14 (0xe), region = 148 }
 0x51a   : > { %s9924_s10 = smov %s9919_s24 }
 0x51c   :  { %6392 = vsyncpa [#allocation4], 1 }
 0x51d   :  { %6394 = vsyncpa [#allocation4 + $0x1], 1 }
 0x51e   :  { %6395 = vsyncpa [#allocation7], 1 }
 0x51f   :  { %6397 = vsyncpa [#allocation7 + $0x1], 1 }
 0x520   :  { %6398 = vsyncpa [#allocation10], 1 }
 0x521   :  { %6399 = vsyncpa [#allocation13], 1 }
 0x522   :  { %6400 = vsyncpa [#allocation5], 1 }
 0x523   :  { %6402 = vsyncpa [#allocation5 + $0x1], 1 }

</bundles_post_ra>
